<compile_context>
chip_gen: v7x
topology: tpu7x:2x2x1
jax: 0.10.0
libtpu: 0.0.40
codegen_flags: <defaults>
</compile_context>

<pallas_src>
import math

import jax
import jax.numpy as jnp
from jax.experimental import pallas as pl
from jax.experimental.pallas import tpu as pltpu

_C0 = math.sqrt(2.0 / math.pi)            # sqrt(2/pi)
_C1 = _C0 * 0.044715                      # folded sqrt(2/pi) * 0.044715


def _gelu_kernel(x_ref, o_ref):
    # Compute in f32 regardless of storage dtype (memory-bound, so the upcast
    # is free; v5e has no bf16 VPU/EUP anyway) and cast once at the store.
    x = x_ref[...].astype(jnp.float32)
    x_sq = x * x
    inner = x * (_C0 + _C1 * x_sq)        # = c0 * (x + 0.044715 * x^3)
    y = 0.5 * x * (1.0 + jnp.tanh(inner))
    o_ref[...] = y.astype(o_ref.dtype)


def _gelu_jnp(x):
    """Plain-XLA fallback for tiny inputs / ragged tails (same math, f32 internal)."""
    xf = x.astype(jnp.float32)
    y = 0.5 * xf * (1.0 + jnp.tanh(_C0 * xf + _C1 * xf * xf * xf))
    return y.astype(x.dtype)


def gelu(x, *, max_tile_bytes=2 * 1024 * 1024):
    """Tanh-approximation GELU matching the PyTorch module."""
    orig_shape = x.shape
    dtype = x.dtype
    n = x.size
    if n == 0:
        return x
    itemsize = x.dtype.itemsize

    # Tiny inputs: a pallas_call launch + per-step overhead costs more than
    # XLA's fused elementwise.
    if n * itemsize <= 64 * 1024:
        return _gelu_jnp(x)

    flat = x.reshape(-1)

    # Lane-dense column width (large multiple of 128) -> unmasked full-width
    # stores.  If n isn't divisible by 128, run the kernel on the largest
    # cols-divisible prefix and do the (< cols)-element tail with plain jnp.
    if n % 128 == 0:
        cols = 128
        for c in (4096, 2048, 1024, 512, 256, 128):
            if n % c == 0:
                cols = c
                break
        n_main, tail = n, 0
    else:
        cols = 1024
        n_main = (n // cols) * cols
        tail = n - n_main

    rows = n_main // cols
    main = flat if tail == 0 else flat[:n_main]
    x2d = main.reshape(rows, cols)

    # Dtype-aware sublane granularity: 8 rows/f32, 16/bf16-f16, 32/int8-fp8.
    sub = max(8, 32 // itemsize)

    # ~2 MiB tiles saturate HBM streaming; round down to a sublane multiple.
    tile_rows = max(sub, max_tile_bytes // (cols * itemsize))
    tile_rows -= tile_rows % sub

    # For arrays > ~2 MiB guarantee >= 4 grid steps so the pipeline double-
    # buffers and v7x's two TensorCores both get work.
    total_bytes = rows * cols * itemsize
    if total_bytes > 2 * 1024 * 1024:
        cap = -(-rows // 4)               # cdiv(rows, 4)
        cap = -(-cap // sub) * sub        # round up to sublane multiple
        tile_rows = max(sub, min(tile_rows, cap))

    if tile_rows >= rows:
        tile_rows = rows                  # full dim (allowed even if rows % sub != 0)

    grid = (pl.cdiv(rows, tile_rows),)

    out2d = pl.pallas_call(
        _gelu_kernel,
        out_shape=jax.ShapeDtypeStruct((rows, cols), dtype),
        grid_spec=pltpu.PrefetchScalarGridSpec(
            num_scalar_prefetch=0,
            grid=grid,
            in_specs=[pl.BlockSpec((tile_rows, cols), lambda i: (i, 0))],
            out_specs=pl.BlockSpec((tile_rows, cols), lambda i: (i, 0)),
        ),
        compiler_params=pltpu.CompilerParams(
            dimension_semantics=("parallel",),
            vmem_limit_bytes=32 * 1024 * 1024,
        ),
    )(x2d)

    out = out2d.reshape(-1)
    if tail:
        out = jnp.concatenate([out, _gelu_jnp(flat[n_main:])])
    return out.reshape(orig_shape)


def gelu_ref(x):
    c = math.sqrt(2.0 / math.pi)
    return 0.5 * x * (1.0 + jnp.tanh(c * (x + 0.044715 * jnp.power(x, 3))))


if __name__ == "__main__":
    key = jax.random.PRNGKey(0)
    k1, k2, k3, k4 = jax.random.split(key, 4)

    # 1) Small transformer-MLP-like activation (batch=2, seq=8, hidden=32).
    #    Takes the fused-jnp short-circuit path.
    x_small = jax.random.normal(k1, (2, 8, 32), dtype=jnp.float32)
    y_small = gelu(x_small)
    jax.block_until_ready(y_small)
    assert y_small.shape == x_small.shape and y_small.dtype == x_small.dtype
    assert jnp.allclose(y_small, gelu_ref(x_small), atol=1e-5, rtol=1e-5), "small mismatch"

    # 2) 4 MiB f32 activation: exercises the Pallas streaming path with >=4 grid steps.
    x_big = jax.random.normal(k2, (8, 128, 1024), dtype=jnp.float32)
    y_big = gelu(x_big)
    jax.block_until_ready(y_big)
    assert y_big.shape == x_big.shape and y_big.dtype == x_big.dtype
    assert jnp.allclose(y_big, gelu_ref(x_big), atol=1e-5, rtol=1e-5), "big mismatch"

    # 3) Awkward shape (n % 128 != 0): Pallas on the divisible prefix, jnp on the tail.
    x_rag = jax.random.normal(k3, (513, 257), dtype=jnp.float32)
    y_rag = gelu(x_rag)
    jax.block_until_ready(y_rag)
    assert y_rag.shape == x_rag.shape and y_rag.dtype == x_rag.dtype
    assert jnp.allclose(y_rag, gelu_ref(x_rag), atol=1e-5, rtol=1e-5), "ragged mismatch"

    # 4) bf16 input: f32 internal compute, bf16 store, 16-row sublane rounding.
    x_bf = jax.random.normal(k4, (8, 256, 1024), dtype=jnp.bfloat16)
    y_bf = gelu(x_bf)
    jax.block_until_ready(y_bf)
    assert y_bf.shape == x_bf.shape and y_bf.dtype == x_bf.dtype
    ref_bf = gelu_ref(x_bf.astype(jnp.float32)).astype(jnp.bfloat16)
    assert jnp.allclose(y_bf.astype(jnp.float32), ref_bf.astype(jnp.float32),
                        atol=2e-2, rtol=2e-2), "bf16 mismatch"

    print("KERNEL_OK")
</pallas_src>

<mosaic_0001>
module attributes {stable_mosaic.version = 11 : i64} {
  func.func @_gelu_kernel(%arg0: i32, %arg1: memref<64x4096xf32, #tpu.memory_space<vmem>>, %arg2: memref<64x4096xf32, #tpu.memory_space<vmem>>) attributes {dimension_semantics = [#tpu.dimension_semantics<parallel>], iteration_bounds = array<i64: 4>, scalar_prefetch = 0 : i64, scratch_operands = 0 : i64, tpu.core_type = #tpu.core_type<tc>, window_params = [{transform_indices = @transform_0, window_bounds = array<i64: 64, 4096>}, {transform_indices = @transform_1, window_bounds = array<i64: 64, 4096>}]} {
    %c0 = arith.constant 0 : index
    %c0_0 = arith.constant 0 : index
    %0 = vector.load %arg1[%c0, %c0_0] : memref<64x4096xf32, #tpu.memory_space<vmem>>, vector<64x4096xf32>
    %1 = arith.mulf %0, %0 : vector<64x4096xf32>
    %cst = arith.constant 0.0356774069 : f32
    %2 = vector.broadcast %cst : f32 to vector<64x4096xf32>
    %3 = arith.mulf %2, %1 : vector<64x4096xf32>
    %cst_1 = arith.constant 0.797884583 : f32
    %4 = vector.broadcast %cst_1 : f32 to vector<64x4096xf32>
    %5 = arith.addf %4, %3 : vector<64x4096xf32>
    %6 = arith.mulf %0, %5 : vector<64x4096xf32>
    %cst_2 = arith.constant 5.000000e-01 : f32
    %7 = vector.broadcast %cst_2 : f32 to vector<64x4096xf32>
    %8 = arith.mulf %7, %0 : vector<64x4096xf32>
    %9 = math.tanh %6 : vector<64x4096xf32>
    %cst_3 = arith.constant 1.000000e+00 : f32
    %10 = vector.broadcast %cst_3 : f32 to vector<64x4096xf32>
    %11 = arith.addf %10, %9 : vector<64x4096xf32>
    %12 = arith.mulf %8, %11 : vector<64x4096xf32>
    %c0_4 = arith.constant 0 : index
    %c0_5 = arith.constant 0 : index
    %13 = vector.load %arg2[%c0_4, %c0_5] : memref<64x4096xf32, #tpu.memory_space<vmem>>, vector<64x4096xf32>
    tpu.vector_store %arg2[%c0_4, %c0_5], %12 {strides = array<i32>} : memref<64x4096xf32, #tpu.memory_space<vmem>>, vector<64x4096xf32>,
    return
  }
  func.func @transform_0(%arg0: i32) -> (i32, i32) {
    %c0_i32 = arith.constant 0 : i32
    %c0_i32_0 = arith.constant 0 : i32
    return %arg0, %c0_i32 : i32, i32
  }
  func.func @transform_1(%arg0: i32) -> (i32, i32) {
    %c0_i32 = arith.constant 0 : i32
    %c0_i32_0 = arith.constant 0 : i32
    return %arg0, %c0_i32 : i32, i32
  }
}

</mosaic_0001>

<bundles_post_ra>
// kernel: tpu_custom_call.1
= control target key start
LH: loop header
LB: loop body
LE: loop exit
PB: predicated region body
PF: predicated region fallthrough
CT: control target
= control target key end

     0   :  { %6 = vsyncpa [#allocation3], 0  ;;  %s5669_s0 = inlined_call_operand.hbm [shape: f32[256,4096], index: 0, kind: input, shape index: {}]   ;;  %s5670_s1 = inlined_call_operand.hbm [shape: f32[256,4096], index: 1, kind: output, shape index: {}]  }
   0x1   :  { %8 = vsyncpa [#allocation3 + $0x1], 0 }
   0x2   :  { %9 = vsyncpa [#allocation4], 0 }
   0x3   :  { %11 = vsyncpa [#allocation4 + $0x1], 0  ;;  %s3482_s6 = smov 0   ;;  %s3484_s7 = smov 0  }
   0x4   :  { %s3486_s8 = smov 0   ;;  %s3488_s9 = smov 0  }
   0x5 LB: > { %s3503_s10 = sadd.s32 4294967295, %s3464_s9   ;;  %s2786_s11 = sadd.s32 4294967294, %s3464_s9   ;;  %s3464_s9 = sphi %s3488_s9, %s5682_s9   ;;  %s3460_s8 = sphi %s3486_s8, %s5681_s8   ;;  %s3456_s7 = sphi %s3484_s7, %s5680_s7   ;;  %s3452_s6 = sphi %s3482_s6, %s5679_s6  }
   0x6   : > { %s3507_s12 = sadd.s32 1, %s3464_s9   ;;  %s24_s13 = sadd.s32 1, %s3460_s8 }
   0x7   : > { %s21_s14 = ssub.s32 %s3464_s9, %s3507_s12  ;;  %p31_p0 = scmp.ne.s32.totalorder %s3460_s8, %s3456_s7 }
   0x8   : > { %p22_p1 = scmp.eq.s32.totalorder %s21_s14, 0  ;;  %p32_p2 = scmp.eq.s32.totalorder %s3464_s9, 0 }
   0x9   : > { %p37_p3 = scmp.ne.s32.totalorder %s3456_s7, %s3452_s6  ;;  %p38_p4 = scmp.eq.s32.totalorder %s3503_s10, 0 }
   0xa   : > { %s3519_s15 = scalar_select %p22_p1, %s3460_s8, %s24_s13  }
   0xb   : > { %p3521_p5 = por %p32_p2, %p31_p0  ;;  %p3525_p6 = por %p38_p4, %p37_p3 }
   0xc   : > { %p61_p7 = scmp.eq.s32.totalorder %s3503_s10, 3  ;;  %p67_p8 = scmp.eq.s32.totalorder %s2786_s11, 3 }
   0xd   : > { %p2818_p9 = scmp.lt.s32.totalorder %s3464_s9, 4  ;;  %s87_s20 = sand.u32 1, %s3460_s8  }
   0xe   : > { %p3531_p10 = por %p61_p7, %p31_p0  ;;  %p3535_p11 = por %p67_p8, %p37_p3 }
   0xf   : > { %s2803_s21 = sshll.u32 %s3464_s9, 15  ;;  %s2789_s22 = sshll.u32 %s87_s20, 11 }
  0x10   : > { %s5674_s18 = scalar_select %p3531_p10, 1, 0 }
  0x11   : > { %s5675_s19 = scalar_select %p3535_p11, 1, 0 }
  0x12   : > { %s3544_s25 = scalar_lea.hbm %s5669_s0, %s2803_s21  ;;  %s91_s26 = scalar_lea.vmem [#allocation2], %s2789_s22 }
  0x13   : > { %s99_s27 = sshll.u32 %s91_s26, 4  ;;  %p3548_p12 = pnand %p2818_p9, %p3521_p5  ;;  %s3552_s27 = int_to_ptr.vmem [resolvable:$true] %s99_s27 }
  0x14   : > { %s3554_s29 = scalar_lea.sflag [#allocation3], %s87_s20  ;;  %s3368_s30 = scalar_lea.hbm %s3544_s25, 32768 }
  0x15   : > { %p3369_p13 = scmp.ne.s32.totalorder %s3544_s25, %s3368_s30  ;;  %p3370_p0 = pneg %p3548_p12 }
  0x16   : > { %s3373_s4 = scalar_lea.hbm %s5669_s0, 131072  ;;  %p3374_p3 = scmp.lt.u32.totalorder %s3544_s25, %s5669_s0 }
  0x17   : > { %p3371_p1 = pnand %p3370_p0, %p3369_p13  ;;  %p3375_p4 = scmp.lt.u32.totalorder %s3373_s4, %s3368_s30 }
  0x18   : > { %p3377_p7 = scmp.lt.u32.totalorder %s3368_s30, %s3544_s25 }
  0x19   : > { %p3372_p2 = pneg %p3371_p1  ;;  %p3376_p5 = por %p3375_p4, %p3374_p3 }
  0x1b   : > { %p3378_p8 = por %p3377_p7, %p3376_p5 }
  0x1d   : > { %p3379_p9 = pnand %p3378_p8, %p3372_p2 }
  0x1f   : > { %3382 = shalt.err (!%p3379_p9)
}
  0x20   : > { %s3383_s13 = scalar_lea.vmem %s3552_s27, 32768  ;;  %s3466_s14 = smov [#allocation2]  }
  0x21   : > { %p3384_p13 = scmp.ne.s32.totalorder %s3552_s27, %s3383_s13  ;;  %s3388_s16 = sshll.u32 %s3466_s14, 4  ;;  %s3389_s16 = int_to_ptr.vmem [resolvable:$false] %s3388_s16 }
  0x22   : > { %s3390_s20 = scalar_lea.vmem %s3389_s16, 65536  ;;  %p3391_p10 = scmp.lt.s32.totalorder %s3552_s27, %s3389_s16 }
  0x23   : > { %p3386_p1 = pnand %p3384_p13, %p3370_p0  ;;  %p3392_p3 = scmp.lt.s32.totalorder %s3390_s20, %s3383_s13 }
  0x25   : > { %p3387_p11 = pneg %p3386_p1  ;;  %p3393_p4 = por %p3392_p3, %p3391_p10 }
  0x27   : > { %p3394_p5 = pnand %p3393_p4, %p3387_p11 }
  0x29   : > { %3397 = shalt.err (!%p3394_p5)
}
  0x2a   : > { %s3467_s21 = smov 4096   ;;  %s3468_s22 = smov 256  }
  0x2b   : > { %2813 = dma.hbm_to_vmem [thread:$0]  (!%p3548_p12), %s3544_s25, 32768, %s3552_s27, %s3554_s29, %s3467_s21, %s3467_s21, %s3468_s22  }
  0x2c   : > { %p2793_p0 = scmp.ge.s32.totalorder %s3464_s9, 1  ;;  %p107_p2 = scmp.lt.s32.totalorder %s3464_s9, 5 }
  0x2e   : > { %p108_p7 = pnand %p2793_p0, %p107_p2 }
  0x2f   : > { %s3585_s23 = sand.u32 (!%p108_p7), 1, %s3456_s7  }
  0x30   : > { %111 = sbr.rel (%p108_p7) target bundleno = 596 (0x254), region = 24  ;;  %s2794_s24 = sshll.u32 (!%p108_p7), %s3585_s23, 11 }
  0x31   : > { %s114_s26 = scalar_lea.sflag (!%p108_p7), [#allocation3], %s3585_s23  ;;  %s3591_s30 = scalar_lea.vmem (!%p108_p7), [#allocation2], %s2794_s24 }
  0x37   : > { %3443 = dma.done.wait (%p3525_p6), %s114_s26, 32768  }
  0x38   : > { %3445 = vsyncadd (%p3525_p6), %s114_s26, 4294934528  ;;  %v138_v0 = vld [vmem:[%s3591_s30] sm:$0xff]  ;;  %v139_v1 = vld [vmem:[%s3591_s30 + $0x8] sm:$0xff]  ;;  %s3663_s17 = scalar_lea.vmem [#allocation5], %s2794_s24  ;;  %s2805_s25 = sshll.u32 %s3503_s10, 15 }
  0x39   : > { %v140_v2 = vld [vmem:[%s3591_s30 + $0x10] sm:$0xff]  ;;  %v394_v3 = vmul.f32 %v138_v0, %v138_v0  ;;  %v395_v4 = vmul.f32 %v139_v1, %v139_v1  ;;  %v141_v5 = vld [vmem:[%s3591_s30 + $0x18] sm:$0xff]  ;;  %v142_v6 = vld [vmem:[%s3591_s30 + $0x20] sm:$0xff]  ;;  %v3605_v15 = vmul.f32 0.5, %v138_v0  ;;  %v3608_v32 = vmul.f32 0.5, %v139_v1  ;;  %s2713_s27 = sshll.u32 %s3663_s17, 4  ;;  %s5622_s2 = scalar_lea.hbm %s5670_s1, %s2805_s25  ;;  %s5624_s27 = int_to_ptr.vmem [resolvable:$true] %s2713_s27 }
  0x3a   : > { %v143_v7 = vld [vmem:[%s3591_s30 + $0x28] sm:$0xff]  ;;  %v396_v8 = vmul.f32 %v140_v2, %v140_v2  ;;  %v397_v9 = vmul.f32 %v141_v5, %v141_v5  ;;  %v144_v10 = vld [vmem:[%s3591_s30 + $0x30] sm:$0xff]  ;;  %v398_v13 = vmul.f32 %v142_v6, %v142_v6  ;;  %v145_v14 = vld [vmem:[%s3591_s30 + $0x38] sm:$0xff]  ;;  %v3611_v40 = vmul.f32 0.5, %v140_v2  ;;  %s2699_s3 = scalar_lea.sflag [#allocation4], %s3585_s23  ;;  %s3398_s10 = scalar_lea.vmem %s5624_s27, 32768 }
  0x3b   : > { %v650_v11 = vmul.f32 0.035677407, %v394_v3  ;;  %v651_v12 = vmul.f32 0.035677407, %v395_v4  ;;  %v399_v18 = vmul.f32 %v143_v7, %v143_v7  ;;  %v400_v22 = vmul.f32 %v144_v10, %v144_v10  ;;  %v146_v31 = vld [vmem:[%s3591_s30 + $0x40] sm:$0xff]  ;;  %v147_v39 = vld [vmem:[%s3591_s30 + $0x48] sm:$0xff]  ;;  %p3399_p6 = scmp.ne.s32.totalorder %s5624_s27, %s3398_s10 }
  0x3c   : > { %v652_v16 = vmul.f32 0.035677407, %v396_v8  ;;  %v653_v17 = vmul.f32 0.035677407, %v397_v9  ;;  %v654_v21 = vmul.f32 0.035677407, %v398_v13  ;;  %v401_v26 = vmul.f32 %v145_v14, %v145_v14 }
  0x3d   : > { %v906_v19 = vadd.f32 0.7978846, %v650_v11  ;;  %v907_v20 = vadd.f32 0.7978846, %v651_v12  ;;  %v655_v25 = vmul.f32 0.035677407, %v399_v18  ;;  %v402_v42 = vmul.f32 %v146_v31, %v146_v31 }
  0x3e   : > { %v908_v23 = vadd.f32 0.7978846, %v652_v16  ;;  %v909_v24 = vadd.f32 0.7978846, %v653_v17  ;;  %v910_v29 = vadd.f32 0.7978846, %v654_v21  ;;  %v403_v50 = vmul.f32 %v147_v39, %v147_v39 }
  0x3f   : > { %v1162_v27 = vmul.f32 %v906_v19, %v138_v0  ;;  %v1163_v28 = vmul.f32 %v907_v20, %v139_v1  ;;  %v656_v30 = vmul.f32 0.035677407, %v400_v22  ;;  %v911_v35 = vadd.f32 0.7978846, %v655_v25  ;;  %v3614_v43 = vld [vmem:[%s3591_s30 + $0x50] sm:$0xff]  ;;  %v3619_v47 = vld [vmem:[%s3591_s30 + $0x58] sm:$0xff] }
  0x40   : > { %v1164_v33 = vmul.f32 %v908_v23, %v140_v2  ;;  %v1165_v34 = vmul.f32 %v909_v24, %v141_v5  ;;  %v1166_v36 = vmul.f32 %v910_v29, %v142_v6  ;;  %v657_v38 = vmul.f32 0.035677407, %v401_v26  ;;  %v3624_v51 = vld [vmem:[%s3591_s30 + $0x60] sm:$0xff]  ;;  %v3633_v58 = vld [vmem:[%s3591_s30 + $0x68] sm:$0xff]  ;;  %v3640_v1 = vld [vmem:[%s3591_s30 + $0x70] sm:$0xff]  ;;  %p5677_p10 = scmp.ne.s32.totalorder %s5674_s18, 0 }
  0x41   : > { %2856 = vtanh.f32 %v1162_v27  ;;  %v912_v37 = vadd.f32 0.7978846, %v656_v30  ;;  %v1167_v41 = vmul.f32 %v911_v35, %v143_v7  ;;  %v3616_v44 = vmul.f32 0.5, %v141_v5  ;;  %v3656_v23 = vld [vmem:[%s3591_s30 + $0x78] sm:$0xff]  ;;  %s3469_s4 = smov [#allocation5]  }
  0x42   : > { %2858 = vtanh.f32 %v1163_v28  ;;  %v913_v46 = vadd.f32 0.7978846, %v657_v38  ;;  %v3621_v48 = vmul.f32 0.5, %v142_v6  ;;  %v658_v49 = vmul.f32 0.035677407, %v402_v42  ;;  %v3676_v42 = vld [vmem:[%s3591_s30 + $0x88] sm:$0xff]  ;;  %p3400_p11 = pnand %p3399_p6, %p5677_p10 }
  0x43   : > { %2860 = vtanh.f32 %v1164_v33  ;;  %v1168_v45 = vmul.f32 %v912_v37, %v144_v10  ;;  %v3626_v52 = vmul.f32 0.5, %v143_v7  ;;  %v404_v54 = vmul.f32 %v3614_v43, %v3614_v43  ;;  %s3402_s5 = sshll.u32 %s3469_s4, 4  ;;  %s3403_s5 = int_to_ptr.vmem [resolvable:$false] %s3402_s5 }
  0x44   : > { %2862 = vtanh.f32 %v1165_v34  ;;  %v1169_v53 = vmul.f32 %v913_v46, %v145_v14  ;;  %v914_v55 = vadd.f32 0.7978846, %v658_v49  ;;  %v659_v56 = vmul.f32 0.035677407, %v403_v50  ;;  %p3401_p12 = pneg %p3400_p11  ;;  %s3404_s11 = scalar_lea.vmem %s3403_s5, 65536 }
  0x45   : > { %2864 = vtanh.f32 %v1166_v36  ;;  %v405_v57 = vmul.f32 %v3619_v47, %v3619_v47  ;;  %v3635_v59 = vmul.f32 0.5, %v144_v10  ;;  %v660_v60 = vmul.f32 0.035677407, %v404_v54  ;;  %v3670_v36 = vld [vmem:[%s3591_s30 + $0x80] sm:$0xff]  ;;  %p3405_p8 = scmp.lt.s32.totalorder %s5624_s27, %s3403_s5  ;;  %p3406_p9 = scmp.lt.s32.totalorder %s3404_s11, %s3398_s10 }
  0x46   : > { %2866 = vtanh.f32 %v1167_v41  ;;  %v406_v61 = vmul.f32 %v3624_v51, %v3624_v51  ;;  %v1170_v62 = vmul.f32 %v914_v55, %v146_v31  ;;  %v915_v63 = vadd.f32 0.7978846, %v659_v56  ;;  %v3687_v55 = vld [vmem:[%s3591_s30 + $0x90] sm:$0xff] }
  0x47   : > { %2868 = vtanh.f32 %v1168_v45  ;;  %v661_v0 = vmul.f32 0.035677407, %v405_v57  ;;  %v3642_v2 = vmul.f32 0.5, %v145_v14  ;;  %v916_v3 = vadd.f32 0.7978846, %v660_v60  ;;  %p3407_p13 = por %p3406_p9, %p3405_p8 }
  0x48   : > { %2870 = vtanh.f32 %v1169_v53  ;;  %v662_v4 = vmul.f32 0.035677407, %v406_v61  ;;  %v407_v5 = vmul.f32 %v3633_v58, %v3633_v58  ;;  %v3646_v6 = vmul.f32 0.5, %v146_v31 }
  0x49   : > { %2872 = vtanh.f32 %v1170_v62  ;;  %v1171_v7 = vmul.f32 %v915_v63, %v147_v39  ;;  %v917_v8 = vadd.f32 0.7978846, %v661_v0  ;;  %v1172_v10 = vmul.f32 %v916_v3, %v3614_v43  ;;  %p3408_p1 = pnand %p3407_p13, %p3401_p12 }
  0x4a   : > { %v918_v11 = vadd.f32 0.7978846, %v662_v4  ;;  %v663_v12 = vmul.f32 0.035677407, %v407_v5  ;;  %v408_v13 = vmul.f32 %v3640_v1, %v3640_v1  ;;  %v3651_v17 = vmul.f32 0.5, %v147_v39 }
  0x4b   : > { %v2857_v9 = vpop.eup %2856  ;;  %2874 = vtanh.f32 %v1171_v7  ;;  %v1173_v18 = vmul.f32 %v917_v8, %v3619_v47  ;;  %v1428_v41 = vmul.f32 0.5, %v3614_v43  ;;  %v1429_v43 = vmul.f32 0.5, %v3619_v47 }
  0x4c   : > { %v2859_v14 = vpop.eup %2858  ;;  %v1930_v16 = vadd.f32 1.0, %v2857_v9  ;;  %2876 = vtanh.f32 %v1172_v10  ;;  %v1174_v21 = vmul.f32 %v918_v11, %v3624_v51  ;;  %v919_v22 = vadd.f32 0.7978846, %v663_v12 }
  0x4d   : > { %v2861_v19 = vpop.eup %2860  ;;  %v1931_v20 = vadd.f32 1.0, %v2859_v14  ;;  %2878 = vtanh.f32 %v1173_v18  ;;  %v664_v27 = vmul.f32 0.035677407, %v408_v13  ;;  %v410_v54 = vmul.f32 %v3670_v36, %v3670_v36 }
  0x4e   : > { %v2863_v24 = vpop.eup %2862  ;;  %v2186_v25 = vmul.f32 %v1930_v16, %v3605_v15  ;;  %v1932_v26 = vadd.f32 1.0, %v2861_v19  ;;  %2880 = vtanh.f32 %v1174_v21  ;;  %v1175_v31 = vmul.f32 %v919_v22, %v3633_v58 }
  0x4f   : > { %v2865_v28 = vpop.eup %2864  ;;  %v2187_v29 = vmul.f32 %v1931_v20, %v3608_v32  ;;  %v1933_v30 = vadd.f32 1.0, %v2863_v24  ;;  %v920_v35 = vadd.f32 0.7978846, %v664_v27  ;;  %v409_v32 = vmul.f32 %v3656_v23, %v3656_v23  ;;  %v3713_v24 = vld [vmem:[%s3591_s30 + $0xa0] sm:$0xff] }
  0x50   : > { %v2867_v33 = vpop.eup %2866  ;;  %2442 = vst [vmem:[%s3663_s17] sm:$0xff] %v2186_v25  ;;  %v2188_v15 = vmul.f32 %v1932_v26, %v3611_v40  ;;  %v1934_v34 = vadd.f32 1.0, %v2865_v28  ;;  %2882 = vtanh.f32 %v1175_v31  ;;  %v411_v60 = vmul.f32 %v3676_v42, %v3676_v42  ;;  %v3716_v25 = vld [vmem:[%s3591_s30 + $0xa8] sm:$0xff]  ;;  %v3720_v28 = vld [vmem:[%s3591_s30 + $0xb0] sm:$0xff] }
  0x51   : > { %v2869_v37 = vpop.eup %2868  ;;  %2443 = vst [vmem:[%s3663_s17 + $0x8] sm:$0xff] %v2187_v29  ;;  %v2189_v38 = vmul.f32 %v1933_v30, %v3616_v44  ;;  %v1935_v39 = vadd.f32 1.0, %v2867_v33  ;;  %v1176_v49 = vmul.f32 %v920_v35, %v3640_v1  ;;  %v665_v50 = vmul.f32 0.035677407, %v409_v32  ;;  %v3732_v32 = vld [vmem:[%s3591_s30 + $0xb8] sm:$0xff] }
  0x52   : > { %v2871_v40 = vpop.eup %2870  ;;  %2444 = vst [vmem:[%s3663_s17 + $0x10] sm:$0xff] %v2188_v15  ;;  %v2190_v45 = vmul.f32 %v1934_v34, %v3621_v48  ;;  %v1936_v46 = vadd.f32 1.0, %v2869_v37  ;;  %v1430_v62 = vmul.f32 0.5, %v3624_v51  ;;  %v666_v63 = vmul.f32 0.035677407, %v410_v54 }
  0x53   : > { %2445 = vst [vmem:[%s3663_s17 + $0x18] sm:$0xff] %v2189_v38  ;;  %v2191_v44 = vmul.f32 %v1935_v39, %v3626_v52  ;;  %v1937_v53 = vadd.f32 1.0, %v2871_v40  ;;  %v2873_v56 = vpop.eup %2872  ;;  %2884 = vtanh.f32 %v1176_v49  ;;  %v921_v57 = vadd.f32 0.7978846, %v665_v50  ;;  %v3694_v52 = vld [vmem:[%s3591_s30 + $0x98] sm:$0xff] }
  0x54   : > { %2446 = vst [vmem:[%s3663_s17 + $0x20] sm:$0xff] %v2190_v45  ;;  %v2192_v48 = vmul.f32 %v1936_v46, %v3635_v59  ;;  %v1938_v61 = vadd.f32 1.0, %v2873_v56  ;;  %v1431_v3 = vmul.f32 0.5, %v3633_v58  ;;  %v667_v4 = vmul.f32 0.035677407, %v411_v60  ;;  %v3741_v46 = vld [vmem:[%s3591_s30 + $0xc8] sm:$0xff] }
  0x55   : > { %2447 = vst [vmem:[%s3663_s17 + $0x28] sm:$0xff] %v2191_v44  ;;  %v2193_v47 = vmul.f32 %v1937_v53, %v3642_v2  ;;  %v2875_v0 = vpop.eup %2874  ;;  %v1177_v59 = vmul.f32 %v921_v57, %v3656_v23  ;;  %v412_v5 = vmul.f32 %v3687_v55, %v3687_v55  ;;  %v922_v9 = vadd.f32 0.7978846, %v666_v63 }
  0x56   : > { %2448 = vst [vmem:[%s3663_s17 + $0x30] sm:$0xff] %v2192_v48  ;;  %v2877_v7 = vpop.eup %2876  ;;  %v2194_v8 = vmul.f32 %v1938_v61, %v3646_v6  ;;  %v1939_v2 = vadd.f32 1.0, %v2875_v0  ;;  %v413_v51 = vmul.f32 %v3694_v52, %v3694_v52  ;;  %v923_v11 = vadd.f32 0.7978846, %v667_v4 }
  0x57   : > { %2449 = vst [vmem:[%s3663_s17 + $0x38] sm:$0xff] %v2193_v47  ;;  %v2879_v10 = vpop.eup %2878  ;;  %v1940_v58 = vadd.f32 1.0, %v2877_v7  ;;  %2886 = vtanh.f32 %v1177_v59  ;;  %v668_v12 = vmul.f32 0.035677407, %v412_v5  ;;  %v1178_v16 = vmul.f32 %v922_v9, %v3670_v36 }
  0x58   : > { %v2881_v13 = vpop.eup %2880  ;;  %2450 = vst [vmem:[%s3663_s17 + $0x40] sm:$0xff] %v2194_v8  ;;  %v2195_v14 = vmul.f32 %v1939_v2, %v3651_v17  ;;  %v1941_v6 = vadd.f32 1.0, %v2879_v10  ;;  %v669_v18 = vmul.f32 0.035677407, %v413_v51  ;;  %v1179_v21 = vmul.f32 %v923_v11, %v3676_v42 }
  0x59   : > { %v2196_v19 = vmul.f32 %v1940_v58, %v1428_v41  ;;  %v1942_v20 = vadd.f32 1.0, %v2881_v13  ;;  %v924_v22 = vadd.f32 0.7978846, %v668_v12  ;;  %2888 = vtanh.f32 %v1178_v16  ;;  %v3738_v41 = vld [vmem:[%s3591_s30 + $0xc0] sm:$0xff] }
  0x5a   : > { %v2883_v26 = vpop.eup %2882  ;;  %2451 = vst [vmem:[%s3663_s17 + $0x48] sm:$0xff] %v2195_v14  ;;  %v2197_v27 = vmul.f32 %v1941_v6, %v1429_v43  ;;  %v925_v17 = vadd.f32 0.7978846, %v669_v18  ;;  %2890 = vtanh.f32 %v1179_v21  ;;  %v1432_v33 = vmul.f32 0.5, %v3640_v1  ;;  %v3767_v14 = vld [vmem:[%s3591_s30 + $0xd8] sm:$0xff] }
  0x5b   : > { %2452 = vst [vmem:[%s3663_s17 + $0x50] sm:$0xff] %v2196_v19  ;;  %v2198_v29 = vmul.f32 %v1942_v20, %v1430_v62  ;;  %v1943_v30 = vadd.f32 1.0, %v2883_v26  ;;  %v1180_v31 = vmul.f32 %v924_v22, %v3687_v55  ;;  %v414_v34 = vmul.f32 %v3713_v24, %v3713_v24  ;;  %v3754_v62 = vld [vmem:[%s3591_s30 + $0xd0] sm:$0xff]  ;;  %v3772_v20 = vld [vmem:[%s3591_s30 + $0xe0] sm:$0xff] }
  0x5c   : > { %2453 = vst [vmem:[%s3663_s17 + $0x58] sm:$0xff] %v2197_v27  ;;  %v1181_v15 = vmul.f32 %v925_v17, %v3694_v52  ;;  %v415_v35 = vmul.f32 %v3716_v25, %v3716_v25  ;;  %v416_v39 = vmul.f32 %v3720_v28, %v3720_v28  ;;  %v1433_v49 = vmul.f32 0.5, %v3656_v23  ;;  %v3775_v17 = vld [vmem:[%s3591_s30 + $0xe8] sm:$0xff] }
  0x5d   : > { %v2885_v37 = vpop.eup %2884  ;;  %2454 = vst [vmem:[%s3663_s17 + $0x60] sm:$0xff] %v2198_v29  ;;  %v2199_v38 = vmul.f32 %v1943_v30, %v1431_v3  ;;  %2892 = vtanh.f32 %v1180_v31  ;;  %v670_v40 = vmul.f32 0.035677407, %v414_v34  ;;  %v1434_v50 = vmul.f32 0.5, %v3670_v36  ;;  %v3782_v31 = vld [vmem:[%s3591_s30 + $0xf0] sm:$0xff] }
  0x5e   : > { %v1944_v1 = vadd.f32 1.0, %v2885_v37  ;;  %2894 = vtanh.f32 %v1181_v15  ;;  %v671_v45 = vmul.f32 0.035677407, %v415_v35  ;;  %v672_v44 = vmul.f32 0.035677407, %v416_v39  ;;  %v3790_v37 = vld [vmem:[%s3591_s30 + $0xf8] sm:$0xff] }
  0x5f   : > { %2455 = vst [vmem:[%s3663_s17 + $0x68] sm:$0xff] %v2199_v38  ;;  %v417_v53 = vmul.f32 %v3732_v32, %v3732_v32  ;;  %v926_v54 = vadd.f32 0.7978846, %v670_v40  ;;  %v418_v48 = vmul.f32 %v3738_v41, %v3738_v41  ;;  %v1435_v60 = vmul.f32 0.5, %v3676_v42  ;;  %v3796_v40 = vld [vmem:[%s3591_s30 + $0x100] sm:$0xff] }
  0x60   : > { %v2200_v43 = vmul.f32 %v1944_v1, %v1432_v33  ;;  %v927_v56 = vadd.f32 0.7978846, %v671_v45  ;;  %v928_v47 = vadd.f32 0.7978846, %v672_v44  ;;  %v419_v23 = vmul.f32 %v3741_v46, %v3741_v46 }
  0x61   : > { %v2887_v57 = vpop.eup %2886  ;;  %v673_v61 = vmul.f32 0.035677407, %v417_v53  ;;  %v1182_v63 = vmul.f32 %v926_v54, %v3713_v24  ;;  %v674_v3 = vmul.f32 0.035677407, %v418_v48  ;;  %v1436_v59 = vmul.f32 0.5, %v3687_v55 }
  0x62   : > { %2456 = vst [vmem:[%s3663_s17 + $0x70] sm:$0xff] %v2200_v43  ;;  %v1945_v36 = vadd.f32 1.0, %v2887_v57  ;;  %v1183_v0 = vmul.f32 %v927_v56, %v3716_v25  ;;  %v1184_v4 = vmul.f32 %v928_v47, %v3720_v28  ;;  %v675_v5 = vmul.f32 0.035677407, %v419_v23 }
  0x63   : > { %v929_v42 = vadd.f32 0.7978846, %v673_v61  ;;  %v2889_v7 = vpop.eup %2888  ;;  %2896 = vtanh.f32 %v1182_v63  ;;  %v930_v2 = vadd.f32 0.7978846, %v674_v3  ;;  %v420_v9 = vmul.f32 %v3754_v62, %v3754_v62 }
  0x64   : > { %v2201_v8 = vmul.f32 %v1945_v36, %v1433_v49  ;;  %v2891_v51 = vpop.eup %2890  ;;  %v1946_v10 = vadd.f32 1.0, %v2889_v7  ;;  %2898 = vtanh.f32 %v1183_v0  ;;  %v931_v11 = vadd.f32 0.7978846, %v675_v5 }
  0x65   : > { %v1185_v58 = vmul.f32 %v929_v42, %v3732_v32  ;;  %v1947_v55 = vadd.f32 1.0, %v2891_v51  ;;  %2900 = vtanh.f32 %v1184_v4  ;;  %v1186_v12 = vmul.f32 %v930_v2, %v3738_v41 }
  0x66   : > { %2457 = vst [vmem:[%s3663_s17 + $0x78] sm:$0xff] %v2201_v8  ;;  %v676_v13 = vmul.f32 0.035677407, %v420_v9  ;;  %v2202_v16 = vmul.f32 %v1946_v10, %v1434_v50  ;;  %v1437_v18 = vmul.f32 0.5, %v3694_v52  ;;  %v1187_v19 = vmul.f32 %v931_v11, %v3741_v46  ;;  %v3814_v9 = vld [vmem:[%s3591_s30 + $0x108] sm:$0xff] }
  0x67   : > { %v2893_v6 = vpop.eup %2892  ;;  %2902 = vtanh.f32 %v1185_v58  ;;  %v2203_v22 = vmul.f32 %v1947_v55, %v1435_v60  ;;  %v1438_v52 = vmul.f32 0.5, %v3713_v24  ;;  %v421_v30 = vmul.f32 %v3767_v14, %v3767_v14  ;;  %v3818_v55 = vld [vmem:[%s3591_s30 + $0x110] sm:$0xff] }
  0x68   : > { %v2895_v21 = vpop.eup %2894  ;;  %v1948_v26 = vadd.f32 1.0, %v2893_v6  ;;  %2904 = vtanh.f32 %v1186_v12  ;;  %v932_v27 = vadd.f32 0.7978846, %v676_v13  ;;  %2458 = vst [vmem:[%s3663_s17 + $0x80] sm:$0xff] %v2202_v16  ;;  %v1439_v15 = vmul.f32 0.5, %v3716_v25  ;;  %v3822_v16 = vld [vmem:[%s3591_s30 + $0x118] sm:$0xff] }
  0x69   : > { %v1949_v29 = vadd.f32 1.0, %v2895_v21  ;;  %2906 = vtanh.f32 %v1187_v19  ;;  %2459 = vst [vmem:[%s3663_s17 + $0x88] sm:$0xff] %v2203_v22  ;;  %v422_v35 = vmul.f32 %v3772_v20, %v3772_v20  ;;  %v1440_v24 = vmul.f32 0.5, %v3720_v28 }
  0x6a   : > { %v2204_v33 = vmul.f32 %v1948_v26, %v1436_v59  ;;  %v1188_v34 = vmul.f32 %v932_v27, %v3754_v62  ;;  %v677_v39 = vmul.f32 0.035677407, %v421_v30  ;;  %v423_v1 = vmul.f32 %v3775_v17, %v3775_v17  ;;  %v3830_v26 = vld [vmem:[%s3591_s30 + $0x120] sm:$0xff] }
  0x6b   : > { %v2205_v38 = vmul.f32 %v1949_v29, %v1437_v18  ;;  %v1441_v45 = vmul.f32 0.5, %v3732_v32  ;;  %v678_v25 = vmul.f32 0.035677407, %v422_v35  ;;  %v424_v49 = vmul.f32 %v3782_v31, %v3782_v31  ;;  %v3841_v35 = vld [vmem:[%s3591_s30 + $0x128] sm:$0xff] }
  0x6c   : > { %2460 = vst [vmem:[%s3663_s17 + $0x90] sm:$0xff] %v2204_v33  ;;  %2908 = vtanh.f32 %v1188_v34  ;;  %v1442_v50 = vmul.f32 0.5, %v3738_v41  ;;  %v933_v44 = vadd.f32 0.7978846, %v677_v39  ;;  %v679_v53 = vmul.f32 0.035677407, %v423_v1 }
  0x6d   : > { %2461 = vst [vmem:[%s3663_s17 + $0x98] sm:$0xff] %v2205_v38  ;;  %v425_v28 = vmul.f32 %v3790_v37, %v3790_v37  ;;  %v2897_v43 = vpop.eup %2896  ;;  %v1443_v54 = vmul.f32 0.5, %v3741_v46  ;;  %v934_v56 = vadd.f32 0.7978846, %v678_v25  ;;  %v680_v48 = vmul.f32 0.035677407, %v424_v49 }
  0x6e   : > { %v426_v32 = vmul.f32 %v3796_v40, %v3796_v40  ;;  %v2899_v57 = vpop.eup %2898  ;;  %v1950_v60 = vadd.f32 1.0, %v2897_v43  ;;  %v1189_v47 = vmul.f32 %v933_v44, %v3767_v14  ;;  %v935_v61 = vadd.f32 0.7978846, %v679_v53  ;;  %v3848_v39 = vld [vmem:[%s3591_s30 + $0x130] sm:$0xff] }
  0x6f   : > { %v681_v23 = vmul.f32 0.035677407, %v425_v28  ;;  %v2901_v41 = vpop.eup %2900  ;;  %v1951_v36 = vadd.f32 1.0, %v2899_v57  ;;  %v1190_v63 = vmul.f32 %v934_v56, %v3772_v20  ;;  %v936_v0 = vadd.f32 0.7978846, %v680_v48 }
  0x70   : > { %v682_v3 = vmul.f32 0.035677407, %v426_v32  ;;  %v2206_v59 = vmul.f32 %v1950_v60, %v1438_v52  ;;  %v1952_v4 = vadd.f32 1.0, %v2901_v41  ;;  %2910 = vtanh.f32 %v1189_v47  ;;  %v3862_v41 = vld [vmem:[%s3591_s30 + $0x138] sm:$0xff] }
  0x71   : > { %v2903_v46 = vpop.eup %2902  ;;  %v1191_v42 = vmul.f32 %v935_v61, %v3775_v17  ;;  %v2207_v7 = vmul.f32 %v1951_v36, %v1439_v15  ;;  %2912 = vtanh.f32 %v1190_v63  ;;  %v1192_v2 = vmul.f32 %v936_v0, %v3782_v31 }
  0x72   : > { %v2905_v5 = vpop.eup %2904  ;;  %v1953_v8 = vadd.f32 1.0, %v2903_v46  ;;  %2462 = vst [vmem:[%s3663_s17 + $0xa0] sm:$0xff] %v2206_v59  ;;  %v2208_v10 = vmul.f32 %v1952_v4, %v1440_v24  ;;  %v937_v11 = vadd.f32 0.7978846, %v681_v23  ;;  %v938_v6 = vadd.f32 0.7978846, %v682_v3 }
  0x73   : > { %v2907_v51 = vpop.eup %2906  ;;  %v1954_v58 = vadd.f32 1.0, %v2905_v5  ;;  %2914 = vtanh.f32 %v1191_v42  ;;  %2463 = vst [vmem:[%s3663_s17 + $0xa8] sm:$0xff] %v2207_v7  ;;  %v1444_v19 = vmul.f32 0.5, %v3754_v62  ;;  %v427_v22 = vmul.f32 %v3814_v9, %v3814_v9  ;;  %v3866_v46 = vld [vmem:[%s3591_s30 + $0x140] sm:$0xff] }
  0x74   : > { %v2209_v12 = vmul.f32 %v1953_v8, %v1441_v45  ;;  %v1955_v13 = vadd.f32 1.0, %v2907_v51  ;;  %2916 = vtanh.f32 %v1192_v2  ;;  %2464 = vst [vmem:[%s3663_s17 + $0xb0] sm:$0xff] %v2208_v10  ;;  %v1193_v21 = vmul.f32 %v937_v11, %v3790_v37  ;;  %v3872_v2 = vld [vmem:[%s3591_s30 + $0x148] sm:$0xff] }
  0x75   : > { %v2210_v18 = vmul.f32 %v1954_v58, %v1442_v50  ;;  %v1445_v52 = vmul.f32 0.5, %v3767_v14  ;;  %v1194_v30 = vmul.f32 %v938_v6, %v3796_v40  ;;  %v428_v33 = vmul.f32 %v3818_v55, %v3818_v55 }
  0x76   : > { %v2909_v27 = vpop.eup %2908  ;;  %2465 = vst [vmem:[%s3663_s17 + $0xb8] sm:$0xff] %v2209_v12  ;;  %v2211_v29 = vmul.f32 %v1955_v13, %v1443_v54  ;;  %2918 = vtanh.f32 %v1193_v21  ;;  %v683_v15 = vmul.f32 0.035677407, %v427_v22  ;;  %v429_v34 = vmul.f32 %v3822_v16, %v3822_v16  ;;  %v3883_v22 = vld [vmem:[%s3591_s30 + $0x150] sm:$0xff] }
  0x77   : > { %2466 = vst [vmem:[%s3663_s17 + $0xc0] sm:$0xff] %v2210_v18  ;;  %v1956_v62 = vadd.f32 1.0, %v2909_v27  ;;  %v1446_v38 = vmul.f32 0.5, %v3772_v20  ;;  %2920 = vtanh.f32 %v1194_v30  ;;  %v684_v14 = vmul.f32 0.035677407, %v428_v33 }
  0x78   : > { %2467 = vst [vmem:[%s3663_s17 + $0xc8] sm:$0xff] %v2211_v29  ;;  %v430_v24 = vmul.f32 %v3830_v26, %v3830_v26  ;;  %v1447_v45 = vmul.f32 0.5, %v3775_v17  ;;  %v939_v25 = vadd.f32 0.7978846, %v683_v15  ;;  %v685_v49 = vmul.f32 0.035677407, %v429_v34 }
  0x79   : > { %v2212_v1 = vmul.f32 %v1956_v62, %v1444_v19  ;;  %v1448_v50 = vmul.f32 0.5, %v3782_v31  ;;  %v940_v44 = vadd.f32 0.7978846, %v684_v14  ;;  %v431_v28 = vmul.f32 %v3841_v35, %v3841_v35  ;;  %v3893_v62 = vld [vmem:[%s3591_s30 + $0x160] sm:$0xff] }
  0x7a   : > { %v686_v53 = vmul.f32 0.035677407, %v430_v24  ;;  %v2911_v20 = vpop.eup %2910  ;;  %v1449_v43 = vmul.f32 0.5, %v3790_v37  ;;  %v1195_v54 = vmul.f32 %v939_v25, %v3814_v9  ;;  %v941_v56 = vadd.f32 0.7978846, %v685_v49 }
  0x7b   : > { %2468 = vst [vmem:[%s3663_s17 + $0xd0] sm:$0xff] %v2212_v1  ;;  %v432_v17 = vmul.f32 %v3848_v39, %v3848_v39  ;;  %v2913_v48 = vpop.eup %2912  ;;  %v1957_v32 = vadd.f32 1.0, %v2911_v20  ;;  %v1196_v31 = vmul.f32 %v940_v44, %v3818_v55  ;;  %v687_v60 = vmul.f32 0.035677407, %v431_v28 }
  0x7c   : > { %v942_v57 = vadd.f32 0.7978846, %v686_v53  ;;  %v1958_v61 = vadd.f32 1.0, %v2913_v48  ;;  %2922 = vtanh.f32 %v1195_v54  ;;  %v1197_v23 = vmul.f32 %v941_v56, %v3822_v16  ;;  %v3910_v48 = vld [vmem:[%s3591_s30 + $0x168] sm:$0xff] }
  0x7d   : > { %v2915_v47 = vpop.eup %2914  ;;  %v688_v37 = vmul.f32 0.035677407, %v432_v17  ;;  %v2213_v63 = vmul.f32 %v1957_v32, %v1445_v52  ;;  %2924 = vtanh.f32 %v1196_v31  ;;  %v943_v42 = vadd.f32 0.7978846, %v687_v60  ;;  %v3889_v52 = vld [vmem:[%s3591_s30 + $0x158] sm:$0xff] }
  0x7e   : > { %v2917_v36 = vpop.eup %2916  ;;  %v1959_v0 = vadd.f32 1.0, %v2915_v47  ;;  %v1198_v3 = vmul.f32 %v942_v57, %v3830_v26  ;;  %v2214_v59 = vmul.f32 %v1958_v61, %v1446_v38  ;;  %2926 = vtanh.f32 %v1197_v23  ;;  %v3913_v61 = vld [vmem:[%s3591_s30 + $0x170] sm:$0xff] }
  0x7f   : > { %v1960_v4 = vadd.f32 1.0, %v2917_v36  ;;  %2469 = vst [vmem:[%s3663_s17 + $0xd8] sm:$0xff] %v2213_v63  ;;  %v944_v7 = vadd.f32 0.7978846, %v688_v37  ;;  %v433_v8 = vmul.f32 %v3862_v41, %v3862_v41  ;;  %v1450_v58 = vmul.f32 0.5, %v3796_v40 }
  0x80   : > { %v2215_v5 = vmul.f32 %v1959_v0, %v1447_v45  ;;  %2928 = vtanh.f32 %v1198_v3  ;;  %v2919_v51 = vpop.eup %2918  ;;  %2470 = vst [vmem:[%s3663_s17 + $0xe0] sm:$0xff] %v2214_v59  ;;  %v1199_v11 = vmul.f32 %v943_v42, %v3841_v35  ;;  %v434_v12 = vmul.f32 %v3866_v46, %v3866_v46  ;;  %v3921_v59 = vld [vmem:[%s3591_s30 + $0x178] sm:$0xff] }
  0x81   : > { %v2216_v10 = vmul.f32 %v1960_v4, %v1448_v50  ;;  %v2921_v13 = vpop.eup %2920  ;;  %v1961_v6 = vadd.f32 1.0, %v2919_v51  ;;  %v1451_v18 = vmul.f32 0.5, %v3814_v9  ;;  %v1200_v19 = vmul.f32 %v944_v7, %v3848_v39 }
  0x82   : > { %2471 = vst [vmem:[%s3663_s17 + $0xe8] sm:$0xff] %v2215_v5  ;;  %v689_v21 = vmul.f32 0.035677407, %v433_v8  ;;  %v1962_v27 = vadd.f32 1.0, %v2921_v13  ;;  %2930 = vtanh.f32 %v1199_v11  ;;  %v690_v40 = vmul.f32 0.035677407, %v434_v12 }
  0x83   : > { %2472 = vst [vmem:[%s3663_s17 + $0xf0] sm:$0xff] %v2216_v10  ;;  %v435_v29 = vmul.f32 %v3872_v2, %v3872_v2  ;;  %v2217_v30 = vmul.f32 %v1961_v6, %v1449_v43  ;;  %v1452_v33 = vmul.f32 0.5, %v3818_v55  ;;  %2932 = vtanh.f32 %v1200_v19  ;;  %v3930_v11 = vld [vmem:[%s3591_s30 + $0x180] sm:$0xff] }
  0x84   : > { %v945_v9 = vadd.f32 0.7978846, %v689_v21  ;;  %v2218_v15 = vmul.f32 %v1962_v27, %v1450_v58  ;;  %v946_v34 = vadd.f32 0.7978846, %v690_v40  ;;  %v436_v14 = vmul.f32 %v3883_v22, %v3883_v22 }
  0x85   : > { %v691_v38 = vmul.f32 0.035677407, %v435_v29  ;;  %2473 = vst [vmem:[%s3663_s17 + $0xf8] sm:$0xff] %v2217_v30  ;;  %v1453_v24 = vmul.f32 0.5, %v3822_v16  ;;  %v1454_v1 = vmul.f32 0.5, %v3830_v26  ;;  %v437_v55 = vmul.f32 %v3889_v52, %v3889_v52 }
  0x86   : > { %v1201_v45 = vmul.f32 %v945_v9, %v3862_v41  ;;  %v2923_v25 = vpop.eup %2922  ;;  %2474 = vst [vmem:[%s3663_s17 + $0x100] sm:$0xff] %v2218_v15  ;;  %v1202_v49 = vmul.f32 %v946_v34, %v3866_v46  ;;  %v692_v44 = vmul.f32 0.035677407, %v436_v14  ;;  %v438_v53 = vmul.f32 %v3893_v62, %v3893_v62  ;;  %v3943_v9 = vld [vmem:[%s3591_s30 + $0x190] sm:$0xff] }
  0x87   : > { %v947_v50 = vadd.f32 0.7978846, %v691_v38  ;;  %v2925_v28 = vpop.eup %2924  ;;  %v1963_v16 = vadd.f32 1.0, %v2923_v25  ;;  %v1455_v26 = vmul.f32 0.5, %v3841_v35  ;;  %v693_v20 = vmul.f32 0.035677407, %v437_v55 }
  0x88   : > { %2934 = vtanh.f32 %v1201_v45  ;;  %v2927_v43 = vpop.eup %2926  ;;  %v1964_v54 = vadd.f32 1.0, %v2925_v28  ;;  %v948_v17 = vadd.f32 0.7978846, %v692_v44  ;;  %v694_v47 = vmul.f32 0.035677407, %v438_v53 }
  0x89   : > { %2936 = vtanh.f32 %v1202_v49  ;;  %v1203_v56 = vmul.f32 %v947_v50, %v3872_v2  ;;  %v2219_v31 = vmul.f32 %v1963_v16, %v1451_v18  ;;  %v1965_v57 = vadd.f32 1.0, %v2927_v43  ;;  %v3937_v18 = vld [vmem:[%s3591_s30 + $0x188] sm:$0xff] }
  0x8a   : > { %v2929_v32 = vpop.eup %2928  ;;  %v949_v60 = vadd.f32 0.7978846, %v693_v20  ;;  %v2220_v35 = vmul.f32 %v1964_v54, %v1452_v33  ;;  %v1204_v37 = vmul.f32 %v948_v17, %v3883_v22  ;;  %v950_v0 = vadd.f32 0.7978846, %v694_v47 }
  0x8b   : > { %v1966_v23 = vadd.f32 1.0, %v2929_v32  ;;  %2938 = vtanh.f32 %v1203_v56  ;;  %2475 = vst [vmem:[%s3663_s17 + $0x108] sm:$0xff] %v2219_v31  ;;  %v2221_v36 = vmul.f32 %v1965_v57, %v1453_v24  ;;  %v439_v3 = vmul.f32 %v3910_v48, %v3910_v48  ;;  %v3965_v31 = vld [vmem:[%s3591_s30 + $0x1a0] sm:$0xff] }
  0x8c   : > { %v1205_v63 = vmul.f32 %v949_v60, %v3889_v52  ;;  %v2931_v4 = vpop.eup %2930  ;;  %2476 = vst [vmem:[%s3663_s17 + $0x110] sm:$0xff] %v2220_v35  ;;  %v1456_v5 = vmul.f32 0.5, %v3848_v39  ;;  %2940 = vtanh.f32 %v1204_v37  ;;  %v440_v7 = vmul.f32 %v3913_v61, %v3913_v61 }
  0x8d   : > { %v2222_v42 = vmul.f32 %v1966_v23, %v1454_v1  ;;  %v2933_v8 = vpop.eup %2932  ;;  %2477 = vst [vmem:[%s3663_s17 + $0x118] sm:$0xff] %v2221_v36  ;;  %v1967_v51 = vadd.f32 1.0, %v2931_v4  ;;  %v1206_v10 = vmul.f32 %v950_v0, %v3893_v62  ;;  %v695_v58 = vmul.f32 0.035677407, %v439_v3 }
  0x8e   : > { %2942 = vtanh.f32 %v1205_v63  ;;  %v1968_v12 = vadd.f32 1.0, %v2933_v8  ;;  %v1457_v13 = vmul.f32 0.5, %v3862_v41  ;;  %v696_v39 = vmul.f32 0.035677407, %v440_v7  ;;  %v3971_v63 = vld [vmem:[%s3591_s30 + $0x1a8] sm:$0xff] }
  0x8f   : > { %2478 = vst [vmem:[%s3663_s17 + $0x120] sm:$0xff] %v2222_v42  ;;  %v441_v6 = vmul.f32 %v3921_v59, %v3921_v59  ;;  %v2223_v19 = vmul.f32 %v1967_v51, %v1455_v26  ;;  %v1458_v21 = vmul.f32 0.5, %v3866_v46  ;;  %2944 = vtanh.f32 %v1206_v10  ;;  %v3982_v10 = vld [vmem:[%s3591_s30 + $0x1b8] sm:$0xff] }
  0x90   : > { %v951_v27 = vadd.f32 0.7978846, %v695_v58  ;;  %v2224_v40 = vmul.f32 %v1968_v12, %v1456_v5  ;;  %v952_v29 = vadd.f32 0.7978846, %v696_v39  ;;  %v442_v33 = vmul.f32 %v3930_v11, %v3930_v11  ;;  %v3978_v5 = vld [vmem:[%s3591_s30 + $0x1b0] sm:$0xff]  ;;  %v3989_v39 = vld [vmem:[%s3591_s30 + $0x1c0] sm:$0xff] }
  0x91   : > { %v697_v30 = vmul.f32 0.035677407, %v441_v6  ;;  %2479 = vst [vmem:[%s3663_s17 + $0x128] sm:$0xff] %v2223_v19  ;;  %v1459_v15 = vmul.f32 0.5, %v3872_v2  ;;  %v1460_v34 = vmul.f32 0.5, %v3883_v22  ;;  %v443_v46 = vmul.f32 %v3937_v18, %v3937_v18  ;;  %v3956_v22 = vld [vmem:[%s3591_s30 + $0x198] sm:$0xff] }
  0x92   : > { %v2935_v41 = vpop.eup %2934  ;;  %v1207_v38 = vmul.f32 %v951_v27, %v3910_v48  ;;  %2480 = vst [vmem:[%s3663_s17 + $0x130] sm:$0xff] %v2224_v40  ;;  %v1208_v1 = vmul.f32 %v952_v29, %v3913_v61  ;;  %v698_v55 = vmul.f32 0.035677407, %v442_v33  ;;  %v444_v2 = vmul.f32 %v3943_v9, %v3943_v9 }
  0x93   : > { %v2937_v14 = vpop.eup %2936  ;;  %v1969_v24 = vadd.f32 1.0, %v2935_v41  ;;  %v953_v45 = vadd.f32 0.7978846, %v697_v30  ;;  %v699_v49 = vmul.f32 0.035677407, %v443_v46  ;;  %v1461_v56 = vmul.f32 0.5, %v3889_v52 }
  0x94   : > { %v1970_v25 = vadd.f32 1.0, %v2937_v14  ;;  %2946 = vtanh.f32 %v1207_v38  ;;  %v954_v28 = vadd.f32 0.7978846, %v698_v55  ;;  %v700_v43 = vmul.f32 0.035677407, %v444_v2 }
  0x95   : > { %v2939_v50 = vpop.eup %2938  ;;  %v2225_v44 = vmul.f32 %v1969_v24, %v1457_v13  ;;  %2948 = vtanh.f32 %v1208_v1  ;;  %v1209_v53 = vmul.f32 %v953_v45, %v3921_v59  ;;  %v955_v20 = vadd.f32 0.7978846, %v699_v49 }
  0x96   : > { %v2226_v16 = vmul.f32 %v1970_v25, %v1458_v21  ;;  %v1971_v26 = vadd.f32 1.0, %v2939_v50  ;;  %v2941_v54 = vpop.eup %2940  ;;  %v1210_v17 = vmul.f32 %v954_v28, %v3930_v11  ;;  %v445_v32 = vmul.f32 %v3956_v22, %v3956_v22 }
  0x97   : > { %2481 = vst [vmem:[%s3663_s17 + $0x138] sm:$0xff] %v2225_v44  ;;  %2950 = vtanh.f32 %v1209_v53  ;;  %v1972_v47 = vadd.f32 1.0, %v2941_v54  ;;  %v1211_v35 = vmul.f32 %v955_v20, %v3937_v18  ;;  %v956_v23 = vadd.f32 0.7978846, %v700_v43  ;;  %v4013_v20 = vld [vmem:[%s3591_s30 + $0x1d0] sm:$0xff] }
  0x98   : > { %v2943_v57 = vpop.eup %2942  ;;  %2482 = vst [vmem:[%s3663_s17 + $0x140] sm:$0xff] %v2226_v16  ;;  %v2227_v60 = vmul.f32 %v1971_v26, %v1459_v15  ;;  %v1462_v52 = vmul.f32 0.5, %v3893_v62  ;;  %2952 = vtanh.f32 %v1210_v17  ;;  %v701_v36 = vmul.f32 0.035677407, %v445_v32  ;;  %v4018_v17 = vld [vmem:[%s3591_s30 + $0x1d8] sm:$0xff] }
  0x99   : > { %v1973_v37 = vadd.f32 1.0, %v2943_v57  ;;  %v2945_v0 = vpop.eup %2944  ;;  %v2228_v3 = vmul.f32 %v1972_v47, %v1460_v34  ;;  %2954 = vtanh.f32 %v1211_v35  ;;  %v1212_v4 = vmul.f32 %v956_v23, %v3943_v9 }
  0x9a   : > { %2483 = vst [vmem:[%s3663_s17 + $0x148] sm:$0xff] %v2227_v60  ;;  %v446_v42 = vmul.f32 %v3965_v31, %v3965_v31  ;;  %v1974_v62 = vadd.f32 1.0, %v2945_v0  ;;  %v1463_v8 = vmul.f32 0.5, %v3910_v48  ;;  %v957_v51 = vadd.f32 0.7978846, %v701_v36 }
  0x9b   : > { %v2229_v7 = vmul.f32 %v1973_v37, %v1461_v56  ;;  %2484 = vst [vmem:[%s3663_s17 + $0x150] sm:$0xff] %v2228_v3  ;;  %v1464_v58 = vmul.f32 0.5, %v3913_v61  ;;  %2956 = vtanh.f32 %v1212_v4  ;;  %v447_v13 = vmul.f32 %v3971_v63, %v3971_v63  ;;  %v4032_v4 = vld [vmem:[%s3591_s30 + $0x1e8] sm:$0xff] }
  0x9c   : > { %v702_v12 = vmul.f32 0.035677407, %v446_v42  ;;  %v2230_v6 = vmul.f32 %v1974_v62, %v1462_v52  ;;  %v1465_v19 = vmul.f32 0.5, %v3921_v59  ;;  %v1213_v48 = vmul.f32 %v957_v51, %v3956_v22  ;;  %v4027_v52 = vld [vmem:[%s3591_s30 + $0x1e0] sm:$0xff]  ;;  %v4037_v62 = vld [vmem:[%s3591_s30 + $0x1f0] sm:$0xff] }
  0x9d   : > { %2485 = vst [vmem:[%s3663_s17 + $0x158] sm:$0xff] %v2229_v7  ;;  %v448_v21 = vmul.f32 %v3978_v5, %v3978_v5  ;;  %v1466_v61 = vmul.f32 0.5, %v3930_v11  ;;  %v703_v29 = vmul.f32 0.035677407, %v447_v13  ;;  %v449_v30 = vmul.f32 %v3982_v10, %v3982_v10  ;;  %v4004_v11 = vld [vmem:[%s3591_s30 + $0x1c8] sm:$0xff] }
  0x9e   : > { %v2947_v27 = vpop.eup %2946  ;;  %v958_v40 = vadd.f32 0.7978846, %v702_v12  ;;  %2486 = vst [vmem:[%s3663_s17 + $0x160] sm:$0xff] %v2230_v6  ;;  %2958 = vtanh.f32 %v1213_v48  ;;  %v450_v59 = vmul.f32 %v3989_v39, %v3989_v39  ;;  %v1467_v45 = vmul.f32 0.5, %v3937_v18 }
  0x9f   : > { %v2949_v33 = vpop.eup %2948  ;;  %v1975_v41 = vadd.f32 1.0, %v2947_v27  ;;  %v704_v15 = vmul.f32 0.035677407, %v448_v21  ;;  %v959_v46 = vadd.f32 0.7978846, %v703_v29  ;;  %v451_v26 = vmul.f32 %v4004_v11, %v4004_v11 }
  0xa0   : > { %v1976_v34 = vadd.f32 1.0, %v2949_v33  ;;  %v1214_v38 = vmul.f32 %v958_v40, %v3965_v31  ;;  %v705_v14 = vmul.f32 0.035677407, %v449_v30  ;;  %v706_v25 = vmul.f32 0.035677407, %v450_v59  ;;  %v4051_v40 = vld [vmem:[%s3591_s30 + $0x1f8] sm:$0xff] }
  0xa1   : > { %v2951_v24 = vpop.eup %2950  ;;  %v2231_v1 = vmul.f32 %v1975_v41, %v1463_v8  ;;  %v960_v55 = vadd.f32 0.7978846, %v704_v15  ;;  %v1215_v50 = vmul.f32 %v959_v46, %v3971_v63  ;;  %v1468_v56 = vmul.f32 0.5, %v3943_v9 }
  0xa2   : > { %v2232_v49 = vmul.f32 %v1976_v34, %v1464_v58  ;;  %v1977_v2 = vadd.f32 1.0, %v2951_v24  ;;  %2960 = vtanh.f32 %v1214_v38  ;;  %v2953_v44 = vpop.eup %2952  ;;  %v961_v28 = vadd.f32 0.7978846, %v705_v14 }
  0xa3   : > { %2487 = vst [vmem:[%s3663_s17 + $0x168] sm:$0xff] %v2231_v1  ;;  %v1216_v53 = vmul.f32 %v960_v55, %v3978_v5  ;;  %v962_v16 = vadd.f32 0.7978846, %v706_v25  ;;  %v2955_v18 = vpop.eup %2954  ;;  %v1978_v54 = vadd.f32 1.0, %v2953_v44  ;;  %2962 = vtanh.f32 %v1215_v50  ;;  %v4060_v1 = vld [vmem:[%s3591_s30 + $0x200] sm:$0xff] }
  0xa4   : > { %2488 = vst [vmem:[%s3663_s17 + $0x170] sm:$0xff] %v2232_v49  ;;  %v2233_v43 = vmul.f32 %v1977_v2, %v1465_v19  ;;  %v1979_v32 = vadd.f32 1.0, %v2955_v18  ;;  %v1217_v57 = vmul.f32 %v961_v28, %v3982_v10  ;;  %v1469_v23 = vmul.f32 0.5, %v3956_v22  ;;  %v4069_v18 = vld [vmem:[%s3591_s30 + $0x208] sm:$0xff] }
  0xa5   : > { %2964 = vtanh.f32 %v1216_v53  ;;  %v1218_v60 = vmul.f32 %v962_v16, %v3989_v39  ;;  %v2957_v47 = vpop.eup %2956  ;;  %v2234_v35 = vmul.f32 %v1978_v54, %v1466_v61  ;;  %v707_v37 = vmul.f32 0.035677407, %v451_v26 }
  0xa6   : > { %2489 = vst [vmem:[%s3663_s17 + $0x178] sm:$0xff] %v2233_v43  ;;  %v452_v9 = vmul.f32 %v4013_v20, %v4013_v20  ;;  %v2235_v36 = vmul.f32 %v1979_v32, %v1467_v45  ;;  %v1980_v0 = vadd.f32 1.0, %v2957_v47  ;;  %2966 = vtanh.f32 %v1217_v57  ;;  %v4073_v57 = vld [vmem:[%s3591_s30 + $0x210] sm:$0xff] }
  0xa7   : > { %v453_v3 = vmul.f32 %v4018_v17, %v4018_v17  ;;  %2490 = vst [vmem:[%s3663_s17 + $0x180] sm:$0xff] %v2234_v35  ;;  %v1470_v42 = vmul.f32 0.5, %v3965_v31  ;;  %2968 = vtanh.f32 %v1218_v60  ;;  %v963_v22 = vadd.f32 0.7978846, %v707_v37  ;;  %v4076_v60 = vld [vmem:[%s3591_s30 + $0x218] sm:$0xff] }
  0xa8   : > { %v708_v7 = vmul.f32 0.035677407, %v452_v9  ;;  %v2959_v8 = vpop.eup %2958  ;;  %2491 = vst [vmem:[%s3663_s17 + $0x188] sm:$0xff] %v2235_v36  ;;  %v2236_v51 = vmul.f32 %v1980_v0, %v1468_v56  ;;  %v1471_v58 = vmul.f32 0.5, %v3971_v63  ;;  %v454_v13 = vmul.f32 %v4027_v52, %v4027_v52 }
  0xa9   : > { %v709_v12 = vmul.f32 0.035677407, %v453_v3  ;;  %v1981_v6 = vadd.f32 1.0, %v2959_v8  ;;  %v1219_v19 = vmul.f32 %v963_v22, %v4004_v11  ;;  %v455_v31 = vmul.f32 %v4032_v4, %v4032_v4 }
  0xaa   : > { %v964_v48 = vadd.f32 0.7978846, %v708_v7  ;;  %2492 = vst [vmem:[%s3663_s17 + $0x190] sm:$0xff] %v2236_v51  ;;  %v1472_v21 = vmul.f32 0.5, %v3978_v5  ;;  %v710_v61 = vmul.f32 0.035677407, %v454_v13  ;;  %v456_v63 = vmul.f32 %v4037_v62, %v4037_v62 }
  0xab   : > { %v965_v27 = vadd.f32 0.7978846, %v709_v12  ;;  %v2237_v30 = vmul.f32 %v1981_v6, %v1469_v23  ;;  %2970 = vtanh.f32 %v1219_v19  ;;  %v711_v41 = vmul.f32 0.035677407, %v455_v31  ;;  %v4088_v7 = vld [vmem:[%s3591_s30 + $0x220] sm:$0xff] }
  0xac   : > { %v2961_v29 = vpop.eup %2960  ;;  %v1220_v33 = vmul.f32 %v964_v48, %v4013_v20  ;;  %v966_v34 = vadd.f32 0.7978846, %v710_v61  ;;  %v712_v38 = vmul.f32 0.035677407, %v456_v63  ;;  %v1473_v46 = vmul.f32 0.5, %v3982_v10 }
  0xad   : > { %v1982_v15 = vadd.f32 1.0, %v2961_v29  ;;  %v1221_v59 = vmul.f32 %v965_v27, %v4018_v17  ;;  %v2963_v5 = vpop.eup %2962  ;;  %2493 = vst [vmem:[%s3663_s17 + $0x198] sm:$0xff] %v2237_v30  ;;  %v967_v14 = vadd.f32 0.7978846, %v711_v41  ;;  %v457_v24 = vmul.f32 %v4051_v40, %v4051_v40 }
  0xae   : > { %2972 = vtanh.f32 %v1220_v33  ;;  %v1983_v25 = vadd.f32 1.0, %v2963_v5  ;;  %v1222_v49 = vmul.f32 %v966_v34, %v4027_v52  ;;  %v968_v10 = vadd.f32 0.7978846, %v712_v38 }
  0xaf   : > { %v2965_v45 = vpop.eup %2964  ;;  %v2238_v55 = vmul.f32 %v1982_v15, %v1470_v42  ;;  %2974 = vtanh.f32 %v1221_v59  ;;  %v1223_v50 = vmul.f32 %v967_v14, %v4032_v4  ;;  %v713_v44 = vmul.f32 0.035677407, %v457_v24 }
  0xb0   : > { %v1984_v2 = vadd.f32 1.0, %v2965_v45  ;;  %v2967_v53 = vpop.eup %2966  ;;  %v2239_v28 = vmul.f32 %v1983_v25, %v1471_v58  ;;  %v1474_v16 = vmul.f32 0.5, %v3989_v39  ;;  %2976 = vtanh.f32 %v1222_v49  ;;  %v4114_v25 = vld [vmem:[%s3591_s30 + $0x238] sm:$0xff] }
  0xb1   : > { %2494 = vst [vmem:[%s3663_s17 + $0x1a0] sm:$0xff] %v2238_v55  ;;  %v458_v26 = vmul.f32 %v4060_v1, %v4060_v1  ;;  %v2969_v43 = vpop.eup %2968  ;;  %v1985_v56 = vadd.f32 1.0, %v2967_v53  ;;  %2978 = vtanh.f32 %v1223_v50  ;;  %v1224_v32 = vmul.f32 %v968_v10, %v4037_v62  ;;  %v4118_v50 = vld [vmem:[%s3591_s30 + $0x240] sm:$0xff] }
  0xb2   : > { %v2240_v54 = vmul.f32 %v1984_v2, %v1472_v21  ;;  %2495 = vst [vmem:[%s3663_s17 + $0x1a8] sm:$0xff] %v2239_v28  ;;  %v1986_v39 = vadd.f32 1.0, %v2969_v43  ;;  %v1475_v47 = vmul.f32 0.5, %v4004_v11  ;;  %v969_v35 = vadd.f32 0.7978846, %v713_v44 }
  0xb3   : > { %v714_v23 = vmul.f32 0.035677407, %v458_v26  ;;  %v2241_v37 = vmul.f32 %v1985_v56, %v1473_v46  ;;  %v1476_v9 = vmul.f32 0.5, %v4013_v20  ;;  %2980 = vtanh.f32 %v1224_v32  ;;  %v4110_v46 = vld [vmem:[%s3591_s30 + $0x230] sm:$0xff]  ;;  %v4126_v56 = vld [vmem:[%s3591_s30 + $0x248] sm:$0xff] }
  0xb4   : > { %2496 = vst [vmem:[%s3663_s17 + $0x1b0] sm:$0xff] %v2240_v54  ;;  %v459_v36 = vmul.f32 %v4069_v18, %v4069_v18  ;;  %v2242_v0 = vmul.f32 %v1986_v39, %v1474_v16  ;;  %v1225_v3 = vmul.f32 %v969_v35, %v4051_v40  ;;  %v460_v22 = vmul.f32 %v4073_v57, %v4073_v57  ;;  %v4135_v35 = vld [vmem:[%s3591_s30 + $0x250] sm:$0xff] }
  0xb5   : > { %v970_v42 = vadd.f32 0.7978846, %v714_v23  ;;  %v2971_v11 = vpop.eup %2970  ;;  %2497 = vst [vmem:[%s3663_s17 + $0x1b8] sm:$0xff] %v2241_v37  ;;  %v1477_v8 = vmul.f32 0.5, %v4018_v17  ;;  %v1478_v20 = vmul.f32 0.5, %v4027_v52  ;;  %v461_v58 = vmul.f32 %v4076_v60, %v4076_v60  ;;  %v4101_v52 = vld [vmem:[%s3591_s30 + $0x228] sm:$0xff] }
  0xb6   : > { %v715_v51 = vmul.f32 0.035677407, %v459_v36  ;;  %2498 = vst [vmem:[%s3663_s17 + $0x1c0] sm:$0xff] %v2242_v0  ;;  %v1987_v12 = vadd.f32 1.0, %v2971_v11  ;;  %2982 = vtanh.f32 %v1225_v3  ;;  %v716_v6 = vmul.f32 0.035677407, %v460_v22 }
  0xb7   : > { %v1226_v13 = vmul.f32 %v970_v42, %v4060_v1  ;;  %v1479_v48 = vmul.f32 0.5, %v4032_v4  ;;  %v717_v21 = vmul.f32 0.035677407, %v461_v58  ;;  %v462_v17 = vmul.f32 %v4088_v7, %v4088_v7  ;;  %v4143_v22 = vld [vmem:[%s3591_s30 + $0x258] sm:$0xff] }
  0xb8   : > { %v2973_v19 = vpop.eup %2972  ;;  %v971_v31 = vadd.f32 0.7978846, %v715_v51  ;;  %v2243_v61 = vmul.f32 %v1987_v12, %v1475_v47  ;;  %v972_v29 = vadd.f32 0.7978846, %v716_v6  ;;  %v1480_v34 = vmul.f32 0.5, %v4037_v62 }
  0xb9   : > { %v2975_v27 = vpop.eup %2974  ;;  %v1988_v63 = vadd.f32 1.0, %v2973_v19  ;;  %2984 = vtanh.f32 %v1226_v13  ;;  %v973_v41 = vadd.f32 0.7978846, %v717_v21  ;;  %v718_v4 = vmul.f32 0.035677407, %v462_v17 }
  0xba   : > { %v1989_v30 = vadd.f32 1.0, %v2975_v27  ;;  %v1227_v33 = vmul.f32 %v971_v31, %v4069_v18  ;;  %v2977_v15 = vpop.eup %2976  ;;  %2499 = vst [vmem:[%s3663_s17 + $0x1c8] sm:$0xff] %v2243_v61  ;;  %v1228_v38 = vmul.f32 %v972_v29, %v4073_v57  ;;  %v463_v5 = vmul.f32 %v4101_v52, %v4101_v52 }
  0xbb   : > { %v2244_v59 = vmul.f32 %v1988_v63, %v1476_v9  ;;  %v2979_v14 = vpop.eup %2978  ;;  %v1990_v45 = vadd.f32 1.0, %v2977_v15  ;;  %v1229_v55 = vmul.f32 %v973_v41, %v4076_v60  ;;  %v974_v62 = vadd.f32 0.7978846, %v718_v4  ;;  %v4157_v41 = vld [vmem:[%s3591_s30 + $0x260] sm:$0xff] }
  0xbc   : > { %v2245_v24 = vmul.f32 %v1989_v30, %v1477_v8  ;;  %2986 = vtanh.f32 %v1227_v33  ;;  %v1991_v49 = vadd.f32 1.0, %v2979_v14  ;;  %v719_v2 = vmul.f32 0.035677407, %v463_v5 }
  0xbd   : > { %2500 = vst [vmem:[%s3663_s17 + $0x1d0] sm:$0xff] %v2244_v59  ;;  %2988 = vtanh.f32 %v1228_v38  ;;  %v2981_v10 = vpop.eup %2980  ;;  %v2246_v44 = vmul.f32 %v1990_v45, %v1478_v20  ;;  %v1481_v53 = vmul.f32 0.5, %v4051_v40  ;;  %v464_v28 = vmul.f32 %v4110_v46, %v4110_v46 }
  0xbe   : > { %2501 = vst [vmem:[%s3663_s17 + $0x1d8] sm:$0xff] %v2245_v24  ;;  %2990 = vtanh.f32 %v1229_v55  ;;  %v2247_v16 = vmul.f32 %v1991_v49, %v1479_v48  ;;  %v1992_v26 = vadd.f32 1.0, %v2981_v10  ;;  %v1230_v43 = vmul.f32 %v974_v62, %v4088_v7 }
  0xbf   : > { %v975_v54 = vadd.f32 0.7978846, %v719_v2  ;;  %2502 = vst [vmem:[%s3663_s17 + $0x1e0] sm:$0xff] %v2246_v44  ;;  %v1482_v32 = vmul.f32 0.5, %v4060_v1  ;;  %v720_v39 = vmul.f32 0.035677407, %v464_v28  ;;  %v465_v40 = vmul.f32 %v4114_v25, %v4114_v25 }
  0xc0   : > { %v466_v47 = vmul.f32 %v4118_v50, %v4118_v50  ;;  %v2983_v23 = vpop.eup %2982  ;;  %2503 = vst [vmem:[%s3663_s17 + $0x1e8] sm:$0xff] %v2247_v16  ;;  %v2248_v37 = vmul.f32 %v1992_v26, %v1480_v34  ;;  %v1483_v9 = vmul.f32 0.5, %v4069_v18  ;;  %2992 = vtanh.f32 %v1230_v43  ;;  %v4162_v34 = vld [vmem:[%s3591_s30 + $0x268] sm:$0xff]  ;;  %v4178_v26 = vld [vmem:[%s3591_s30 + $0x278] sm:$0xff] }
  0xc1   : > { %v1231_v36 = vmul.f32 %v975_v54, %v4101_v52  ;;  %v1993_v0 = vadd.f32 1.0, %v2983_v23  ;;  %v976_v1 = vadd.f32 0.7978846, %v720_v39  ;;  %v721_v3 = vmul.f32 0.035677407, %v465_v40  ;;  %v4186_v40 = vld [vmem:[%s3591_s30 + $0x280] sm:$0xff] }
  0xc2   : > { %v467_v42 = vmul.f32 %v4126_v56, %v4126_v56  ;;  %2504 = vst [vmem:[%s3663_s17 + $0x1f0] sm:$0xff] %v2248_v37  ;;  %v1484_v8 = vmul.f32 0.5, %v4073_v57  ;;  %v722_v20 = vmul.f32 0.035677407, %v466_v47  ;;  %v468_v18 = vmul.f32 %v4135_v35, %v4135_v35 }
  0xc3   : > { %v2985_v11 = vpop.eup %2984  ;;  %2994 = vtanh.f32 %v1231_v36  ;;  %v2249_v51 = vmul.f32 %v1993_v0, %v1481_v53  ;;  %v1232_v12 = vmul.f32 %v976_v1, %v4110_v46  ;;  %v977_v13 = vadd.f32 0.7978846, %v721_v3 }
  0xc4   : > { %v1994_v58 = vadd.f32 1.0, %v2985_v11  ;;  %v978_v6 = vadd.f32 0.7978846, %v722_v20  ;;  %v723_v19 = vmul.f32 0.035677407, %v467_v42  ;;  %v469_v31 = vmul.f32 %v4143_v22, %v4143_v22 }
  0xc5   : > { %v724_v48 = vmul.f32 0.035677407, %v468_v18  ;;  %2505 = vst [vmem:[%s3663_s17 + $0x1f8] sm:$0xff] %v2249_v51  ;;  %v1485_v17 = vmul.f32 0.5, %v4076_v60  ;;  %2996 = vtanh.f32 %v1232_v12  ;;  %v1233_v27 = vmul.f32 %v977_v13, %v4114_v25 }
  0xc6   : > { %v2987_v21 = vpop.eup %2986  ;;  %v2250_v57 = vmul.f32 %v1994_v58, %v1482_v32  ;;  %v1234_v29 = vmul.f32 %v978_v6, %v4118_v50  ;;  %v979_v30 = vadd.f32 0.7978846, %v723_v19  ;;  %v1486_v59 = vmul.f32 0.5, %v4088_v7  ;;  %v4169_v7 = vld [vmem:[%s3591_s30 + $0x270] sm:$0xff] }
  0xc7   : > { %v2989_v61 = vpop.eup %2988  ;;  %v1995_v63 = vadd.f32 1.0, %v2987_v21  ;;  %v980_v33 = vadd.f32 0.7978846, %v724_v48  ;;  %2998 = vtanh.f32 %v1233_v27  ;;  %v725_v60 = vmul.f32 0.035677407, %v469_v31  ;;  %v4201_v58 = vld [vmem:[%s3591_s30 + $0x290] sm:$0xff] }
  0xc8   : > { %v2991_v4 = vpop.eup %2990  ;;  %2506 = vst [vmem:[%s3663_s17 + $0x200] sm:$0xff] %v2250_v57  ;;  %v1996_v15 = vadd.f32 1.0, %v2989_v61  ;;  %3000 = vtanh.f32 %v1234_v29  ;;  %v1235_v14 = vmul.f32 %v979_v30, %v4126_v56  ;;  %v470_v49 = vmul.f32 %v4157_v41, %v4157_v41 }
  0xc9   : > { %v2251_v38 = vmul.f32 %v1995_v63, %v1483_v9  ;;  %v1997_v5 = vadd.f32 1.0, %v2991_v4  ;;  %v1236_v45 = vmul.f32 %v980_v33, %v4135_v35  ;;  %v981_v55 = vadd.f32 0.7978846, %v725_v60  ;;  %v4216_v4 = vld [vmem:[%s3591_s30 + $0x2a0] sm:$0xff] }
  0xca   : > { %v2252_v24 = vmul.f32 %v1996_v15, %v1484_v8  ;;  %v2993_v62 = vpop.eup %2992  ;;  %v1487_v10 = vmul.f32 0.5, %v4101_v52  ;;  %3002 = vtanh.f32 %v1235_v14  ;;  %v471_v44 = vmul.f32 %v4162_v34, %v4162_v34 }
  0xcb   : > { %2507 = vst [vmem:[%s3663_s17 + $0x208] sm:$0xff] %v2251_v38  ;;  %v2253_v2 = vmul.f32 %v1997_v5, %v1485_v17  ;;  %v1998_v53 = vadd.f32 1.0, %v2993_v62  ;;  %3004 = vtanh.f32 %v1236_v45  ;;  %v1237_v28 = vmul.f32 %v981_v55, %v4143_v22  ;;  %v4224_v55 = vld [vmem:[%s3591_s30 + $0x2a8] sm:$0xff] }
  0xcc   : > { %2508 = vst [vmem:[%s3663_s17 + $0x210] sm:$0xff] %v2252_v24  ;;  %v726_v16 = vmul.f32 0.035677407, %v470_v49  ;;  %v1488_v54 = vmul.f32 0.5, %v4110_v46  ;;  %v1489_v52 = vmul.f32 0.5, %v4114_v25  ;;  %v472_v39 = vmul.f32 %v4169_v7, %v4169_v7  ;;  %v4192_v25 = vld [vmem:[%s3591_s30 + $0x288] sm:$0xff] }
  0xcd   : > { %v2995_v43 = vpop.eup %2994  ;;  %2509 = vst [vmem:[%s3663_s17 + $0x218] sm:$0xff] %v2253_v2  ;;  %v727_v32 = vmul.f32 0.035677407, %v471_v44  ;;  %v2254_v47 = vmul.f32 %v1998_v53, %v1486_v59  ;;  %3006 = vtanh.f32 %v1237_v28  ;;  %v1490_v9 = vmul.f32 0.5, %v4118_v50 }
  0xce   : > { %v1999_v23 = vadd.f32 1.0, %v2995_v43  ;;  %v982_v37 = vadd.f32 0.7978846, %v726_v16  ;;  %v728_v0 = vmul.f32 0.035677407, %v472_v39  ;;  %v473_v46 = vmul.f32 %v4178_v26, %v4178_v26  ;;  %v4232_v16 = vld [vmem:[%s3591_s30 + $0x2b0] sm:$0xff] }
  0xcf   : > { %v983_v36 = vadd.f32 0.7978846, %v727_v32  ;;  %v2997_v1 = vpop.eup %2996  ;;  %2510 = vst [vmem:[%s3663_s17 + $0x220] sm:$0xff] %v2254_v47  ;;  %v1491_v42 = vmul.f32 0.5, %v4126_v56  ;;  %v474_v8 = vmul.f32 %v4186_v40, %v4186_v40  ;;  %v1492_v13 = vmul.f32 0.5, %v4135_v35  ;;  %v4211_v35 = vld [vmem:[%s3591_s30 + $0x298] sm:$0xff] }
  0xd0   : > { %v2255_v3 = vmul.f32 %v1999_v23, %v1487_v10  ;;  %v1238_v11 = vmul.f32 %v982_v37, %v4157_v41  ;;  %v2000_v20 = vadd.f32 1.0, %v2997_v1  ;;  %v984_v18 = vadd.f32 0.7978846, %v728_v0  ;;  %v4235_v43 = vld [vmem:[%s3591_s30 + $0x2b8] sm:$0xff] }
  0xd1   : > { %v1239_v50 = vmul.f32 %v983_v36, %v4162_v34  ;;  %v729_v51 = vmul.f32 0.035677407, %v473_v46  ;;  %v2999_v12 = vpop.eup %2998  ;;  %v730_v56 = vmul.f32 0.035677407, %v474_v8  ;;  %v475_v6 = vmul.f32 %v4192_v25, %v4192_v25 }
  0xd2   : > { %2511 = vst [vmem:[%s3663_s17 + $0x228] sm:$0xff] %v2255_v3  ;;  %3008 = vtanh.f32 %v1238_v11  ;;  %v3001_v19 = vpop.eup %3000  ;;  %v2256_v48 = vmul.f32 %v2000_v20, %v1488_v54  ;;  %v2001_v31 = vadd.f32 1.0, %v2999_v12  ;;  %v1240_v21 = vmul.f32 %v984_v18, %v4169_v7  ;;  %v4256_v18 = vld [vmem:[%s3591_s30 + $0x2c8] sm:$0xff] }
  0xd3   : > { %3010 = vtanh.f32 %v1239_v50  ;;  %v2002_v57 = vadd.f32 1.0, %v3001_v19  ;;  %v985_v17 = vadd.f32 0.7978846, %v729_v51  ;;  %v986_v27 = vadd.f32 0.7978846, %v730_v56  ;;  %v4253_v50 = vld [vmem:[%s3591_s30 + $0x2c0] sm:$0xff] }
  0xd4   : > { %v476_v61 = vmul.f32 %v4201_v58, %v4201_v58  ;;  %v3003_v63 = vpop.eup %3002  ;;  %2512 = vst [vmem:[%s3663_s17 + $0x230] sm:$0xff] %v2256_v48  ;;  %v2257_v29 = vmul.f32 %v2001_v31, %v1489_v52  ;;  %v1493_v30 = vmul.f32 0.5, %v4143_v22  ;;  %3012 = vtanh.f32 %v1240_v21 }
  0xd5   : > { %v731_v33 = vmul.f32 0.035677407, %v475_v6  ;;  %v3005_v15 = vpop.eup %3004  ;;  %v2258_v59 = vmul.f32 %v2002_v57, %v1490_v9  ;;  %v2003_v60 = vadd.f32 1.0, %v3003_v63  ;;  %v1241_v38 = vmul.f32 %v985_v17, %v4178_v26 }
  0xd6   : > { %v1242_v5 = vmul.f32 %v986_v27, %v4186_v40  ;;  %2513 = vst [vmem:[%s3663_s17 + $0x238] sm:$0xff] %v2257_v29  ;;  %v2004_v14 = vadd.f32 1.0, %v3005_v15  ;;  %v732_v45 = vmul.f32 0.035677407, %v476_v61  ;;  %v477_v22 = vmul.f32 %v4211_v35, %v4211_v35  ;;  %v4268_v29 = vld [vmem:[%s3591_s30 + $0x2d0] sm:$0xff] }
  0xd7   : > { %v987_v24 = vadd.f32 0.7978846, %v731_v33  ;;  %v3007_v49 = vpop.eup %3006  ;;  %2514 = vst [vmem:[%s3663_s17 + $0x240] sm:$0xff] %v2258_v59  ;;  %v2259_v62 = vmul.f32 %v2003_v60, %v1491_v42  ;;  %v1494_v2 = vmul.f32 0.5, %v4157_v41  ;;  %3014 = vtanh.f32 %v1241_v38  ;;  %v4273_v60 = vld [vmem:[%s3591_s30 + $0x2d8] sm:$0xff] }
  0xd8   : > { %v478_v10 = vmul.f32 %v4216_v4, %v4216_v4  ;;  %v2260_v44 = vmul.f32 %v2004_v14, %v1492_v13  ;;  %v2005_v53 = vadd.f32 1.0, %v3007_v49  ;;  %3016 = vtanh.f32 %v1242_v5 }
  0xd9   : > { %v1243_v28 = vmul.f32 %v987_v24, %v4192_v25  ;;  %2515 = vst [vmem:[%s3663_s17 + $0x248] sm:$0xff] %v2259_v62  ;;  %v988_v54 = vadd.f32 0.7978846, %v732_v45  ;;  %v733_v52 = vmul.f32 0.035677407, %v477_v22  ;;  %v479_v41 = vmul.f32 %v4224_v55, %v4224_v55  ;;  %v4281_v62 = vld [vmem:[%s3591_s30 + $0x2e0] sm:$0xff] }
  0xda   : > { %v734_v32 = vmul.f32 0.035677407, %v478_v10  ;;  %2516 = vst [vmem:[%s3663_s17 + $0x250] sm:$0xff] %v2260_v44  ;;  %v2261_v39 = vmul.f32 %v2005_v53, %v1493_v30  ;;  %v1495_v47 = vmul.f32 0.5, %v4162_v34  ;;  %v1496_v23 = vmul.f32 0.5, %v4169_v7 }
  0xdb   : > { %3018 = vtanh.f32 %v1243_v28  ;;  %v1244_v9 = vmul.f32 %v988_v54, %v4201_v58  ;;  %v989_v36 = vadd.f32 0.7978846, %v733_v52  ;;  %v735_v46 = vmul.f32 0.035677407, %v479_v41  ;;  %v4288_v54 = vld [vmem:[%s3591_s30 + $0x2e8] sm:$0xff] }
  0xdc   : > { %v3009_v37 = vpop.eup %3008  ;;  %v990_v0 = vadd.f32 0.7978846, %v734_v32  ;;  %2517 = vst [vmem:[%s3663_s17 + $0x258] sm:$0xff] %v2261_v39  ;;  %v1497_v42 = vmul.f32 0.5, %v4178_v26  ;;  %v480_v11 = vmul.f32 %v4232_v16, %v4232_v16  ;;  %v481_v34 = vmul.f32 %v4235_v43, %v4235_v43 }
  0xdd   : > { %v3011_v1 = vpop.eup %3010  ;;  %v2006_v3 = vadd.f32 1.0, %v3009_v37  ;;  %3020 = vtanh.f32 %v1244_v9  ;;  %v1245_v8 = vmul.f32 %v989_v36, %v4211_v35  ;;  %v991_v12 = vadd.f32 0.7978846, %v735_v46  ;;  %v4297_v36 = vld [vmem:[%s3591_s30 + $0x2f0] sm:$0xff] }
  0xde   : > { %v2007_v7 = vadd.f32 1.0, %v3011_v1  ;;  %v1246_v20 = vmul.f32 %v990_v0, %v4216_v4  ;;  %v3013_v51 = vpop.eup %3012  ;;  %v736_v13 = vmul.f32 0.035677407, %v480_v11  ;;  %v737_v56 = vmul.f32 0.035677407, %v481_v34 }
  0xdf   : > { %v2262_v26 = vmul.f32 %v2006_v3, %v1494_v2  ;;  %v2008_v19 = vadd.f32 1.0, %v3013_v51  ;;  %v1498_v48 = vmul.f32 0.5, %v4186_v40  ;;  %3022 = vtanh.f32 %v1245_v8 }
  0xe0   : > { %v2263_v6 = vmul.f32 %v2007_v7, %v1495_v47  ;;  %3024 = vtanh.f32 %v1246_v20  ;;  %v1247_v31 = vmul.f32 %v991_v12, %v4224_v55  ;;  %v992_v21 = vadd.f32 0.7978846, %v736_v13 }
  0xe1   : > { %2518 = vst [vmem:[%s3663_s17 + $0x260] sm:$0xff] %v2262_v26  ;;  %v993_v57 = vadd.f32 0.7978846, %v737_v56  ;;  %v3015_v17 = vpop.eup %3014  ;;  %v2264_v27 = vmul.f32 %v2008_v19, %v1496_v23  ;;  %v1499_v61 = vmul.f32 0.5, %v4192_v25  ;;  %v482_v63 = vmul.f32 %v4253_v50, %v4253_v50 }
  0xe2   : > { %2519 = vst [vmem:[%s3663_s17 + $0x268] sm:$0xff] %v2263_v6  ;;  %v483_v40 = vmul.f32 %v4256_v18, %v4256_v18  ;;  %v3017_v30 = vpop.eup %3016  ;;  %v2009_v33 = vadd.f32 1.0, %v3015_v17  ;;  %3026 = vtanh.f32 %v1247_v31  ;;  %v1248_v15 = vmul.f32 %v992_v21, %v4232_v16  ;;  %v4312_v6 = vld [vmem:[%s3591_s30 + $0x300] sm:$0xff] }
  0xe3   : > { %v1249_v59 = vmul.f32 %v993_v57, %v4235_v43  ;;  %2520 = vst [vmem:[%s3663_s17 + $0x270] sm:$0xff] %v2264_v27  ;;  %v2010_v25 = vadd.f32 1.0, %v3017_v30  ;;  %v1500_v38 = vmul.f32 0.5, %v4201_v58  ;;  %v738_v5 = vmul.f32 0.035677407, %v482_v63 }
  0xe4   : > { %v739_v14 = vmul.f32 0.035677407, %v483_v40  ;;  %v2265_v45 = vmul.f32 %v2009_v33, %v1497_v42  ;;  %v1501_v22 = vmul.f32 0.5, %v4211_v35  ;;  %3028 = vtanh.f32 %v1248_v15  ;;  %v4324_v15 = vld [vmem:[%s3591_s30 + $0x308] sm:$0xff] }
  0xe5   : > { %v3019_v24 = vpop.eup %3018  ;;  %v484_v49 = vmul.f32 %v4268_v29, %v4268_v29  ;;  %v2266_v2 = vmul.f32 %v2010_v25, %v1498_v48  ;;  %3030 = vtanh.f32 %v1249_v59  ;;  %v994_v44 = vadd.f32 0.7978846, %v738_v5 }
  0xe6   : > { %v2011_v10 = vadd.f32 1.0, %v3019_v24  ;;  %2521 = vst [vmem:[%s3663_s17 + $0x278] sm:$0xff] %v2265_v45  ;;  %v1502_v58 = vmul.f32 0.5, %v4216_v4  ;;  %v995_v53 = vadd.f32 0.7978846, %v739_v14  ;;  %v485_v35 = vmul.f32 %v4273_v60, %v4273_v60 }
  0xe7   : > { %v740_v28 = vmul.f32 0.035677407, %v484_v49  ;;  %v3021_v52 = vpop.eup %3020  ;;  %2522 = vst [vmem:[%s3663_s17 + $0x280] sm:$0xff] %v2266_v2  ;;  %v1503_v41 = vmul.f32 0.5, %v4224_v55  ;;  %v1250_v39 = vmul.f32 %v994_v44, %v4253_v50  ;;  %v486_v47 = vmul.f32 %v4281_v62, %v4281_v62 }
  0xe8   : > { %v2267_v32 = vmul.f32 %v2011_v10, %v1499_v61  ;;  %v2012_v23 = vadd.f32 1.0, %v3021_v52  ;;  %v1251_v4 = vmul.f32 %v995_v53, %v4256_v18  ;;  %v741_v9 = vmul.f32 0.035677407, %v485_v35 }
  0xe9   : > { %v996_v37 = vadd.f32 0.7978846, %v740_v28  ;;  %v3023_v0 = vpop.eup %3022  ;;  %v1504_v46 = vmul.f32 0.5, %v4232_v16  ;;  %3032 = vtanh.f32 %v1250_v39  ;;  %v742_v55 = vmul.f32 0.035677407, %v486_v47  ;;  %v4307_v16 = vld [vmem:[%s3591_s30 + $0x2f8] sm:$0xff] }
  0xea   : > { %2523 = vst [vmem:[%s3663_s17 + $0x288] sm:$0xff] %v2267_v32  ;;  %v487_v1 = vmul.f32 %v4288_v54, %v4288_v54  ;;  %v3025_v3 = vpop.eup %3024  ;;  %v2268_v42 = vmul.f32 %v2012_v23, %v1500_v38  ;;  %v2013_v11 = vadd.f32 1.0, %v3023_v0  ;;  %3034 = vtanh.f32 %v1251_v4  ;;  %v4328_v38 = vld [vmem:[%s3591_s30 + $0x310] sm:$0xff]  ;;  %v4347_v4 = vld [vmem:[%s3591_s30 + $0x320] sm:$0xff] }
  0xeb   : > { %v1252_v34 = vmul.f32 %v996_v37, %v4268_v29  ;;  %v2014_v7 = vadd.f32 1.0, %v3025_v3  ;;  %v997_v8 = vadd.f32 0.7978846, %v741_v9  ;;  %v998_v20 = vadd.f32 0.7978846, %v742_v55  ;;  %v4353_v55 = vld [vmem:[%s3591_s30 + $0x328] sm:$0xff] }
  0xec   : > { %v488_v51 = vmul.f32 %v4297_v36, %v4297_v36  ;;  %v3027_v26 = vpop.eup %3026  ;;  %2524 = vst [vmem:[%s3663_s17 + $0x290] sm:$0xff] %v2268_v42  ;;  %v2269_v12 = vmul.f32 %v2013_v11, %v1501_v22  ;;  %v1505_v13 = vmul.f32 0.5, %v4235_v43  ;;  %v743_v56 = vmul.f32 0.035677407, %v487_v1 }
  0xed   : > { %3036 = vtanh.f32 %v1252_v34  ;;  %v2270_v19 = vmul.f32 %v2014_v7, %v1502_v58  ;;  %v2015_v48 = vadd.f32 1.0, %v3027_v26  ;;  %v1253_v31 = vmul.f32 %v997_v8, %v4273_v60 }
  0xee   : > { %v1254_v21 = vmul.f32 %v998_v20, %v4281_v62  ;;  %v3029_v57 = vpop.eup %3028  ;;  %2525 = vst [vmem:[%s3663_s17 + $0x298] sm:$0xff] %v2269_v12  ;;  %v1506_v17 = vmul.f32 0.5, %v4253_v50  ;;  %v999_v27 = vadd.f32 0.7978846, %v743_v56  ;;  %v744_v61 = vmul.f32 0.035677407, %v488_v51 }
  0xef   : > { %v489_v43 = vmul.f32 %v4307_v16, %v4307_v16  ;;  %v3031_v63 = vpop.eup %3030  ;;  %2526 = vst [vmem:[%s3663_s17 + $0x2a0] sm:$0xff] %v2270_v19  ;;  %v2271_v40 = vmul.f32 %v2015_v48, %v1503_v41  ;;  %v2016_v30 = vadd.f32 1.0, %v3029_v57  ;;  %3038 = vtanh.f32 %v1253_v31  ;;  %v4365_v12 = vld [vmem:[%s3591_s30 + $0x330] sm:$0xff]  ;;  %v4370_v57 = vld [vmem:[%s3591_s30 + $0x338] sm:$0xff] }
  0xf0   : > { %v490_v33 = vmul.f32 %v4312_v6, %v4312_v6  ;;  %v2017_v59 = vadd.f32 1.0, %v3031_v63  ;;  %3040 = vtanh.f32 %v1254_v21  ;;  %v1255_v50 = vmul.f32 %v999_v27, %v4288_v54 }
  0xf1   : > { %v1000_v25 = vadd.f32 0.7978846, %v744_v61  ;;  %2527 = vst [vmem:[%s3663_s17 + $0x2a8] sm:$0xff] %v2271_v40  ;;  %v2272_v5 = vmul.f32 %v2016_v30, %v1504_v46  ;;  %v1507_v14 = vmul.f32 0.5, %v4256_v18  ;;  %v745_v24 = vmul.f32 0.035677407, %v489_v43 }
  0xf2   : > { %v746_v45 = vmul.f32 0.035677407, %v490_v33  ;;  %v2273_v22 = vmul.f32 %v2017_v59, %v1505_v13  ;;  %3042 = vtanh.f32 %v1255_v50  ;;  %v491_v2 = vmul.f32 %v4324_v15, %v4324_v15  ;;  %v4340_v18 = vld [vmem:[%s3591_s30 + $0x318] sm:$0xff] }
  0xf3   : > { %v1256_v49 = vmul.f32 %v1000_v25, %v4297_v36  ;;  %v3033_v10 = vpop.eup %3032  ;;  %2528 = vst [vmem:[%s3663_s17 + $0x2b0] sm:$0xff] %v2272_v5  ;;  %v1508_v44 = vmul.f32 0.5, %v4268_v29  ;;  %v1001_v58 = vadd.f32 0.7978846, %v745_v24  ;;  %v492_v28 = vmul.f32 %v4328_v38, %v4328_v38  ;;  %v4384_v24 = vld [vmem:[%s3591_s30 + $0x348] sm:$0xff] }
  0xf4   : > { %v1002_v53 = vadd.f32 0.7978846, %v746_v45  ;;  %v3035_v35 = vpop.eup %3034  ;;  %2529 = vst [vmem:[%s3663_s17 + $0x2b8] sm:$0xff] %v2273_v22  ;;  %v2018_v52 = vadd.f32 1.0, %v3033_v10  ;;  %v1509_v32 = vmul.f32 0.5, %v4273_v60  ;;  %v1510_v0 = vmul.f32 0.5, %v4281_v62 }
  0xf5   : > { %3044 = vtanh.f32 %v1256_v49  ;;  %v747_v41 = vmul.f32 0.035677407, %v491_v2  ;;  %v2019_v39 = vadd.f32 1.0, %v3035_v35  ;;  %v1257_v47 = vmul.f32 %v1001_v58, %v4307_v16  ;;  %v4392_v58 = vld [vmem:[%s3591_s30 + $0x350] sm:$0xff] }
  0xf6   : > { %v1258_v29 = vmul.f32 %v1002_v53, %v4312_v6  ;;  %v748_v23 = vmul.f32 0.035677407, %v492_v28  ;;  %v2274_v9 = vmul.f32 %v2018_v52, %v1506_v17  ;;  %v493_v60 = vmul.f32 %v4340_v18, %v4340_v18 }
  0xf7   : > { %v3037_v37 = vpop.eup %3036  ;;  %v1003_v46 = vadd.f32 0.7978846, %v747_v41  ;;  %v2275_v1 = vmul.f32 %v2019_v39, %v1507_v14  ;;  %3046 = vtanh.f32 %v1257_v47  ;;  %v494_v62 = vmul.f32 %v4347_v4, %v4347_v4 }
  0xf8   : > { %v2020_v3 = vadd.f32 1.0, %v3037_v37  ;;  %v1004_v42 = vadd.f32 0.7978846, %v748_v23  ;;  %2530 = vst [vmem:[%s3663_s17 + $0x2c0] sm:$0xff] %v2274_v9  ;;  %3048 = vtanh.f32 %v1258_v29  ;;  %v749_v34 = vmul.f32 0.035677407, %v493_v60 }
  0xf9   : > { %v1259_v11 = vmul.f32 %v1003_v46, %v4324_v15  ;;  %v3039_v7 = vpop.eup %3038  ;;  %2531 = vst [vmem:[%s3663_s17 + $0x2c8] sm:$0xff] %v2275_v1  ;;  %v1511_v20 = vmul.f32 0.5, %v4288_v54  ;;  %v495_v26 = vmul.f32 %v4353_v55, %v4353_v55  ;;  %v750_v48 = vmul.f32 0.035677407, %v494_v62  ;;  %v4405_v1 = vld [vmem:[%s3591_s30 + $0x358] sm:$0xff] }
  0xfa   : > { %v2276_v8 = vmul.f32 %v2020_v3, %v1508_v44  ;;  %v1260_v51 = vmul.f32 %v1004_v42, %v4328_v38  ;;  %v3041_v13 = vpop.eup %3040  ;;  %v2021_v56 = vadd.f32 1.0, %v3039_v7  ;;  %v1005_v19 = vadd.f32 0.7978846, %v749_v34 }
  0xfb   : > { %3050 = vtanh.f32 %v1259_v11  ;;  %v2022_v31 = vadd.f32 1.0, %v3041_v13  ;;  %v1512_v21 = vmul.f32 0.5, %v4297_v36  ;;  %v751_v54 = vmul.f32 0.035677407, %v495_v26  ;;  %v4377_v36 = vld [vmem:[%s3591_s30 + $0x340] sm:$0xff] }
  0xfc   : > { %2532 = vst [vmem:[%s3663_s17 + $0x2d0] sm:$0xff] %v2276_v8  ;;  %3052 = vtanh.f32 %v1260_v51  ;;  %v3043_v17 = vpop.eup %3042  ;;  %v2277_v27 = vmul.f32 %v2021_v56, %v1509_v32  ;;  %v1261_v61 = vmul.f32 %v1005_v19, %v4340_v18  ;;  %v1006_v43 = vadd.f32 0.7978846, %v750_v48  ;;  %v4418_v19 = vld [vmem:[%s3591_s30 + $0x368] sm:$0xff] }
  0xfd   : > { %v496_v63 = vmul.f32 %v4365_v12, %v4365_v12  ;;  %v2278_v40 = vmul.f32 %v2022_v31, %v1510_v0  ;;  %v2023_v30 = vadd.f32 1.0, %v3043_v17  ;;  %v1513_v33 = vmul.f32 0.5, %v4307_v16 }
  0xfe   : > { %v1007_v59 = vadd.f32 0.7978846, %v751_v54  ;;  %2533 = vst [vmem:[%s3663_s17 + $0x2d8] sm:$0xff] %v2277_v27  ;;  %3054 = vtanh.f32 %v1261_v61  ;;  %v1262_v25 = vmul.f32 %v1006_v43, %v4347_v4  ;;  %v497_v14 = vmul.f32 %v4370_v57, %v4370_v57  ;;  %v4426_v61 = vld [vmem:[%s3591_s30 + $0x370] sm:$0xff] }
  0xff   : > { %v3045_v50 = vpop.eup %3044  ;;  %v752_v5 = vmul.f32 0.035677407, %v496_v63  ;;  %2534 = vst [vmem:[%s3663_s17 + $0x2e0] sm:$0xff] %v2278_v40  ;;  %v2279_v45 = vmul.f32 %v2023_v30, %v1511_v20  ;;  %v1514_v16 = vmul.f32 0.5, %v4312_v6  ;;  %v498_v44 = vmul.f32 %v4377_v36, %v4377_v36 }
 0x100   : > { %v2024_v22 = vadd.f32 1.0, %v3045_v50  ;;  %v1263_v49 = vmul.f32 %v1007_v59, %v4353_v55  ;;  %3056 = vtanh.f32 %v1262_v25  ;;  %v753_v10 = vmul.f32 0.035677407, %v497_v14 }
 0x101   : > { %v1008_v2 = vadd.f32 0.7978846, %v752_v5  ;;  %v3047_v53 = vpop.eup %3046  ;;  %2535 = vst [vmem:[%s3663_s17 + $0x2e8] sm:$0xff] %v2279_v45  ;;  %v1515_v35 = vmul.f32 0.5, %v4324_v15  ;;  %v499_v6 = vmul.f32 %v4384_v24, %v4384_v24  ;;  %v754_v47 = vmul.f32 0.035677407, %v498_v44 }
 0x102   : > { %v2280_v28 = vmul.f32 %v2024_v22, %v1512_v21  ;;  %3058 = vtanh.f32 %v1263_v49  ;;  %v3049_v52 = vpop.eup %3048  ;;  %v2025_v32 = vadd.f32 1.0, %v3047_v53  ;;  %v1009_v39 = vadd.f32 0.7978846, %v753_v10  ;;  %v4444_v10 = vld [vmem:[%s3591_s30 + $0x380] sm:$0xff] }
 0x103   : > { %v1264_v41 = vmul.f32 %v1008_v2, %v4365_v12  ;;  %v2026_v29 = vadd.f32 1.0, %v3049_v52  ;;  %v1516_v23 = vmul.f32 0.5, %v4328_v38  ;;  %v755_v37 = vmul.f32 0.035677407, %v499_v6  ;;  %v4408_v38 = vld [vmem:[%s3591_s30 + $0x360] sm:$0xff] }
 0x104   : > { %2536 = vst [vmem:[%s3663_s17 + $0x2f0] sm:$0xff] %v2280_v28  ;;  %v500_v15 = vmul.f32 %v4392_v58, %v4392_v58  ;;  %v2281_v0 = vmul.f32 %v2025_v32, %v1513_v33  ;;  %v1265_v46 = vmul.f32 %v1009_v39, %v4370_v57  ;;  %v1010_v60 = vadd.f32 0.7978846, %v754_v47  ;;  %v4434_v33 = vld [vmem:[%s3591_s30 + $0x378] sm:$0xff] }
 0x105   : > { %v3051_v9 = vpop.eup %3050  ;;  %3060 = vtanh.f32 %v1264_v41  ;;  %v2282_v42 = vmul.f32 %v2026_v29, %v1514_v16  ;;  %v1011_v34 = vadd.f32 0.7978846, %v755_v37  ;;  %v1517_v8 = vmul.f32 0.5, %v4340_v18  ;;  %v4450_v41 = vld [vmem:[%s3591_s30 + $0x388] sm:$0xff] }
 0x106   : > { %v3053_v3 = vpop.eup %3052  ;;  %v2027_v11 = vadd.f32 1.0, %v3051_v9  ;;  %v756_v62 = vmul.f32 0.035677407, %v500_v15  ;;  %2537 = vst [vmem:[%s3663_s17 + $0x2f8] sm:$0xff] %v2281_v0  ;;  %3062 = vtanh.f32 %v1265_v46  ;;  %v1266_v20 = vmul.f32 %v1010_v60, %v4377_v36 }
 0x107   : > { %v2028_v7 = vadd.f32 1.0, %v3053_v3  ;;  %2538 = vst [vmem:[%s3663_s17 + $0x300] sm:$0xff] %v2282_v42  ;;  %v1267_v26 = vmul.f32 %v1011_v34, %v4384_v24  ;;  %v501_v56 = vmul.f32 %v4405_v1, %v4405_v1  ;;  %v1518_v18 = vmul.f32 0.5, %v4347_v4  ;;  %v4461_v42 = vld [vmem:[%s3591_s30 + $0x390] sm:$0xff] }
 0x108   : > { %v2283_v51 = vmul.f32 %v2027_v11, %v1515_v35  ;;  %v1012_v13 = vadd.f32 0.7978846, %v756_v62  ;;  %v3055_v48 = vpop.eup %3054  ;;  %3064 = vtanh.f32 %v1266_v20  ;;  %v502_v21 = vmul.f32 %v4408_v38, %v4408_v38 }
 0x109   : > { %v2284_v31 = vmul.f32 %v2028_v7, %v1516_v23  ;;  %v2029_v54 = vadd.f32 1.0, %v3055_v48  ;;  %3066 = vtanh.f32 %v1267_v26  ;;  %v757_v27 = vmul.f32 0.035677407, %v501_v56 }
 0x10a   : > { %2539 = vst [vmem:[%s3663_s17 + $0x308] sm:$0xff] %v2283_v51  ;;  %v1268_v17 = vmul.f32 %v1012_v13, %v4392_v58  ;;  %v3057_v43 = vpop.eup %3056  ;;  %v1519_v63 = vmul.f32 0.5, %v4353_v55  ;;  %v1520_v40 = vmul.f32 0.5, %v4365_v12  ;;  %v758_v4 = vmul.f32 0.035677407, %v502_v21  ;;  %v4470_v13 = vld [vmem:[%s3591_s30 + $0x3a0] sm:$0xff] }
 0x10b   : > { %2540 = vst [vmem:[%s3663_s17 + $0x310] sm:$0xff] %v2284_v31  ;;  %v503_v30 = vmul.f32 %v4418_v19, %v4418_v19  ;;  %v2285_v50 = vmul.f32 %v2029_v54, %v1517_v8  ;;  %v2030_v25 = vadd.f32 1.0, %v3057_v43  ;;  %v1013_v5 = vadd.f32 0.7978846, %v757_v27  ;;  %v4467_v8 = vld [vmem:[%s3591_s30 + $0x398] sm:$0xff]  ;;  %v4478_v27 = vld [vmem:[%s3591_s30 + $0x3a8] sm:$0xff] }
 0x10c   : > { %v3059_v59 = vpop.eup %3058  ;;  %3068 = vtanh.f32 %v1268_v17  ;;  %v1014_v45 = vadd.f32 0.7978846, %v758_v4  ;;  %v504_v55 = vmul.f32 %v4426_v61, %v4426_v61  ;;  %v1521_v16 = vmul.f32 0.5, %v4370_v57  ;;  %v4487_v4 = vld [vmem:[%s3591_s30 + $0x3b0] sm:$0xff] }
 0x10d   : > { %v2031_v14 = vadd.f32 1.0, %v3059_v59  ;;  %v759_v22 = vmul.f32 0.035677407, %v503_v30  ;;  %2541 = vst [vmem:[%s3663_s17 + $0x318] sm:$0xff] %v2285_v50  ;;  %v2286_v12 = vmul.f32 %v2030_v25, %v1518_v18  ;;  %v1269_v49 = vmul.f32 %v1013_v5, %v4405_v1 }
 0x10e   : > { %v505_v2 = vmul.f32 %v4434_v33, %v4434_v33  ;;  %v1270_v28 = vmul.f32 %v1014_v45, %v4408_v38  ;;  %v760_v6 = vmul.f32 0.035677407, %v504_v55  ;;  %v1522_v32 = vmul.f32 0.5, %v4377_v36 }
 0x10f   : > { %v3061_v44 = vpop.eup %3060  ;;  %v2287_v53 = vmul.f32 %v2031_v14, %v1519_v63  ;;  %v1015_v35 = vadd.f32 0.7978846, %v759_v22  ;;  %2542 = vst [vmem:[%s3663_s17 + $0x320] sm:$0xff] %v2286_v12  ;;  %3070 = vtanh.f32 %v1269_v49  ;;  %v506_v23 = vmul.f32 %v4444_v10, %v4444_v10 }
 0x110   : > { %v2032_v52 = vadd.f32 1.0, %v3061_v44  ;;  %v761_v57 = vmul.f32 0.035677407, %v505_v2  ;;  %v3063_v39 = vpop.eup %3062  ;;  %3072 = vtanh.f32 %v1270_v28  ;;  %v1016_v29 = vadd.f32 0.7978846, %v760_v6 }
 0x111   : > { %2543 = vst [vmem:[%s3663_s17 + $0x328] sm:$0xff] %v2287_v53  ;;  %v1271_v47 = vmul.f32 %v1015_v35, %v4418_v19  ;;  %v2033_v15 = vadd.f32 1.0, %v3063_v39  ;;  %v1523_v36 = vmul.f32 0.5, %v4384_v24  ;;  %v762_v60 = vmul.f32 0.035677407, %v506_v23  ;;  %v4500_v53 = vld [vmem:[%s3591_s30 + $0x3b8] sm:$0xff] }
 0x112   : > { %v2288_v37 = vmul.f32 %v2032_v52, %v1520_v40  ;;  %v1017_v9 = vadd.f32 0.7978846, %v761_v57  ;;  %v3065_v0 = vpop.eup %3064  ;;  %v1272_v46 = vmul.f32 %v1016_v29, %v4426_v61  ;;  %v507_v3 = vmul.f32 %v4450_v41, %v4450_v41 }
 0x113   : > { %3074 = vtanh.f32 %v1271_v47  ;;  %v3067_v11 = vpop.eup %3066  ;;  %v2289_v34 = vmul.f32 %v2033_v15, %v1521_v16  ;;  %v2034_v62 = vadd.f32 1.0, %v3065_v0  ;;  %v1524_v7 = vmul.f32 0.5, %v4392_v58 }
 0x114   : > { %2544 = vst [vmem:[%s3663_s17 + $0x330] sm:$0xff] %v2288_v37  ;;  %v1273_v24 = vmul.f32 %v1017_v9, %v4434_v33  ;;  %v2035_v20 = vadd.f32 1.0, %v3067_v11  ;;  %3076 = vtanh.f32 %v1272_v46  ;;  %v1018_v51 = vadd.f32 0.7978846, %v762_v60  ;;  %v4514_v60 = vld [vmem:[%s3591_s30 + $0x3c8] sm:$0xff] }
 0x115   : > { %v763_v26 = vmul.f32 0.035677407, %v507_v3  ;;  %2545 = vst [vmem:[%s3663_s17 + $0x338] sm:$0xff] %v2289_v34  ;;  %v2290_v48 = vmul.f32 %v2034_v62, %v1522_v32  ;;  %v1525_v31 = vmul.f32 0.5, %v4405_v1  ;;  %v508_v58 = vmul.f32 %v4461_v42, %v4461_v42 }
 0x116   : > { %v3069_v56 = vpop.eup %3068  ;;  %3078 = vtanh.f32 %v1273_v24  ;;  %v2291_v18 = vmul.f32 %v2035_v20, %v1523_v36  ;;  %v1274_v54 = vmul.f32 %v1018_v51, %v4444_v10  ;;  %v1526_v43 = vmul.f32 0.5, %v4408_v38  ;;  %v4509_v36 = vld [vmem:[%s3591_s30 + $0x3c0] sm:$0xff]  ;;  %v4523_v20 = vld [vmem:[%s3591_s30 + $0x3d0] sm:$0xff]  ;;  %v4526_v51 = vld [vmem:[%s3591_s30 + $0x3d8] sm:$0xff] }
 0x117   : > { %v2036_v21 = vadd.f32 1.0, %v3069_v56  ;;  %v1019_v17 = vadd.f32 0.7978846, %v763_v26  ;;  %2546 = vst [vmem:[%s3663_s17 + $0x340] sm:$0xff] %v2290_v48  ;;  %v764_v63 = vmul.f32 0.035677407, %v508_v58  ;;  %v509_v40 = vmul.f32 %v4467_v8, %v4467_v8 }
 0x118   : > { %v510_v1 = vmul.f32 %v4470_v13, %v4470_v13  ;;  %2547 = vst [vmem:[%s3663_s17 + $0x348] sm:$0xff] %v2291_v18  ;;  %v1527_v59 = vmul.f32 0.5, %v4418_v19  ;;  %3080 = vtanh.f32 %v1274_v54  ;;  %v511_v45 = vmul.f32 %v4478_v27, %v4478_v27 }
 0x119   : > { %v2292_v30 = vmul.f32 %v2036_v21, %v1524_v7  ;;  %v1275_v50 = vmul.f32 %v1019_v17, %v4450_v41  ;;  %v3071_v25 = vpop.eup %3070  ;;  %v1020_v38 = vadd.f32 0.7978846, %v764_v63  ;;  %v765_v5 = vmul.f32 0.035677407, %v509_v40  ;;  %v4533_v21 = vld [vmem:[%s3591_s30 + $0x3e0] sm:$0xff] }
 0x11a   : > { %v766_v14 = vmul.f32 0.035677407, %v510_v1  ;;  %v3073_v22 = vpop.eup %3072  ;;  %v2037_v55 = vadd.f32 1.0, %v3071_v25  ;;  %v1528_v12 = vmul.f32 0.5, %v4426_v61  ;;  %v512_v19 = vmul.f32 %v4487_v4, %v4487_v4 }
 0x11b   : > { %2548 = vst [vmem:[%s3663_s17 + $0x350] sm:$0xff] %v2292_v30  ;;  %3082 = vtanh.f32 %v1275_v50  ;;  %v2038_v16 = vadd.f32 1.0, %v3073_v22  ;;  %v1276_v49 = vmul.f32 %v1020_v38, %v4461_v42  ;;  %v1021_v2 = vadd.f32 0.7978846, %v765_v5  ;;  %v4543_v50 = vld [vmem:[%s3591_s30 + $0x3e8] sm:$0xff] }
 0x11c   : > { %v1022_v44 = vadd.f32 0.7978846, %v766_v14  ;;  %v2293_v35 = vmul.f32 %v2037_v55, %v1525_v31  ;;  %v1529_v6 = vmul.f32 0.5, %v4434_v33  ;;  %v767_v52 = vmul.f32 0.035677407, %v511_v45 }
 0x11d   : > { %v3075_v28 = vpop.eup %3074  ;;  %v768_v61 = vmul.f32 0.035677407, %v512_v19  ;;  %v2294_v32 = vmul.f32 %v2038_v16, %v1526_v43  ;;  %3084 = vtanh.f32 %v1276_v49  ;;  %v1277_v39 = vmul.f32 %v1021_v2, %v4467_v8 }
 0x11e   : > { %v2039_v57 = vadd.f32 1.0, %v3075_v28  ;;  %v3077_v47 = vpop.eup %3076  ;;  %2549 = vst [vmem:[%s3663_s17 + $0x358] sm:$0xff] %v2293_v35  ;;  %v1278_v29 = vmul.f32 %v1022_v44, %v4470_v13  ;;  %v1023_v23 = vadd.f32 0.7978846, %v767_v52  ;;  %v513_v15 = vmul.f32 %v4500_v53, %v4500_v53 }
 0x11f   : > { %v1024_v37 = vadd.f32 0.7978846, %v768_v61  ;;  %2550 = vst [vmem:[%s3663_s17 + $0x360] sm:$0xff] %v2294_v32  ;;  %v2040_v0 = vadd.f32 1.0, %v3077_v47  ;;  %v1530_v46 = vmul.f32 0.5, %v4444_v10  ;;  %3086 = vtanh.f32 %v1277_v39 }
 0x120   : > { %v3079_v33 = vpop.eup %3078  ;;  %v2295_v9 = vmul.f32 %v2039_v57, %v1527_v59  ;;  %3088 = vtanh.f32 %v1278_v29  ;;  %v1279_v11 = vmul.f32 %v1023_v23, %v4478_v27  ;;  %v1531_v7 = vmul.f32 0.5, %v4450_v41 }
 0x121   : > { %v2041_v3 = vadd.f32 1.0, %v3079_v33  ;;  %v1280_v34 = vmul.f32 %v1024_v37, %v4487_v4  ;;  %v2296_v62 = vmul.f32 %v2040_v0, %v1528_v12  ;;  %v769_v24 = vmul.f32 0.035677407, %v513_v15  ;;  %v4565_v33 = vld [vmem:[%s3591_s30 + $0x3f8] sm:$0xff] }
 0x122   : > { %2551 = vst [vmem:[%s3663_s17 + $0x368] sm:$0xff] %v2295_v9  ;;  %v514_v10 = vmul.f32 %v4509_v36, %v4509_v36  ;;  %v3081_v26 = vpop.eup %3080  ;;  %v1532_v48 = vmul.f32 0.5, %v4461_v42  ;;  %3090 = vtanh.f32 %v1279_v11  ;;  %v515_v31 = vmul.f32 %v4514_v60, %v4514_v60  ;;  %v4569_v11 = vld [vmem:[%s3591_s30 + $0x400] sm:$0xff] }
 0x123   : > { %v2297_v56 = vmul.f32 %v2041_v3, %v1529_v6  ;;  %2552 = vst [vmem:[%s3663_s17 + $0x370] sm:$0xff] %v2296_v62  ;;  %v2042_v41 = vadd.f32 1.0, %v3081_v26  ;;  %3092 = vtanh.f32 %v1280_v34  ;;  %v1025_v58 = vadd.f32 0.7978846, %v769_v24  ;;  %v4556_v6 = vld [vmem:[%s3591_s30 + $0x3f0] sm:$0xff]  ;;  %v4572_v34 = vld [vmem:[%s3591_s30 + $0x408] sm:$0xff] }
 0x124   : > { %v770_v18 = vmul.f32 0.035677407, %v514_v10  ;;  %v1533_v17 = vmul.f32 0.5, %v4467_v8  ;;  %v771_v43 = vmul.f32 0.035677407, %v515_v31  ;;  %v516_v42 = vmul.f32 %v4523_v20, %v4523_v20 }
 0x125   : > { %v3083_v54 = vpop.eup %3082  ;;  %2553 = vst [vmem:[%s3663_s17 + $0x378] sm:$0xff] %v2297_v56  ;;  %v517_v63 = vmul.f32 %v4526_v51, %v4526_v51  ;;  %v2298_v40 = vmul.f32 %v2042_v41, %v1530_v46  ;;  %v1281_v30 = vmul.f32 %v1025_v58, %v4500_v53  ;;  %v518_v8 = vmul.f32 %v4533_v21, %v4533_v21 }
 0x126   : > { %v2043_v1 = vadd.f32 1.0, %v3083_v54  ;;  %v1026_v59 = vadd.f32 0.7978846, %v770_v18  ;;  %v1027_v25 = vadd.f32 0.7978846, %v771_v43  ;;  %v1534_v22 = vmul.f32 0.5, %v4470_v13 }
 0x127   : > { %v772_v38 = vmul.f32 0.035677407, %v516_v42  ;;  %v773_v5 = vmul.f32 0.035677407, %v517_v63  ;;  %v3085_v14 = vpop.eup %3084  ;;  %2554 = vst [vmem:[%s3663_s17 + $0x380] sm:$0xff] %v2298_v40  ;;  %3094 = vtanh.f32 %v1281_v30  ;;  %v1535_v44 = vmul.f32 0.5, %v4478_v27 }
 0x128   : > { %v2299_v45 = vmul.f32 %v2043_v1, %v1531_v7  ;;  %v1282_v55 = vmul.f32 %v1026_v59, %v4509_v36  ;;  %v2044_v12 = vadd.f32 1.0, %v3085_v14  ;;  %v1283_v19 = vmul.f32 %v1027_v25, %v4514_v60  ;;  %v4584_v18 = vld [vmem:[%s3591_s30 + $0x410] sm:$0xff] }
 0x129   : > { %v1028_v16 = vadd.f32 0.7978846, %v772_v38  ;;  %v1029_v49 = vadd.f32 0.7978846, %v773_v5  ;;  %v3087_v2 = vpop.eup %3086  ;;  %v774_v28 = vmul.f32 0.035677407, %v518_v8  ;;  %v519_v35 = vmul.f32 %v4543_v50, %v4543_v50 }
 0x12a   : > { %2555 = vst [vmem:[%s3663_s17 + $0x388] sm:$0xff] %v2299_v45  ;;  %3096 = vtanh.f32 %v1282_v55  ;;  %v3089_v13 = vpop.eup %3088  ;;  %v2300_v52 = vmul.f32 %v2044_v12, %v1532_v48  ;;  %v2045_v61 = vadd.f32 1.0, %v3087_v2  ;;  %v1536_v37 = vmul.f32 0.5, %v4487_v4 }
 0x12b   : > { %3098 = vtanh.f32 %v1283_v19  ;;  %v1284_v32 = vmul.f32 %v1028_v16, %v4523_v20  ;;  %v2046_v57 = vadd.f32 1.0, %v3089_v13  ;;  %v1285_v39 = vmul.f32 %v1029_v49, %v4526_v51 }
 0x12c   : > { %v1030_v27 = vadd.f32 0.7978846, %v774_v28  ;;  %v775_v47 = vmul.f32 0.035677407, %v519_v35  ;;  %v3091_v29 = vpop.eup %3090  ;;  %2556 = vst [vmem:[%s3663_s17 + $0x390] sm:$0xff] %v2300_v52  ;;  %v2301_v23 = vmul.f32 %v2045_v61, %v1533_v17  ;;  %v520_v15 = vmul.f32 %v4556_v6, %v4556_v6  ;;  %v4610_v61 = vld [vmem:[%s3591_s30 + $0x428] sm:$0xff] }
 0x12d   : > { %3100 = vtanh.f32 %v1284_v32  ;;  %v3093_v9 = vpop.eup %3092  ;;  %v2302_v0 = vmul.f32 %v2046_v57, %v1534_v22  ;;  %v2047_v46 = vadd.f32 1.0, %v3091_v29  ;;  %v1537_v62 = vmul.f32 0.5, %v4500_v53 }
 0x12e   : > { %3102 = vtanh.f32 %v1285_v39  ;;  %v1286_v3 = vmul.f32 %v1030_v27, %v4533_v21  ;;  %2557 = vst [vmem:[%s3663_s17 + $0x398] sm:$0xff] %v2301_v23  ;;  %v2048_v4 = vadd.f32 1.0, %v3093_v9  ;;  %v1031_v7 = vadd.f32 0.7978846, %v775_v47  ;;  %v4614_v39 = vld [vmem:[%s3591_s30 + $0x430] sm:$0xff] }
 0x12f   : > { %v776_v24 = vmul.f32 0.035677407, %v520_v15  ;;  %2558 = vst [vmem:[%s3663_s17 + $0x3a0] sm:$0xff] %v2302_v0  ;;  %v2303_v10 = vmul.f32 %v2047_v46, %v1535_v44  ;;  %v1538_v26 = vmul.f32 0.5, %v4509_v36  ;;  %v521_v56 = vmul.f32 %v4565_v33, %v4565_v33  ;;  %v4606_v44 = vld [vmem:[%s3591_s30 + $0x420] sm:$0xff]  ;;  %v4622_v46 = vld [vmem:[%s3591_s30 + $0x438] sm:$0xff] }
 0x130   : > { %3104 = vtanh.f32 %v1286_v3  ;;  %v2304_v48 = vmul.f32 %v2048_v4, %v1536_v37  ;;  %v1287_v31 = vmul.f32 %v1031_v7, %v4543_v50  ;;  %v522_v58 = vmul.f32 %v4569_v11, %v4569_v11  ;;  %v4631_v7 = vld [vmem:[%s3591_s30 + $0x440] sm:$0xff] }
 0x131   : > { %v1032_v41 = vadd.f32 0.7978846, %v776_v24  ;;  %v3095_v53 = vpop.eup %3094  ;;  %2559 = vst [vmem:[%s3663_s17 + $0x3a8] sm:$0xff] %v2303_v10  ;;  %v1539_v54 = vmul.f32 0.5, %v4514_v60  ;;  %v1540_v36 = vmul.f32 0.5, %v4523_v20  ;;  %v523_v43 = vmul.f32 %v4572_v34, %v4572_v34  ;;  %v4597_v20 = vld [vmem:[%s3591_s30 + $0x418] sm:$0xff] }
 0x132   : > { %v777_v17 = vmul.f32 0.035677407, %v521_v56  ;;  %2560 = vst [vmem:[%s3663_s17 + $0x3b0] sm:$0xff] %v2304_v48  ;;  %v2049_v42 = vadd.f32 1.0, %v3095_v53  ;;  %3106 = vtanh.f32 %v1287_v31  ;;  %v778_v40 = vmul.f32 0.035677407, %v522_v58 }
 0x133   : > { %v1288_v63 = vmul.f32 %v1032_v41, %v4556_v6  ;;  %v1541_v30 = vmul.f32 0.5, %v4526_v51  ;;  %v779_v25 = vmul.f32 0.035677407, %v523_v43  ;;  %v524_v60 = vmul.f32 %v4584_v18, %v4584_v18  ;;  %v4639_v58 = vld [vmem:[%s3591_s30 + $0x448] sm:$0xff] }
 0x134   : > { %v3097_v1 = vpop.eup %3096  ;;  %v1033_v59 = vadd.f32 0.7978846, %v777_v17  ;;  %v2305_v5 = vmul.f32 %v2049_v42, %v1537_v62  ;;  %v1034_v14 = vadd.f32 0.7978846, %v778_v40  ;;  %v1542_v16 = vmul.f32 0.5, %v4533_v21 }
 0x135   : > { %v3099_v38 = vpop.eup %3098  ;;  %v2050_v8 = vadd.f32 1.0, %v3097_v1  ;;  %3108 = vtanh.f32 %v1288_v63  ;;  %v1035_v55 = vadd.f32 0.7978846, %v779_v25  ;;  %v780_v51 = vmul.f32 0.035677407, %v524_v60 }
 0x136   : > { %v2051_v45 = vadd.f32 1.0, %v3099_v38  ;;  %v1289_v22 = vmul.f32 %v1033_v59, %v4565_v33  ;;  %2561 = vst [vmem:[%s3663_s17 + $0x3b8] sm:$0xff] %v2305_v5  ;;  %v1290_v49 = vmul.f32 %v1034_v14, %v4569_v11  ;;  %v525_v2 = vmul.f32 %v4597_v20, %v4597_v20 }
 0x137   : > { %v3101_v12 = vpop.eup %3100  ;;  %v2306_v19 = vmul.f32 %v2050_v8, %v1538_v26  ;;  %v1291_v52 = vmul.f32 %v1035_v55, %v4572_v34  ;;  %v1036_v21 = vadd.f32 0.7978846, %v780_v51  ;;  %v1543_v29 = vmul.f32 0.5, %v4543_v50  ;;  %v4653_v55 = vld [vmem:[%s3591_s30 + $0x450] sm:$0xff] }
 0x138   : > { %v3103_v28 = vpop.eup %3102  ;;  %v2307_v35 = vmul.f32 %v2051_v45, %v1539_v54  ;;  %v2052_v13 = vadd.f32 1.0, %v3101_v12  ;;  %3110 = vtanh.f32 %v1289_v22  ;;  %v781_v57 = vmul.f32 0.035677407, %v525_v2 }
 0x139   : > { %2562 = vst [vmem:[%s3663_s17 + $0x3c0] sm:$0xff] %v2306_v19  ;;  %v2053_v32 = vadd.f32 1.0, %v3103_v28  ;;  %3112 = vtanh.f32 %v1290_v49  ;;  %v526_v23 = vmul.f32 %v4606_v44, %v4606_v44  ;;  %v1292_v9 = vmul.f32 %v1036_v21, %v4584_v18 }
 0x13a   : > { %v3105_v27 = vpop.eup %3104  ;;  %2563 = vst [vmem:[%s3663_s17 + $0x3c8] sm:$0xff] %v2307_v35  ;;  %v2308_v47 = vmul.f32 %v2052_v13, %v1540_v36  ;;  %3114 = vtanh.f32 %v1291_v52  ;;  %v1037_v0 = vadd.f32 0.7978846, %v781_v57  ;;  %v1544_v3 = vmul.f32 0.5, %v4556_v6 }
 0x13b   : > { %v2309_v37 = vmul.f32 %v2053_v32, %v1541_v30  ;;  %v2054_v15 = vadd.f32 1.0, %v3105_v27  ;;  %v782_v4 = vmul.f32 0.035677407, %v526_v23  ;;  %v527_v50 = vmul.f32 %v4610_v61, %v4610_v61 }
 0x13c   : > { %2564 = vst [vmem:[%s3663_s17 + $0x3d0] sm:$0xff] %v2308_v47  ;;  %v528_v62 = vmul.f32 %v4614_v39, %v4614_v39  ;;  %v3107_v24 = vpop.eup %3106  ;;  %v1545_v26 = vmul.f32 0.5, %v4565_v33  ;;  %3116 = vtanh.f32 %v1292_v9  ;;  %v1293_v56 = vmul.f32 %v1037_v0, %v4597_v20 }
 0x13d   : > { %2565 = vst [vmem:[%s3663_s17 + $0x3d8] sm:$0xff] %v2309_v37  ;;  %v2310_v10 = vmul.f32 %v2054_v15, %v1542_v16  ;;  %v2055_v48 = vadd.f32 1.0, %v3107_v24  ;;  %v1038_v6 = vadd.f32 0.7978846, %v782_v4  ;;  %v783_v31 = vmul.f32 0.035677407, %v527_v50 }
 0x13e   : > { %v529_v41 = vmul.f32 %v4622_v46, %v4622_v46  ;;  %v1546_v54 = vmul.f32 0.5, %v4569_v11  ;;  %3118 = vtanh.f32 %v1293_v56  ;;  %v784_v36 = vmul.f32 0.035677407, %v528_v62  ;;  %v4658_v16 = vld [vmem:[%s3591_s30 + $0x458] sm:$0xff]  ;;  %v4674_v15 = vld [vmem:[%s3591_s30 + $0x468] sm:$0xff]  ;;  %v4682_v50 = vld [vmem:[%s3591_s30 + $0x470] sm:$0xff] }
 0x13f   : > { %v3109_v53 = vpop.eup %3108  ;;  %2566 = vst [vmem:[%s3663_s17 + $0x3e0] sm:$0xff] %v2310_v10  ;;  %v530_v33 = vmul.f32 %v4631_v7, %v4631_v7  ;;  %v2311_v17 = vmul.f32 %v2055_v48, %v1543_v29  ;;  %v1294_v42 = vmul.f32 %v1038_v6, %v4606_v44  ;;  %v1039_v63 = vadd.f32 0.7978846, %v783_v31 }
 0x140   : > { %v2056_v43 = vadd.f32 1.0, %v3109_v53  ;;  %v1040_v40 = vadd.f32 0.7978846, %v784_v36  ;;  %v785_v1 = vmul.f32 0.035677407, %v529_v41  ;;  %v531_v59 = vmul.f32 %v4639_v58, %v4639_v58 }
 0x141   : > { %v786_v30 = vmul.f32 0.035677407, %v530_v33  ;;  %2567 = vst [vmem:[%s3663_s17 + $0x3e8] sm:$0xff] %v2311_v17  ;;  %v1547_v60 = vmul.f32 0.5, %v4572_v34  ;;  %3120 = vtanh.f32 %v1294_v42  ;;  %v1295_v38 = vmul.f32 %v1039_v63, %v4610_v61 }
 0x142   : > { %v3111_v25 = vpop.eup %3110  ;;  %v2312_v11 = vmul.f32 %v2056_v43, %v1544_v3  ;;  %v1296_v14 = vmul.f32 %v1040_v40, %v4614_v39  ;;  %v1041_v45 = vadd.f32 0.7978846, %v785_v1  ;;  %v1548_v19 = vmul.f32 0.5, %v4584_v18  ;;  %v4665_v18 = vld [vmem:[%s3591_s30 + $0x460] sm:$0xff] }
 0x143   : > { %v3113_v5 = vpop.eup %3112  ;;  %v2057_v8 = vadd.f32 1.0, %v3111_v25  ;;  %v1042_v22 = vadd.f32 0.7978846, %v786_v30  ;;  %3122 = vtanh.f32 %v1295_v38  ;;  %v787_v34 = vmul.f32 0.035677407, %v531_v59  ;;  %v4697_v43 = vld [vmem:[%s3591_s30 + $0x480] sm:$0xff] }
 0x144   : > { %v3115_v51 = vpop.eup %3114  ;;  %2568 = vst [vmem:[%s3663_s17 + $0x3f0] sm:$0xff] %v2312_v11  ;;  %v2058_v12 = vadd.f32 1.0, %v3113_v5  ;;  %3124 = vtanh.f32 %v1296_v14  ;;  %v1297_v28 = vmul.f32 %v1041_v45, %v4622_v46  ;;  %v532_v32 = vmul.f32 %v4653_v55, %v4653_v55 }
 0x145   : > { %v2313_v49 = vmul.f32 %v2057_v8, %v1545_v26  ;;  %v2059_v2 = vadd.f32 1.0, %v3115_v51  ;;  %v1298_v13 = vmul.f32 %v1042_v22, %v4631_v7  ;;  %v1043_v52 = vadd.f32 0.7978846, %v787_v34  ;;  %v4712_v51 = vld [vmem:[%s3591_s30 + $0x490] sm:$0xff] }
 0x146   : > { %v2314_v35 = vmul.f32 %v2058_v12, %v1546_v54  ;;  %v3117_v21 = vpop.eup %3116  ;;  %v1549_v27 = vmul.f32 0.5, %v4597_v20  ;;  %3126 = vtanh.f32 %v1297_v28  ;;  %v533_v47 = vmul.f32 %v4658_v16, %v4658_v16 }
 0x147   : > { %2569 = vst [vmem:[%s3663_s17 + $0x3f8] sm:$0xff] %v2313_v49  ;;  %v2315_v57 = vmul.f32 %v2059_v2, %v1547_v60  ;;  %v2060_v29 = vadd.f32 1.0, %v3117_v21  ;;  %3128 = vtanh.f32 %v1298_v13  ;;  %v1299_v23 = vmul.f32 %v1043_v52, %v4639_v58  ;;  %v4720_v52 = vld [vmem:[%s3591_s30 + $0x498] sm:$0xff] }
 0x148   : > { %2570 = vst [vmem:[%s3663_s17 + $0x400] sm:$0xff] %v2314_v35  ;;  %v788_v37 = vmul.f32 0.035677407, %v532_v32  ;;  %v3119_v9 = vpop.eup %3118  ;;  %v1550_v0 = vmul.f32 0.5, %v4606_v44  ;;  %v1551_v20 = vmul.f32 0.5, %v4610_v61  ;;  %v534_v4 = vmul.f32 %v4665_v18, %v4665_v18  ;;  %v4688_v61 = vld [vmem:[%s3591_s30 + $0x478] sm:$0xff] }
 0x149   : > { %2571 = vst [vmem:[%s3663_s17 + $0x408] sm:$0xff] %v2315_v57  ;;  %v789_v3 = vmul.f32 0.035677407, %v533_v47  ;;  %v2316_v62 = vmul.f32 %v2060_v29, %v1548_v19  ;;  %v2061_v24 = vadd.f32 1.0, %v3119_v9  ;;  %3130 = vtanh.f32 %v1299_v23  ;;  %v4731_v9 = vld [vmem:[%s3591_s30 + $0x4a8] sm:$0xff] }
 0x14a   : > { %v1044_v10 = vadd.f32 0.7978846, %v788_v37  ;;  %v1552_v26 = vmul.f32 0.5, %v4614_v39  ;;  %v790_v48 = vmul.f32 0.035677407, %v534_v4  ;;  %v535_v44 = vmul.f32 %v4674_v15, %v4674_v15  ;;  %v4728_v37 = vld [vmem:[%s3591_s30 + $0x4a0] sm:$0xff] }
 0x14b   : > { %v1045_v56 = vadd.f32 0.7978846, %v789_v3  ;;  %v3121_v6 = vpop.eup %3120  ;;  %2572 = vst [vmem:[%s3663_s17 + $0x410] sm:$0xff] %v2316_v62  ;;  %v2317_v31 = vmul.f32 %v2061_v24, %v1549_v27  ;;  %v1553_v41 = vmul.f32 0.5, %v4622_v46  ;;  %v536_v54 = vmul.f32 %v4682_v50, %v4682_v50 }
 0x14c   : > { %v1300_v53 = vmul.f32 %v1044_v10, %v4653_v55  ;;  %v2062_v36 = vadd.f32 1.0, %v3121_v6  ;;  %v1046_v33 = vadd.f32 0.7978846, %v790_v48  ;;  %v791_v17 = vmul.f32 0.035677407, %v535_v44 }
 0x14d   : > { %v1301_v39 = vmul.f32 %v1045_v56, %v4658_v16  ;;  %v3123_v42 = vpop.eup %3122  ;;  %2573 = vst [vmem:[%s3663_s17 + $0x418] sm:$0xff] %v2317_v31  ;;  %v1554_v63 = vmul.f32 0.5, %v4631_v7  ;;  %v792_v46 = vmul.f32 0.035677407, %v536_v54  ;;  %v537_v40 = vmul.f32 %v4688_v61, %v4688_v61  ;;  %v4707_v7 = vld [vmem:[%s3591_s30 + $0x488] sm:$0xff] }
 0x14e   : > { %3132 = vtanh.f32 %v1300_v53  ;;  %v3125_v1 = vpop.eup %3124  ;;  %v2318_v30 = vmul.f32 %v2062_v36, %v1550_v0  ;;  %v2063_v59 = vadd.f32 1.0, %v3123_v42  ;;  %v1302_v25 = vmul.f32 %v1046_v33, %v4665_v18  ;;  %v4752_v33 = vld [vmem:[%s3591_s30 + $0x4b8] sm:$0xff] }
 0x14f   : > { %3134 = vtanh.f32 %v1301_v39  ;;  %v2064_v11 = vadd.f32 1.0, %v3125_v1  ;;  %v1047_v60 = vadd.f32 0.7978846, %v791_v17  ;;  %v1048_v38 = vadd.f32 0.7978846, %v792_v46  ;;  %v4749_v39 = vld [vmem:[%s3591_s30 + $0x4b0] sm:$0xff] }
 0x150   : > { %v538_v5 = vmul.f32 %v4697_v43, %v4697_v43  ;;  %v3127_v8 = vpop.eup %3126  ;;  %2574 = vst [vmem:[%s3663_s17 + $0x420] sm:$0xff] %v2318_v30  ;;  %v2319_v14 = vmul.f32 %v2063_v59, %v1551_v20  ;;  %v1555_v45 = vmul.f32 0.5, %v4639_v58  ;;  %3136 = vtanh.f32 %v1302_v25 }
 0x151   : > { %v793_v22 = vmul.f32 0.035677407, %v537_v40  ;;  %v3129_v12 = vpop.eup %3128  ;;  %v2320_v19 = vmul.f32 %v2064_v11, %v1552_v26  ;;  %v2065_v34 = vadd.f32 1.0, %v3127_v8  ;;  %v1303_v49 = vmul.f32 %v1047_v60, %v4674_v15 }
 0x152   : > { %v1304_v2 = vmul.f32 %v1048_v38, %v4682_v50  ;;  %2575 = vst [vmem:[%s3663_s17 + $0x428] sm:$0xff] %v2319_v14  ;;  %v2066_v28 = vadd.f32 1.0, %v3129_v12  ;;  %v794_v13 = vmul.f32 0.035677407, %v538_v5  ;;  %v539_v58 = vmul.f32 %v4707_v7, %v4707_v7  ;;  %v4764_v14 = vld [vmem:[%s3591_s30 + $0x4c0] sm:$0xff] }
 0x153   : > { %v1049_v35 = vadd.f32 0.7978846, %v793_v22  ;;  %v3131_v32 = vpop.eup %3130  ;;  %2576 = vst [vmem:[%s3663_s17 + $0x430] sm:$0xff] %v2320_v19  ;;  %v2321_v21 = vmul.f32 %v2065_v34, %v1553_v41  ;;  %v1556_v57 = vmul.f32 0.5, %v4653_v55  ;;  %3138 = vtanh.f32 %v1303_v49  ;;  %v4769_v34 = vld [vmem:[%s3591_s30 + $0x4c8] sm:$0xff] }
 0x154   : > { %v540_v27 = vmul.f32 %v4712_v51, %v4712_v51  ;;  %v2322_v47 = vmul.f32 %v2066_v28, %v1554_v63  ;;  %v2067_v29 = vadd.f32 1.0, %v3131_v32  ;;  %3140 = vtanh.f32 %v1304_v2 }
 0x155   : > { %v1305_v23 = vmul.f32 %v1049_v35, %v4688_v61  ;;  %2577 = vst [vmem:[%s3663_s17 + $0x438] sm:$0xff] %v2321_v21  ;;  %v1050_v0 = vadd.f32 0.7978846, %v794_v13  ;;  %v795_v20 = vmul.f32 0.035677407, %v539_v58  ;;  %v541_v55 = vmul.f32 %v4720_v52, %v4720_v52  ;;  %v4777_v21 = vld [vmem:[%s3591_s30 + $0x4d0] sm:$0xff] }
 0x156   : > { %v796_v3 = vmul.f32 0.035677407, %v540_v27  ;;  %2578 = vst [vmem:[%s3663_s17 + $0x440] sm:$0xff] %v2322_v47  ;;  %v2323_v4 = vmul.f32 %v2067_v29, %v1555_v45  ;;  %v1557_v62 = vmul.f32 0.5, %v4658_v16  ;;  %v1558_v24 = vmul.f32 0.5, %v4665_v18 }
 0x157   : > { %3142 = vtanh.f32 %v1305_v23  ;;  %v1306_v26 = vmul.f32 %v1050_v0, %v4697_v43  ;;  %v1051_v56 = vadd.f32 0.7978846, %v795_v20  ;;  %v797_v44 = vmul.f32 0.035677407, %v541_v55  ;;  %v4784_v0 = vld [vmem:[%s3591_s30 + $0x4d8] sm:$0xff] }
 0x158   : > { %v3133_v10 = vpop.eup %3132  ;;  %v1052_v48 = vadd.f32 0.7978846, %v796_v3  ;;  %2579 = vst [vmem:[%s3663_s17 + $0x448] sm:$0xff] %v2323_v4  ;;  %v1559_v41 = vmul.f32 0.5, %v4674_v15  ;;  %v542_v53 = vmul.f32 %v4728_v37, %v4728_v37  ;;  %v543_v16 = vmul.f32 %v4731_v9, %v4731_v9 }
 0x159   : > { %v3135_v6 = vpop.eup %3134  ;;  %v2068_v31 = vadd.f32 1.0, %v3133_v10  ;;  %3144 = vtanh.f32 %v1306_v26  ;;  %v1307_v54 = vmul.f32 %v1051_v56, %v4707_v7  ;;  %v1053_v42 = vadd.f32 0.7978846, %v797_v44  ;;  %v4793_v56 = vld [vmem:[%s3591_s30 + $0x4e0] sm:$0xff] }
 0x15a   : > { %v2069_v18 = vadd.f32 1.0, %v3135_v6  ;;  %v1308_v36 = vmul.f32 %v1052_v48, %v4712_v51  ;;  %v3137_v17 = vpop.eup %3136  ;;  %v798_v63 = vmul.f32 0.035677407, %v542_v53  ;;  %v799_v46 = vmul.f32 0.035677407, %v543_v16 }
 0x15b   : > { %v2324_v15 = vmul.f32 %v2068_v31, %v1556_v57  ;;  %v2070_v1 = vadd.f32 1.0, %v3137_v17  ;;  %v1560_v30 = vmul.f32 0.5, %v4682_v50  ;;  %3146 = vtanh.f32 %v1307_v54 }
 0x15c   : > { %v2325_v40 = vmul.f32 %v2069_v18, %v1557_v62  ;;  %3148 = vtanh.f32 %v1308_v36  ;;  %v1309_v59 = vmul.f32 %v1053_v42, %v4720_v52  ;;  %v1054_v25 = vadd.f32 0.7978846, %v798_v63 }
 0x15d   : > { %2580 = vst [vmem:[%s3663_s17 + $0x450] sm:$0xff] %v2324_v15  ;;  %v1055_v11 = vadd.f32 0.7978846, %v799_v46  ;;  %v3139_v60 = vpop.eup %3138  ;;  %v2326_v38 = vmul.f32 %v2070_v1, %v1558_v24  ;;  %v1561_v5 = vmul.f32 0.5, %v4688_v61  ;;  %v544_v8 = vmul.f32 %v4749_v39, %v4749_v39 }
 0x15e   : > { %2581 = vst [vmem:[%s3663_s17 + $0x458] sm:$0xff] %v2325_v40  ;;  %v545_v50 = vmul.f32 %v4752_v33, %v4752_v33  ;;  %v3141_v45 = vpop.eup %3140  ;;  %v2071_v22 = vadd.f32 1.0, %v3139_v60  ;;  %3150 = vtanh.f32 %v1309_v59  ;;  %v1310_v12 = vmul.f32 %v1054_v25, %v4728_v37  ;;  %v4808_v40 = vld [vmem:[%s3591_s30 + $0x4f0] sm:$0xff] }
 0x15f   : > { %v1311_v19 = vmul.f32 %v1055_v11, %v4731_v9  ;;  %2582 = vst [vmem:[%s3663_s17 + $0x460] sm:$0xff] %v2326_v38  ;;  %v2072_v61 = vadd.f32 1.0, %v3141_v45  ;;  %v1562_v49 = vmul.f32 0.5, %v4697_v43  ;;  %v800_v2 = vmul.f32 0.035677407, %v544_v8 }
 0x160   : > { %v801_v28 = vmul.f32 0.035677407, %v545_v50  ;;  %v2327_v13 = vmul.f32 %v2071_v22, %v1559_v41  ;;  %v1563_v58 = vmul.f32 0.5, %v4707_v7  ;;  %3152 = vtanh.f32 %v1310_v12  ;;  %v4820_v12 = vld [vmem:[%s3591_s30 + $0x4f8] sm:$0xff] }
 0x161   : > { %v3143_v35 = vpop.eup %3142  ;;  %v546_v32 = vmul.f32 %v4764_v14, %v4764_v14  ;;  %v2328_v57 = vmul.f32 %v2072_v61, %v1560_v30  ;;  %3154 = vtanh.f32 %v1311_v19  ;;  %v1056_v47 = vadd.f32 0.7978846, %v800_v2 }
 0x162   : > { %v2073_v27 = vadd.f32 1.0, %v3143_v35  ;;  %2583 = vst [vmem:[%s3663_s17 + $0x468] sm:$0xff] %v2327_v13  ;;  %v1564_v43 = vmul.f32 0.5, %v4712_v51  ;;  %v1057_v29 = vadd.f32 0.7978846, %v801_v28  ;;  %v547_v7 = vmul.f32 %v4769_v34, %v4769_v34 }
 0x163   : > { %v802_v23 = vmul.f32 0.035677407, %v546_v32  ;;  %v3145_v20 = vpop.eup %3144  ;;  %2584 = vst [vmem:[%s3663_s17 + $0x470] sm:$0xff] %v2328_v57  ;;  %v1565_v55 = vmul.f32 0.5, %v4720_v52  ;;  %v1312_v4 = vmul.f32 %v1056_v47, %v4749_v39  ;;  %v548_v62 = vmul.f32 %v4777_v21, %v4777_v21 }
 0x164   : > { %v2329_v3 = vmul.f32 %v2073_v27, %v1561_v5  ;;  %v2074_v24 = vadd.f32 1.0, %v3145_v20  ;;  %v1313_v51 = vmul.f32 %v1057_v29, %v4752_v33  ;;  %v803_v26 = vmul.f32 0.035677407, %v547_v7 }
 0x165   : > { %v1058_v10 = vadd.f32 0.7978846, %v802_v23  ;;  %v3147_v48 = vpop.eup %3146  ;;  %v1566_v44 = vmul.f32 0.5, %v4728_v37  ;;  %3156 = vtanh.f32 %v1312_v4  ;;  %v804_v52 = vmul.f32 0.035677407, %v548_v62  ;;  %v4803_v37 = vld [vmem:[%s3591_s30 + $0x4e8] sm:$0xff] }
 0x166   : > { %2585 = vst [vmem:[%s3663_s17 + $0x478] sm:$0xff] %v2329_v3  ;;  %v549_v6 = vmul.f32 %v4784_v0, %v4784_v0  ;;  %v3149_v31 = vpop.eup %3148  ;;  %v2330_v41 = vmul.f32 %v2074_v24, %v1562_v49  ;;  %v2075_v53 = vadd.f32 1.0, %v3147_v48  ;;  %3158 = vtanh.f32 %v1313_v51  ;;  %v4824_v49 = vld [vmem:[%s3591_s30 + $0x500] sm:$0xff]  ;;  %v4843_v51 = vld [vmem:[%s3591_s30 + $0x510] sm:$0xff] }
 0x167   : > { %v1314_v16 = vmul.f32 %v1058_v10, %v4764_v14  ;;  %v2076_v18 = vadd.f32 1.0, %v3149_v31  ;;  %v1059_v54 = vadd.f32 0.7978846, %v803_v26  ;;  %v1060_v36 = vadd.f32 0.7978846, %v804_v52  ;;  %v4849_v52 = vld [vmem:[%s3591_s30 + $0x518] sm:$0xff] }
 0x168   : > { %v550_v17 = vmul.f32 %v4793_v56, %v4793_v56  ;;  %v3151_v15 = vpop.eup %3150  ;;  %2586 = vst [vmem:[%s3663_s17 + $0x480] sm:$0xff] %v2330_v41  ;;  %v2331_v42 = vmul.f32 %v2075_v53, %v1563_v58  ;;  %v1567_v63 = vmul.f32 0.5, %v4731_v9  ;;  %v805_v46 = vmul.f32 0.035677407, %v549_v6 }
 0x169   : > { %3160 = vtanh.f32 %v1314_v16  ;;  %v2332_v1 = vmul.f32 %v2076_v18, %v1564_v43  ;;  %v2077_v30 = vadd.f32 1.0, %v3151_v15  ;;  %v1315_v59 = vmul.f32 %v1059_v54, %v4769_v34 }
 0x16a   : > { %v1316_v25 = vmul.f32 %v1060_v36, %v4777_v21  ;;  %v3153_v11 = vpop.eup %3152  ;;  %2587 = vst [vmem:[%s3663_s17 + $0x488] sm:$0xff] %v2331_v42  ;;  %v1568_v60 = vmul.f32 0.5, %v4749_v39  ;;  %v1061_v38 = vadd.f32 0.7978846, %v805_v46  ;;  %v806_v5 = vmul.f32 0.035677407, %v550_v17 }
 0x16b   : > { %v551_v9 = vmul.f32 %v4803_v37, %v4803_v37  ;;  %v3155_v8 = vpop.eup %3154  ;;  %2588 = vst [vmem:[%s3663_s17 + $0x490] sm:$0xff] %v2332_v1  ;;  %v2333_v50 = vmul.f32 %v2077_v30, %v1565_v55  ;;  %v2078_v45 = vadd.f32 1.0, %v3153_v11  ;;  %3162 = vtanh.f32 %v1315_v59  ;;  %v4861_v42 = vld [vmem:[%s3591_s30 + $0x520] sm:$0xff]  ;;  %v4866_v11 = vld [vmem:[%s3591_s30 + $0x528] sm:$0xff] }
 0x16c   : > { %v552_v22 = vmul.f32 %v4808_v40, %v4808_v40  ;;  %v2079_v19 = vadd.f32 1.0, %v3155_v8  ;;  %3164 = vtanh.f32 %v1316_v25  ;;  %v1317_v39 = vmul.f32 %v1061_v38, %v4784_v0 }
 0x16d   : > { %v1062_v61 = vadd.f32 0.7978846, %v806_v5  ;;  %2589 = vst [vmem:[%s3663_s17 + $0x498] sm:$0xff] %v2333_v50  ;;  %v2334_v2 = vmul.f32 %v2078_v45, %v1566_v44  ;;  %v1569_v28 = vmul.f32 0.5, %v4752_v33  ;;  %v807_v35 = vmul.f32 0.035677407, %v551_v9 }
 0x16e   : > { %v808_v13 = vmul.f32 0.035677407, %v552_v22  ;;  %v2335_v58 = vmul.f32 %v2079_v19, %v1567_v63  ;;  %3166 = vtanh.f32 %v1317_v39  ;;  %v553_v57 = vmul.f32 %v4820_v12, %v4820_v12  ;;  %v4836_v33 = vld [vmem:[%s3591_s30 + $0x508] sm:$0xff] }
 0x16f   : > { %v1318_v32 = vmul.f32 %v1062_v61, %v4793_v56  ;;  %v3157_v27 = vpop.eup %3156  ;;  %2590 = vst [vmem:[%s3663_s17 + $0x4a0] sm:$0xff] %v2334_v2  ;;  %v1570_v47 = vmul.f32 0.5, %v4764_v14  ;;  %v1063_v43 = vadd.f32 0.7978846, %v807_v35  ;;  %v554_v23 = vmul.f32 %v4824_v49, %v4824_v49  ;;  %v4880_v35 = vld [vmem:[%s3591_s30 + $0x538] sm:$0xff] }
 0x170   : > { %v1064_v29 = vadd.f32 0.7978846, %v808_v13  ;;  %v3159_v7 = vpop.eup %3158  ;;  %2591 = vst [vmem:[%s3663_s17 + $0x4a8] sm:$0xff] %v2335_v58  ;;  %v2080_v20 = vadd.f32 1.0, %v3157_v27  ;;  %v1571_v3 = vmul.f32 0.5, %v4769_v34  ;;  %v1572_v48 = vmul.f32 0.5, %v4777_v21 }
 0x171   : > { %3168 = vtanh.f32 %v1318_v32  ;;  %v809_v55 = vmul.f32 0.035677407, %v553_v57  ;;  %v2081_v4 = vadd.f32 1.0, %v3159_v7  ;;  %v1319_v62 = vmul.f32 %v1063_v43, %v4803_v37  ;;  %v4888_v43 = vld [vmem:[%s3591_s30 + $0x540] sm:$0xff] }
 0x172   : > { %v1320_v14 = vmul.f32 %v1064_v29, %v4808_v40  ;;  %v810_v24 = vmul.f32 0.035677407, %v554_v23  ;;  %v2336_v26 = vmul.f32 %v2080_v20, %v1568_v60  ;;  %v555_v34 = vmul.f32 %v4836_v33, %v4836_v33 }
 0x173   : > { %v3161_v10 = vpop.eup %3160  ;;  %v1065_v44 = vadd.f32 0.7978846, %v809_v55  ;;  %v2337_v6 = vmul.f32 %v2081_v4, %v1569_v28  ;;  %3170 = vtanh.f32 %v1319_v62  ;;  %v556_v21 = vmul.f32 %v4843_v51, %v4843_v51 }
 0x174   : > { %v2082_v31 = vadd.f32 1.0, %v3161_v10  ;;  %v1066_v41 = vadd.f32 0.7978846, %v810_v24  ;;  %2592 = vst [vmem:[%s3663_s17 + $0x4b0] sm:$0xff] %v2336_v26  ;;  %3172 = vtanh.f32 %v1320_v14  ;;  %v811_v16 = vmul.f32 0.035677407, %v555_v34 }
 0x175   : > { %v1321_v53 = vmul.f32 %v1065_v44, %v4820_v12  ;;  %v3163_v18 = vpop.eup %3162  ;;  %2593 = vst [vmem:[%s3663_s17 + $0x4b8] sm:$0xff] %v2337_v6  ;;  %v1573_v36 = vmul.f32 0.5, %v4784_v0  ;;  %v557_v15 = vmul.f32 %v4849_v52, %v4849_v52  ;;  %v812_v30 = vmul.f32 0.035677407, %v556_v21  ;;  %v4901_v6 = vld [vmem:[%s3591_s30 + $0x548] sm:$0xff] }
 0x176   : > { %v2338_v54 = vmul.f32 %v2082_v31, %v1570_v47  ;;  %v1322_v17 = vmul.f32 %v1066_v41, %v4824_v49  ;;  %v3165_v63 = vpop.eup %3164  ;;  %v2083_v46 = vadd.f32 1.0, %v3163_v18  ;;  %v1067_v1 = vadd.f32 0.7978846, %v811_v16 }
 0x177   : > { %3174 = vtanh.f32 %v1321_v53  ;;  %v2084_v59 = vadd.f32 1.0, %v3165_v63  ;;  %v1574_v25 = vmul.f32 0.5, %v4793_v56  ;;  %v813_v0 = vmul.f32 0.035677407, %v557_v15  ;;  %v4873_v56 = vld [vmem:[%s3591_s30 + $0x530] sm:$0xff] }
 0x178   : > { %2594 = vst [vmem:[%s3663_s17 + $0x4c0] sm:$0xff] %v2338_v54  ;;  %3176 = vtanh.f32 %v1322_v17  ;;  %v3167_v60 = vpop.eup %3166  ;;  %v2339_v38 = vmul.f32 %v2083_v46, %v1571_v3  ;;  %v1323_v5 = vmul.f32 %v1067_v1, %v4836_v33  ;;  %v1068_v9 = vadd.f32 0.7978846, %v812_v30  ;;  %v4914_v1 = vld [vmem:[%s3591_s30 + $0x558] sm:$0xff] }
 0x179   : > { %v558_v8 = vmul.f32 %v4861_v42, %v4861_v42  ;;  %v2340_v50 = vmul.f32 %v2084_v59, %v1572_v48  ;;  %v2085_v45 = vadd.f32 1.0, %v3167_v60  ;;  %v1575_v22 = vmul.f32 0.5, %v4803_v37 }
 0x17a   : > { %v1069_v19 = vadd.f32 0.7978846, %v813_v0  ;;  %2595 = vst [vmem:[%s3663_s17 + $0x4c8] sm:$0xff] %v2339_v38  ;;  %3178 = vtanh.f32 %v1323_v5  ;;  %v1324_v61 = vmul.f32 %v1068_v9, %v4843_v51  ;;  %v559_v28 = vmul.f32 %v4866_v11, %v4866_v11  ;;  %v4922_v5 = vld [vmem:[%s3591_s30 + $0x560] sm:$0xff] }
 0x17b   : > { %v3169_v39 = vpop.eup %3168  ;;  %v814_v2 = vmul.f32 0.035677407, %v558_v8  ;;  %2596 = vst [vmem:[%s3663_s17 + $0x4d0] sm:$0xff] %v2340_v50  ;;  %v2341_v13 = vmul.f32 %v2085_v45, %v1573_v36  ;;  %v1576_v37 = vmul.f32 0.5, %v4808_v40  ;;  %v560_v47 = vmul.f32 %v4873_v56, %v4873_v56 }
 0x17c   : > { %v2086_v58 = vadd.f32 1.0, %v3169_v39  ;;  %v1325_v32 = vmul.f32 %v1069_v19, %v4849_v52  ;;  %3180 = vtanh.f32 %v1324_v61  ;;  %v815_v27 = vmul.f32 0.035677407, %v559_v28 }
 0x17d   : > { %v1070_v57 = vadd.f32 0.7978846, %v814_v2  ;;  %v3171_v29 = vpop.eup %3170  ;;  %2597 = vst [vmem:[%s3663_s17 + $0x4d8] sm:$0xff] %v2341_v13  ;;  %v1577_v7 = vmul.f32 0.5, %v4820_v12  ;;  %v561_v40 = vmul.f32 %v4880_v35, %v4880_v35  ;;  %v816_v62 = vmul.f32 0.035677407, %v560_v47 }
 0x17e   : > { %v2342_v23 = vmul.f32 %v2086_v58, %v1574_v25  ;;  %3182 = vtanh.f32 %v1325_v32  ;;  %v3173_v20 = vpop.eup %3172  ;;  %v2087_v3 = vadd.f32 1.0, %v3171_v29  ;;  %v1071_v4 = vadd.f32 0.7978846, %v815_v27  ;;  %v4940_v27 = vld [vmem:[%s3591_s30 + $0x570] sm:$0xff] }
 0x17f   : > { %v1326_v55 = vmul.f32 %v1070_v57, %v4861_v42  ;;  %v2088_v14 = vadd.f32 1.0, %v3173_v20  ;;  %v1578_v24 = vmul.f32 0.5, %v4824_v49  ;;  %v817_v10 = vmul.f32 0.035677407, %v561_v40  ;;  %v4904_v49 = vld [vmem:[%s3591_s30 + $0x550] sm:$0xff] }
 0x180   : > { %2598 = vst [vmem:[%s3663_s17 + $0x4e0] sm:$0xff] %v2342_v23  ;;  %v562_v12 = vmul.f32 %v4888_v43, %v4888_v43  ;;  %v2343_v48 = vmul.f32 %v2087_v3, %v1575_v22  ;;  %v1327_v44 = vmul.f32 %v1071_v4, %v4866_v11  ;;  %v1072_v34 = vadd.f32 0.7978846, %v816_v62  ;;  %v4930_v22 = vld [vmem:[%s3591_s30 + $0x568] sm:$0xff] }
 0x181   : > { %v3175_v26 = vpop.eup %3174  ;;  %3184 = vtanh.f32 %v1326_v55  ;;  %v2344_v41 = vmul.f32 %v2088_v14, %v1576_v37  ;;  %v1073_v16 = vadd.f32 0.7978846, %v817_v10  ;;  %v1579_v54 = vmul.f32 0.5, %v4836_v33  ;;  %v4946_v55 = vld [vmem:[%s3591_s30 + $0x578] sm:$0xff] }
 0x182   : > { %v3177_v31 = vpop.eup %3176  ;;  %v2089_v53 = vadd.f32 1.0, %v3175_v26  ;;  %v818_v21 = vmul.f32 0.035677407, %v562_v12  ;;  %2599 = vst [vmem:[%s3663_s17 + $0x4e8] sm:$0xff] %v2343_v48  ;;  %3186 = vtanh.f32 %v1327_v44  ;;  %v1328_v36 = vmul.f32 %v1072_v34, %v4873_v56 }
 0x183   : > { %v2090_v18 = vadd.f32 1.0, %v3177_v31  ;;  %2600 = vst [vmem:[%s3663_s17 + $0x4f0] sm:$0xff] %v2344_v41  ;;  %v1329_v15 = vmul.f32 %v1073_v16, %v4880_v35  ;;  %v563_v46 = vmul.f32 %v4901_v6, %v4901_v6  ;;  %v1580_v33 = vmul.f32 0.5, %v4843_v51  ;;  %v4957_v41 = vld [vmem:[%s3591_s30 + $0x580] sm:$0xff] }
 0x184   : > { %v2345_v17 = vmul.f32 %v2089_v53, %v1577_v7  ;;  %v1074_v63 = vadd.f32 0.7978846, %v818_v21  ;;  %v3179_v30 = vpop.eup %3178  ;;  %3188 = vtanh.f32 %v1328_v36  ;;  %v564_v25 = vmul.f32 %v4904_v49, %v4904_v49 }
 0x185   : > { %v2346_v59 = vmul.f32 %v2090_v18, %v1578_v24  ;;  %v2091_v0 = vadd.f32 1.0, %v3179_v30  ;;  %3190 = vtanh.f32 %v1329_v15  ;;  %v819_v38 = vmul.f32 0.035677407, %v563_v46 }
 0x186   : > { %2601 = vst [vmem:[%s3663_s17 + $0x4f8] sm:$0xff] %v2345_v17  ;;  %v1330_v60 = vmul.f32 %v1074_v63, %v4888_v43  ;;  %v3181_v9 = vpop.eup %3180  ;;  %v1581_v8 = vmul.f32 0.5, %v4849_v52  ;;  %v1582_v50 = vmul.f32 0.5, %v4861_v42  ;;  %v820_v51 = vmul.f32 0.035677407, %v564_v25  ;;  %v4966_v63 = vld [vmem:[%s3591_s30 + $0x590] sm:$0xff] }
 0x187   : > { %2602 = vst [vmem:[%s3663_s17 + $0x500] sm:$0xff] %v2346_v59  ;;  %v565_v45 = vmul.f32 %v4914_v1, %v4914_v1  ;;  %v2347_v39 = vmul.f32 %v2091_v0, %v1579_v54  ;;  %v2092_v61 = vadd.f32 1.0, %v3181_v9  ;;  %v1075_v2 = vadd.f32 0.7978846, %v819_v38  ;;  %v4963_v54 = vld [vmem:[%s3591_s30 + $0x588] sm:$0xff]  ;;  %v4974_v38 = vld [vmem:[%s3591_s30 + $0x598] sm:$0xff] }
 0x188   : > { %v3183_v19 = vpop.eup %3182  ;;  %3192 = vtanh.f32 %v1330_v60  ;;  %v1076_v13 = vadd.f32 0.7978846, %v820_v51  ;;  %v566_v52 = vmul.f32 %v4922_v5, %v4922_v5  ;;  %v1583_v37 = vmul.f32 0.5, %v4866_v11  ;;  %v4983_v51 = vld [vmem:[%s3591_s30 + $0x5a0] sm:$0xff] }
 0x189   : > { %v2093_v28 = vadd.f32 1.0, %v3183_v19  ;;  %v821_v58 = vmul.f32 0.035677407, %v565_v45  ;;  %2603 = vst [vmem:[%s3663_s17 + $0x508] sm:$0xff] %v2347_v39  ;;  %v2348_v42 = vmul.f32 %v2092_v61, %v1580_v33  ;;  %v1331_v32 = vmul.f32 %v1075_v2, %v4901_v6 }
 0x18a   : > { %v567_v57 = vmul.f32 %v4930_v22, %v4930_v22  ;;  %v1332_v23 = vmul.f32 %v1076_v13, %v4904_v49  ;;  %v822_v40 = vmul.f32 0.035677407, %v566_v52  ;;  %v1584_v3 = vmul.f32 0.5, %v4873_v56 }
 0x18b   : > { %v3185_v47 = vpop.eup %3184  ;;  %v2349_v29 = vmul.f32 %v2093_v28, %v1581_v8  ;;  %v1077_v7 = vadd.f32 0.7978846, %v821_v58  ;;  %2604 = vst [vmem:[%s3663_s17 + $0x510] sm:$0xff] %v2348_v42  ;;  %3194 = vtanh.f32 %v1331_v32  ;;  %v568_v24 = vmul.f32 %v4940_v27, %v4940_v27 }
 0x18c   : > { %v2094_v20 = vadd.f32 1.0, %v3185_v47  ;;  %v823_v11 = vmul.f32 0.035677407, %v567_v57  ;;  %v3187_v4 = vpop.eup %3186  ;;  %3196 = vtanh.f32 %v1332_v23  ;;  %v1078_v14 = vadd.f32 0.7978846, %v822_v40 }
 0x18d   : > { %2605 = vst [vmem:[%s3663_s17 + $0x518] sm:$0xff] %v2349_v29  ;;  %v1333_v62 = vmul.f32 %v1077_v7, %v4914_v1  ;;  %v2095_v12 = vadd.f32 1.0, %v3187_v4  ;;  %v1585_v56 = vmul.f32 0.5, %v4880_v35  ;;  %v824_v34 = vmul.f32 0.035677407, %v568_v24  ;;  %v4996_v29 = vld [vmem:[%s3591_s30 + $0x5a8] sm:$0xff] }
 0x18e   : > { %v2350_v10 = vmul.f32 %v2094_v20, %v1582_v50  ;;  %v1079_v26 = vadd.f32 0.7978846, %v823_v11  ;;  %v3189_v48 = vpop.eup %3188  ;;  %v1334_v44 = vmul.f32 %v1078_v14, %v4922_v5  ;;  %v569_v31 = vmul.f32 %v4946_v55, %v4946_v55 }
 0x18f   : > { %3198 = vtanh.f32 %v1333_v62  ;;  %v3191_v53 = vpop.eup %3190  ;;  %v2351_v16 = vmul.f32 %v2095_v12, %v1583_v37  ;;  %v2096_v21 = vadd.f32 1.0, %v3189_v48  ;;  %v1586_v18 = vmul.f32 0.5, %v4888_v43 }
 0x190   : > { %2606 = vst [vmem:[%s3663_s17 + $0x520] sm:$0xff] %v2350_v10  ;;  %v1335_v35 = vmul.f32 %v1079_v26, %v4930_v22  ;;  %v2097_v36 = vadd.f32 1.0, %v3191_v53  ;;  %3200 = vtanh.f32 %v1334_v44  ;;  %v1080_v17 = vadd.f32 0.7978846, %v824_v34  ;;  %v5010_v34 = vld [vmem:[%s3591_s30 + $0x5b8] sm:$0xff] }
 0x191   : > { %v825_v15 = vmul.f32 0.035677407, %v569_v31  ;;  %2607 = vst [vmem:[%s3663_s17 + $0x528] sm:$0xff] %v2351_v16  ;;  %v2352_v30 = vmul.f32 %v2096_v21, %v1584_v3  ;;  %v1587_v59 = vmul.f32 0.5, %v4901_v6  ;;  %v570_v43 = vmul.f32 %v4957_v41, %v4957_v41 }
 0x192   : > { %v3193_v46 = vpop.eup %3192  ;;  %3202 = vtanh.f32 %v1335_v35  ;;  %v2353_v33 = vmul.f32 %v2097_v36, %v1585_v56  ;;  %v1336_v0 = vmul.f32 %v1080_v17, %v4940_v27  ;;  %v1588_v9 = vmul.f32 0.5, %v4904_v49  ;;  %v5005_v56 = vld [vmem:[%s3591_s30 + $0x5b0] sm:$0xff]  ;;  %v5019_v36 = vld [vmem:[%s3591_s30 + $0x5c0] sm:$0xff]  ;;  %v5022_v17 = vld [vmem:[%s3591_s30 + $0x5c8] sm:$0xff] }
 0x193   : > { %v2098_v25 = vadd.f32 1.0, %v3193_v46  ;;  %v1081_v60 = vadd.f32 0.7978846, %v825_v15  ;;  %2608 = vst [vmem:[%s3663_s17 + $0x530] sm:$0xff] %v2352_v30  ;;  %v826_v8 = vmul.f32 0.035677407, %v570_v43  ;;  %v571_v50 = vmul.f32 %v4963_v54, %v4963_v54 }
 0x194   : > { %v572_v6 = vmul.f32 %v4966_v63, %v4966_v63  ;;  %2609 = vst [vmem:[%s3663_s17 + $0x538] sm:$0xff] %v2353_v33  ;;  %v1589_v19 = vmul.f32 0.5, %v4914_v1  ;;  %3204 = vtanh.f32 %v1336_v0  ;;  %v573_v13 = vmul.f32 %v4974_v38, %v4974_v38 }
 0x195   : > { %v2354_v45 = vmul.f32 %v2098_v25, %v1586_v18  ;;  %v1337_v39 = vmul.f32 %v1081_v60, %v4946_v55  ;;  %v3195_v61 = vpop.eup %3194  ;;  %v1082_v49 = vadd.f32 0.7978846, %v826_v8  ;;  %v827_v2 = vmul.f32 0.035677407, %v571_v50  ;;  %v5029_v25 = vld [vmem:[%s3591_s30 + $0x5d0] sm:$0xff] }
 0x196   : > { %v828_v28 = vmul.f32 0.035677407, %v572_v6  ;;  %v3197_v58 = vpop.eup %3196  ;;  %v2099_v52 = vadd.f32 1.0, %v3195_v61  ;;  %v1590_v42 = vmul.f32 0.5, %v4922_v5  ;;  %v574_v1 = vmul.f32 %v4983_v51, %v4983_v51 }
 0x197   : > { %2610 = vst [vmem:[%s3663_s17 + $0x540] sm:$0xff] %v2354_v45  ;;  %3206 = vtanh.f32 %v1337_v39  ;;  %v2100_v37 = vadd.f32 1.0, %v3197_v58  ;;  %v1338_v32 = vmul.f32 %v1082_v49, %v4957_v41  ;;  %v1083_v57 = vadd.f32 0.7978846, %v827_v2  ;;  %v5039_v39 = vld [vmem:[%s3591_s30 + $0x5d8] sm:$0xff] }
 0x198   : > { %v1084_v47 = vadd.f32 0.7978846, %v828_v28  ;;  %v2355_v7 = vmul.f32 %v2099_v52, %v1587_v59  ;;  %v1591_v40 = vmul.f32 0.5, %v4930_v22  ;;  %v829_v20 = vmul.f32 0.035677407, %v573_v13 }
 0x199   : > { %v3199_v23 = vpop.eup %3198  ;;  %v830_v5 = vmul.f32 0.035677407, %v574_v1  ;;  %v2356_v3 = vmul.f32 %v2100_v37, %v1588_v9  ;;  %3208 = vtanh.f32 %v1338_v32  ;;  %v1339_v4 = vmul.f32 %v1083_v57, %v4963_v54 }
 0x19a   : > { %v2101_v11 = vadd.f32 1.0, %v3199_v23  ;;  %v3201_v62 = vpop.eup %3200  ;;  %2611 = vst [vmem:[%s3663_s17 + $0x548] sm:$0xff] %v2355_v7  ;;  %v1340_v14 = vmul.f32 %v1084_v47, %v4966_v63  ;;  %v1085_v24 = vadd.f32 0.7978846, %v829_v20  ;;  %v575_v12 = vmul.f32 %v4996_v29, %v4996_v29 }
 0x19b   : > { %v1086_v10 = vadd.f32 0.7978846, %v830_v5  ;;  %2612 = vst [vmem:[%s3663_s17 + $0x550] sm:$0xff] %v2356_v3  ;;  %v2102_v48 = vadd.f32 1.0, %v3201_v62  ;;  %v1592_v44 = vmul.f32 0.5, %v4940_v27  ;;  %3210 = vtanh.f32 %v1339_v4 }
 0x19c   : > { %v3203_v22 = vpop.eup %3202  ;;  %v2357_v26 = vmul.f32 %v2101_v11, %v1589_v19  ;;  %3212 = vtanh.f32 %v1340_v14  ;;  %v1341_v53 = vmul.f32 %v1085_v24, %v4974_v38  ;;  %v1593_v18 = vmul.f32 0.5, %v4946_v55 }
 0x19d   : > { %v2103_v31 = vadd.f32 1.0, %v3203_v22  ;;  %v1342_v16 = vmul.f32 %v1086_v10, %v4983_v51  ;;  %v2358_v21 = vmul.f32 %v2102_v48, %v1590_v42  ;;  %v831_v35 = vmul.f32 0.035677407, %v575_v12  ;;  %v5061_v22 = vld [vmem:[%s3591_s30 + $0x5e8] sm:$0xff] }
 0x19e   : > { %2613 = vst [vmem:[%s3663_s17 + $0x558] sm:$0xff] %v2357_v26  ;;  %v576_v27 = vmul.f32 %v5005_v56, %v5005_v56  ;;  %v3205_v15 = vpop.eup %3204  ;;  %v1594_v30 = vmul.f32 0.5, %v4957_v41  ;;  %3214 = vtanh.f32 %v1341_v53  ;;  %v577_v59 = vmul.f32 %v5010_v34, %v5010_v34  ;;  %v5065_v53 = vld [vmem:[%s3591_s30 + $0x5f0] sm:$0xff] }
 0x19f   : > { %v2359_v46 = vmul.f32 %v2103_v31, %v1591_v40  ;;  %2614 = vst [vmem:[%s3663_s17 + $0x560] sm:$0xff] %v2358_v21  ;;  %v2104_v55 = vadd.f32 1.0, %v3205_v15  ;;  %3216 = vtanh.f32 %v1342_v16  ;;  %v1087_v43 = vadd.f32 0.7978846, %v831_v35  ;;  %v5052_v40 = vld [vmem:[%s3591_s30 + $0x5e0] sm:$0xff]  ;;  %v5068_v16 = vld [vmem:[%s3591_s30 + $0x5f8] sm:$0xff] }
 0x1a0   : > { %v832_v33 = vmul.f32 0.035677407, %v576_v27  ;;  %v1595_v60 = vmul.f32 0.5, %v4963_v54  ;;  %v833_v9 = vmul.f32 0.035677407, %v577_v59  ;;  %v578_v41 = vmul.f32 %v5019_v36, %v5019_v36 }
 0x1a1   : > { %v3207_v0 = vpop.eup %3206  ;;  %2615 = vst [vmem:[%s3663_s17 + $0x568] sm:$0xff] %v2359_v46  ;;  %v579_v8 = vmul.f32 %v5022_v17, %v5022_v17  ;;  %v2360_v50 = vmul.f32 %v2104_v55, %v1592_v44  ;;  %v1343_v45 = vmul.f32 %v1087_v43, %v4996_v29  ;;  %v580_v54 = vmul.f32 %v5029_v25, %v5029_v25 }
 0x1a2   : > { %v2105_v6 = vadd.f32 1.0, %v3207_v0  ;;  %v1088_v19 = vadd.f32 0.7978846, %v832_v33  ;;  %v1089_v61 = vadd.f32 0.7978846, %v833_v9  ;;  %v1596_v58 = vmul.f32 0.5, %v4966_v63 }
 0x1a3   : > { %v834_v49 = vmul.f32 0.035677407, %v578_v41  ;;  %v835_v2 = vmul.f32 0.035677407, %v579_v8  ;;  %v3209_v28 = vpop.eup %3208  ;;  %2616 = vst [vmem:[%s3663_s17 + $0x570] sm:$0xff] %v2360_v50  ;;  %3218 = vtanh.f32 %v1343_v45  ;;  %v1597_v47 = vmul.f32 0.5, %v4974_v38 }
 0x1a4   : > { %v2361_v13 = vmul.f32 %v2105_v6, %v1593_v18  ;;  %v1344_v52 = vmul.f32 %v1088_v19, %v5005_v56  ;;  %v2106_v42 = vadd.f32 1.0, %v3209_v28  ;;  %v1345_v1 = vmul.f32 %v1089_v61, %v5010_v34  ;;  %v5080_v33 = vld [vmem:[%s3591_s30 + $0x600] sm:$0xff] }
 0x1a5   : > { %v1090_v37 = vadd.f32 0.7978846, %v834_v49  ;;  %v1091_v32 = vadd.f32 0.7978846, %v835_v2  ;;  %v3211_v57 = vpop.eup %3210  ;;  %v836_v23 = vmul.f32 0.035677407, %v580_v54  ;;  %v581_v7 = vmul.f32 %v5039_v39, %v5039_v39 }
 0x1a6   : > { %2617 = vst [vmem:[%s3663_s17 + $0x578] sm:$0xff] %v2361_v13  ;;  %3220 = vtanh.f32 %v1344_v52  ;;  %v3213_v63 = vpop.eup %3212  ;;  %v2362_v20 = vmul.f32 %v2106_v42, %v1594_v30  ;;  %v2107_v5 = vadd.f32 1.0, %v3211_v57  ;;  %v1598_v10 = vmul.f32 0.5, %v4983_v51 }
 0x1a7   : > { %3222 = vtanh.f32 %v1345_v1  ;;  %v1346_v3 = vmul.f32 %v1090_v37, %v5019_v36  ;;  %v2108_v11 = vadd.f32 1.0, %v3213_v63  ;;  %v1347_v4 = vmul.f32 %v1091_v32, %v5022_v17 }
 0x1a8   : > { %v1092_v38 = vadd.f32 0.7978846, %v836_v23  ;;  %v837_v62 = vmul.f32 0.035677407, %v581_v7  ;;  %v3215_v14 = vpop.eup %3214  ;;  %2618 = vst [vmem:[%s3663_s17 + $0x580] sm:$0xff] %v2362_v20  ;;  %v2363_v24 = vmul.f32 %v2107_v5, %v1595_v60  ;;  %v582_v12 = vmul.f32 %v5052_v40, %v5052_v40  ;;  %v5106_v5 = vld [vmem:[%s3591_s30 + $0x618] sm:$0xff] }
 0x1a9   : > { %3224 = vtanh.f32 %v1346_v3  ;;  %v3217_v26 = vpop.eup %3216  ;;  %v2364_v48 = vmul.f32 %v2108_v11, %v1596_v58  ;;  %v2109_v44 = vadd.f32 1.0, %v3215_v14  ;;  %v1599_v21 = vmul.f32 0.5, %v4996_v29 }
 0x1aa   : > { %3226 = vtanh.f32 %v1347_v4  ;;  %v1348_v31 = vmul.f32 %v1092_v38, %v5029_v25  ;;  %2619 = vst [vmem:[%s3663_s17 + $0x588] sm:$0xff] %v2363_v24  ;;  %v2110_v51 = vadd.f32 1.0, %v3217_v26  ;;  %v1093_v18 = vadd.f32 0.7978846, %v837_v62  ;;  %v5110_v4 = vld [vmem:[%s3591_s30 + $0x620] sm:$0xff] }
 0x1ab   : > { %v838_v35 = vmul.f32 0.035677407, %v582_v12  ;;  %2620 = vst [vmem:[%s3663_s17 + $0x590] sm:$0xff] %v2364_v48  ;;  %v2365_v27 = vmul.f32 %v2109_v44, %v1597_v47  ;;  %v1600_v15 = vmul.f32 0.5, %v5005_v56  ;;  %v583_v46 = vmul.f32 %v5061_v22, %v5061_v22  ;;  %v5102_v47 = vld [vmem:[%s3591_s30 + $0x610] sm:$0xff]  ;;  %v5118_v44 = vld [vmem:[%s3591_s30 + $0x628] sm:$0xff] }
 0x1ac   : > { %3228 = vtanh.f32 %v1348_v31  ;;  %v2366_v30 = vmul.f32 %v2110_v51, %v1598_v10  ;;  %v1349_v59 = vmul.f32 %v1093_v18, %v5039_v39  ;;  %v584_v43 = vmul.f32 %v5065_v53, %v5065_v53  ;;  %v5127_v18 = vld [vmem:[%s3591_s30 + $0x630] sm:$0xff] }
 0x1ad   : > { %v1094_v55 = vadd.f32 0.7978846, %v838_v35  ;;  %v3219_v29 = vpop.eup %3218  ;;  %2621 = vst [vmem:[%s3663_s17 + $0x598] sm:$0xff] %v2365_v27  ;;  %v1601_v0 = vmul.f32 0.5, %v5010_v34  ;;  %v1602_v56 = vmul.f32 0.5, %v5019_v36  ;;  %v585_v9 = vmul.f32 %v5068_v16, %v5068_v16  ;;  %v5093_v36 = vld [vmem:[%s3591_s30 + $0x608] sm:$0xff] }
 0x1ae   : > { %v839_v60 = vmul.f32 0.035677407, %v583_v46  ;;  %2622 = vst [vmem:[%s3663_s17 + $0x5a0] sm:$0xff] %v2366_v30  ;;  %v2111_v41 = vadd.f32 1.0, %v3219_v29  ;;  %3230 = vtanh.f32 %v1349_v59  ;;  %v840_v50 = vmul.f32 0.035677407, %v584_v43 }
 0x1af   : > { %v1350_v8 = vmul.f32 %v1094_v55, %v5052_v40  ;;  %v1603_v45 = vmul.f32 0.5, %v5022_v17  ;;  %v841_v61 = vmul.f32 0.035677407, %v585_v9  ;;  %v586_v34 = vmul.f32 %v5080_v33, %v5080_v33  ;;  %v5135_v43 = vld [vmem:[%s3591_s30 + $0x638] sm:$0xff] }
 0x1b0   : > { %v3221_v6 = vpop.eup %3220  ;;  %v1095_v19 = vadd.f32 0.7978846, %v839_v60  ;;  %v2367_v2 = vmul.f32 %v2111_v41, %v1599_v21  ;;  %v1096_v28 = vadd.f32 0.7978846, %v840_v50  ;;  %v1604_v37 = vmul.f32 0.5, %v5029_v25 }
 0x1b1   : > { %v3223_v49 = vpop.eup %3222  ;;  %v2112_v54 = vadd.f32 1.0, %v3221_v6  ;;  %3232 = vtanh.f32 %v1350_v8  ;;  %v1097_v52 = vadd.f32 0.7978846, %v841_v61  ;;  %v842_v17 = vmul.f32 0.035677407, %v586_v34 }
 0x1b2   : > { %v2113_v13 = vadd.f32 1.0, %v3223_v49  ;;  %v1351_v58 = vmul.f32 %v1095_v19, %v5061_v22  ;;  %2623 = vst [vmem:[%s3663_s17 + $0x5a8] sm:$0xff] %v2367_v2  ;;  %v1352_v32 = vmul.f32 %v1096_v28, %v5065_v53  ;;  %v587_v57 = vmul.f32 %v5093_v36, %v5093_v36 }
 0x1b3   : > { %v3225_v42 = vpop.eup %3224  ;;  %v2368_v1 = vmul.f32 %v2112_v54, %v1600_v15  ;;  %v1353_v20 = vmul.f32 %v1097_v52, %v5068_v16  ;;  %v1098_v25 = vadd.f32 0.7978846, %v842_v17  ;;  %v1605_v14 = vmul.f32 0.5, %v5039_v39  ;;  %v5149_v52 = vld [vmem:[%s3591_s30 + $0x640] sm:$0xff] }
 0x1b4   : > { %v3227_v23 = vpop.eup %3226  ;;  %v2369_v7 = vmul.f32 %v2113_v13, %v1601_v0  ;;  %v2114_v63 = vadd.f32 1.0, %v3225_v42  ;;  %3234 = vtanh.f32 %v1351_v58  ;;  %v843_v11 = vmul.f32 0.035677407, %v587_v57 }
 0x1b5   : > { %2624 = vst [vmem:[%s3663_s17 + $0x5b0] sm:$0xff] %v2368_v1  ;;  %v2115_v3 = vadd.f32 1.0, %v3227_v23  ;;  %3236 = vtanh.f32 %v1352_v32  ;;  %v588_v24 = vmul.f32 %v5102_v47, %v5102_v47  ;;  %v1354_v26 = vmul.f32 %v1098_v25, %v5080_v33 }
 0x1b6   : > { %v3229_v38 = vpop.eup %3228  ;;  %2625 = vst [vmem:[%s3663_s17 + $0x5b8] sm:$0xff] %v2369_v7  ;;  %v2370_v62 = vmul.f32 %v2114_v63, %v1602_v56  ;;  %3238 = vtanh.f32 %v1353_v20  ;;  %v1099_v48 = vadd.f32 0.7978846, %v843_v11  ;;  %v1606_v31 = vmul.f32 0.5, %v5052_v40 }
 0x1b7   : > { %v2371_v10 = vmul.f32 %v2115_v3, %v1603_v45  ;;  %v2116_v12 = vadd.f32 1.0, %v3229_v38  ;;  %v844_v51 = vmul.f32 0.035677407, %v588_v24  ;;  %v589_v39 = vmul.f32 %v5106_v5, %v5106_v5 }
 0x1b8   : > { %2626 = vst [vmem:[%s3663_s17 + $0x5c0] sm:$0xff] %v2370_v62  ;;  %v590_v21 = vmul.f32 %v5110_v4, %v5110_v4  ;;  %v3231_v35 = vpop.eup %3230  ;;  %v1607_v15 = vmul.f32 0.5, %v5061_v22  ;;  %3240 = vtanh.f32 %v1354_v26  ;;  %v1355_v46 = vmul.f32 %v1099_v48, %v5093_v36 }
 0x1b9   : > { %2627 = vst [vmem:[%s3663_s17 + $0x5c8] sm:$0xff] %v2371_v10  ;;  %v2372_v27 = vmul.f32 %v2116_v12, %v1604_v37  ;;  %v2117_v30 = vadd.f32 1.0, %v3231_v35  ;;  %v1100_v40 = vadd.f32 0.7978846, %v844_v51  ;;  %v845_v59 = vmul.f32 0.035677407, %v589_v39 }
 0x1ba   : > { %v591_v55 = vmul.f32 %v5118_v44, %v5118_v44  ;;  %v1608_v0 = vmul.f32 0.5, %v5065_v53  ;;  %3242 = vtanh.f32 %v1355_v46  ;;  %v846_v56 = vmul.f32 0.035677407, %v590_v21  ;;  %v5154_v37 = vld [vmem:[%s3591_s30 + $0x648] sm:$0xff]  ;;  %v5170_v12 = vld [vmem:[%s3591_s30 + $0x658] sm:$0xff]  ;;  %v5178_v39 = vld [vmem:[%s3591_s30 + $0x660] sm:$0xff] }
 0x1bb   : > { %v3233_v29 = vpop.eup %3232  ;;  %2628 = vst [vmem:[%s3663_s17 + $0x5d0] sm:$0xff] %v2372_v27  ;;  %v592_v22 = vmul.f32 %v5127_v18, %v5127_v18  ;;  %v2373_v60 = vmul.f32 %v2117_v30, %v1605_v14  ;;  %v1356_v41 = vmul.f32 %v1100_v40, %v5102_v47  ;;  %v1101_v8 = vadd.f32 0.7978846, %v845_v59 }
 0x1bc   : > { %v2118_v9 = vadd.f32 1.0, %v3233_v29  ;;  %v1102_v50 = vadd.f32 0.7978846, %v846_v56  ;;  %v847_v6 = vmul.f32 0.035677407, %v591_v55  ;;  %v593_v19 = vmul.f32 %v5135_v43, %v5135_v43 }
 0x1bd   : > { %v848_v45 = vmul.f32 0.035677407, %v592_v22  ;;  %2629 = vst [vmem:[%s3663_s17 + $0x5d8] sm:$0xff] %v2373_v60  ;;  %v1609_v34 = vmul.f32 0.5, %v5068_v16  ;;  %3244 = vtanh.f32 %v1356_v41  ;;  %v1357_v49 = vmul.f32 %v1101_v8, %v5106_v5 }
 0x1be   : > { %v3235_v61 = vpop.eup %3234  ;;  %v2374_v53 = vmul.f32 %v2118_v9, %v1606_v31  ;;  %v1358_v28 = vmul.f32 %v1102_v50, %v5110_v4  ;;  %v1103_v13 = vadd.f32 0.7978846, %v847_v6  ;;  %v1610_v1 = vmul.f32 0.5, %v5080_v33  ;;  %v5161_v33 = vld [vmem:[%s3591_s30 + $0x650] sm:$0xff] }
 0x1bf   : > { %v3237_v2 = vpop.eup %3236  ;;  %v2119_v54 = vadd.f32 1.0, %v3235_v61  ;;  %v1104_v58 = vadd.f32 0.7978846, %v848_v45  ;;  %3246 = vtanh.f32 %v1357_v49  ;;  %v849_v16 = vmul.f32 0.035677407, %v593_v19  ;;  %v5193_v9 = vld [vmem:[%s3591_s30 + $0x670] sm:$0xff] }
 0x1c0   : > { %v3239_v17 = vpop.eup %3238  ;;  %2630 = vst [vmem:[%s3663_s17 + $0x5e0] sm:$0xff] %v2374_v53  ;;  %v2120_v42 = vadd.f32 1.0, %v3237_v2  ;;  %3248 = vtanh.f32 %v1358_v28  ;;  %v1359_v23 = vmul.f32 %v1103_v13, %v5118_v44  ;;  %v594_v3 = vmul.f32 %v5149_v52, %v5149_v52 }
 0x1c1   : > { %v2375_v32 = vmul.f32 %v2119_v54, %v1607_v15  ;;  %v2121_v57 = vadd.f32 1.0, %v3239_v17  ;;  %v1360_v63 = vmul.f32 %v1104_v58, %v5127_v18  ;;  %v1105_v20 = vadd.f32 0.7978846, %v849_v16  ;;  %v5208_v17 = vld [vmem:[%s3591_s30 + $0x680] sm:$0xff] }
 0x1c2   : > { %v2376_v7 = vmul.f32 %v2120_v42, %v1608_v0  ;;  %v3241_v25 = vpop.eup %3240  ;;  %v1611_v38 = vmul.f32 0.5, %v5093_v36  ;;  %3250 = vtanh.f32 %v1359_v23  ;;  %v595_v62 = vmul.f32 %v5154_v37, %v5154_v37 }
 0x1c3   : > { %2631 = vst [vmem:[%s3663_s17 + $0x5e8] sm:$0xff] %v2375_v32  ;;  %v2377_v11 = vmul.f32 %v2121_v57, %v1609_v34  ;;  %v2122_v14 = vadd.f32 1.0, %v3241_v25  ;;  %3252 = vtanh.f32 %v1360_v63  ;;  %v1361_v24 = vmul.f32 %v1105_v20, %v5135_v43  ;;  %v5216_v20 = vld [vmem:[%s3591_s30 + $0x688] sm:$0xff] }
 0x1c4   : > { %2632 = vst [vmem:[%s3663_s17 + $0x5f0] sm:$0xff] %v2376_v7  ;;  %v850_v10 = vmul.f32 0.035677407, %v594_v3  ;;  %v3243_v26 = vpop.eup %3242  ;;  %v1612_v48 = vmul.f32 0.5, %v5102_v47  ;;  %v1613_v36 = vmul.f32 0.5, %v5106_v5  ;;  %v596_v51 = vmul.f32 %v5161_v33, %v5161_v33  ;;  %v5184_v5 = vld [vmem:[%s3591_s30 + $0x668] sm:$0xff] }
 0x1c5   : > { %2633 = vst [vmem:[%s3663_s17 + $0x5f8] sm:$0xff] %v2377_v11  ;;  %v851_v31 = vmul.f32 0.035677407, %v595_v62  ;;  %v2378_v21 = vmul.f32 %v2122_v14, %v1610_v1  ;;  %v2123_v35 = vadd.f32 1.0, %v3243_v26  ;;  %3254 = vtanh.f32 %v1361_v24  ;;  %v5227_v26 = vld [vmem:[%s3591_s30 + $0x698] sm:$0xff] }
 0x1c6   : > { %v1106_v27 = vadd.f32 0.7978846, %v850_v10  ;;  %v1614_v15 = vmul.f32 0.5, %v5110_v4  ;;  %v852_v30 = vmul.f32 0.035677407, %v596_v51  ;;  %v597_v47 = vmul.f32 %v5170_v12, %v5170_v12  ;;  %v5224_v10 = vld [vmem:[%s3591_s30 + $0x690] sm:$0xff] }
 0x1c7   : > { %v1107_v46 = vadd.f32 0.7978846, %v851_v31  ;;  %v3245_v40 = vpop.eup %3244  ;;  %2634 = vst [vmem:[%s3663_s17 + $0x600] sm:$0xff] %v2378_v21  ;;  %v2379_v59 = vmul.f32 %v2123_v35, %v1611_v38  ;;  %v1615_v55 = vmul.f32 0.5, %v5118_v44  ;;  %v598_v0 = vmul.f32 %v5178_v39, %v5178_v39 }
 0x1c8   : > { %v1362_v29 = vmul.f32 %v1106_v27, %v5149_v52  ;;  %v2124_v56 = vadd.f32 1.0, %v3245_v40  ;;  %v1108_v22 = vadd.f32 0.7978846, %v852_v30  ;;  %v853_v60 = vmul.f32 0.035677407, %v597_v47 }
 0x1c9   : > { %v1363_v4 = vmul.f32 %v1107_v46, %v5154_v37  ;;  %v3247_v41 = vpop.eup %3246  ;;  %2635 = vst [vmem:[%s3663_s17 + $0x608] sm:$0xff] %v2379_v59  ;;  %v1616_v8 = vmul.f32 0.5, %v5127_v18  ;;  %v854_v44 = vmul.f32 0.035677407, %v598_v0  ;;  %v599_v50 = vmul.f32 %v5184_v5, %v5184_v5  ;;  %v5203_v18 = vld [vmem:[%s3591_s30 + $0x678] sm:$0xff] }
 0x1ca   : > { %3256 = vtanh.f32 %v1362_v29  ;;  %v3249_v6 = vpop.eup %3248  ;;  %v2380_v45 = vmul.f32 %v2124_v56, %v1612_v48  ;;  %v2125_v19 = vadd.f32 1.0, %v3247_v41  ;;  %v1364_v61 = vmul.f32 %v1108_v22, %v5161_v33  ;;  %v5248_v22 = vld [vmem:[%s3591_s30 + $0x6a8] sm:$0xff] }
 0x1cb   : > { %3258 = vtanh.f32 %v1363_v4  ;;  %v2126_v53 = vadd.f32 1.0, %v3249_v6  ;;  %v1109_v34 = vadd.f32 0.7978846, %v853_v60  ;;  %v1110_v49 = vadd.f32 0.7978846, %v854_v44  ;;  %v5245_v4 = vld [vmem:[%s3591_s30 + $0x6a0] sm:$0xff] }
 0x1cc   : > { %v600_v2 = vmul.f32 %v5193_v9, %v5193_v9  ;;  %v3251_v54 = vpop.eup %3250  ;;  %2636 = vst [vmem:[%s3663_s17 + $0x610] sm:$0xff] %v2380_v45  ;;  %v2381_v28 = vmul.f32 %v2125_v19, %v1613_v36  ;;  %v1617_v13 = vmul.f32 0.5, %v5135_v43  ;;  %3260 = vtanh.f32 %v1364_v61 }
 0x1cd   : > { %v855_v58 = vmul.f32 0.035677407, %v599_v50  ;;  %v3253_v42 = vpop.eup %3252  ;;  %v2382_v1 = vmul.f32 %v2126_v53, %v1614_v15  ;;  %v2127_v16 = vadd.f32 1.0, %v3251_v54  ;;  %v1365_v32 = vmul.f32 %v1109_v34, %v5170_v12 }
 0x1ce   : > { %v1366_v57 = vmul.f32 %v1110_v49, %v5178_v39  ;;  %2637 = vst [vmem:[%s3663_s17 + $0x618] sm:$0xff] %v2381_v28  ;;  %v2128_v23 = vadd.f32 1.0, %v3253_v42  ;;  %v856_v63 = vmul.f32 0.035677407, %v600_v2  ;;  %v601_v43 = vmul.f32 %v5203_v18, %v5203_v18  ;;  %v5260_v28 = vld [vmem:[%s3591_s30 + $0x6b0] sm:$0xff] }
 0x1cf   : > { %v1111_v7 = vadd.f32 0.7978846, %v855_v58  ;;  %v3255_v3 = vpop.eup %3254  ;;  %2638 = vst [vmem:[%s3663_s17 + $0x620] sm:$0xff] %v2382_v1  ;;  %v2383_v25 = vmul.f32 %v2127_v16, %v1615_v55  ;;  %v1618_v11 = vmul.f32 0.5, %v5149_v52  ;;  %3262 = vtanh.f32 %v1365_v32  ;;  %v5265_v16 = vld [vmem:[%s3591_s30 + $0x6b8] sm:$0xff] }
 0x1d0   : > { %v602_v38 = vmul.f32 %v5208_v17, %v5208_v17  ;;  %v2384_v62 = vmul.f32 %v2128_v23, %v1616_v8  ;;  %v2129_v14 = vadd.f32 1.0, %v3255_v3  ;;  %3264 = vtanh.f32 %v1366_v57 }
 0x1d1   : > { %v1367_v24 = vmul.f32 %v1111_v7, %v5184_v5  ;;  %2639 = vst [vmem:[%s3663_s17 + $0x628] sm:$0xff] %v2383_v25  ;;  %v1112_v48 = vadd.f32 0.7978846, %v856_v63  ;;  %v857_v36 = vmul.f32 0.035677407, %v601_v43  ;;  %v603_v52 = vmul.f32 %v5216_v20, %v5216_v20  ;;  %v5273_v25 = vld [vmem:[%s3591_s30 + $0x6c0] sm:$0xff] }
 0x1d2   : > { %v858_v31 = vmul.f32 0.035677407, %v602_v38  ;;  %2640 = vst [vmem:[%s3663_s17 + $0x630] sm:$0xff] %v2384_v62  ;;  %v2385_v51 = vmul.f32 %v2129_v14, %v1617_v13  ;;  %v1619_v21 = vmul.f32 0.5, %v5154_v37  ;;  %v1620_v35 = vmul.f32 0.5, %v5161_v33 }
 0x1d3   : > { %3266 = vtanh.f32 %v1367_v24  ;;  %v1368_v15 = vmul.f32 %v1112_v48, %v5193_v9  ;;  %v1113_v46 = vadd.f32 0.7978846, %v857_v36  ;;  %v859_v47 = vmul.f32 0.035677407, %v603_v52  ;;  %v5280_v48 = vld [vmem:[%s3591_s30 + $0x6c8] sm:$0xff] }
 0x1d4   : > { %v3257_v27 = vpop.eup %3256  ;;  %v1114_v30 = vadd.f32 0.7978846, %v858_v31  ;;  %2641 = vst [vmem:[%s3663_s17 + $0x638] sm:$0xff] %v2385_v51  ;;  %v1621_v55 = vmul.f32 0.5, %v5170_v12  ;;  %v604_v29 = vmul.f32 %v5224_v10, %v5224_v10  ;;  %v605_v37 = vmul.f32 %v5227_v26, %v5227_v26 }
 0x1d5   : > { %v3259_v40 = vpop.eup %3258  ;;  %v2130_v59 = vadd.f32 1.0, %v3257_v27  ;;  %3268 = vtanh.f32 %v1368_v15  ;;  %v1369_v0 = vmul.f32 %v1113_v46, %v5203_v18  ;;  %v1115_v41 = vadd.f32 0.7978846, %v859_v47  ;;  %v5289_v46 = vld [vmem:[%s3591_s30 + $0x6d0] sm:$0xff] }
 0x1d6   : > { %v2131_v33 = vadd.f32 1.0, %v3259_v40  ;;  %v1370_v56 = vmul.f32 %v1114_v30, %v5208_v17  ;;  %v3261_v60 = vpop.eup %3260  ;;  %v860_v8 = vmul.f32 0.035677407, %v604_v29  ;;  %v861_v44 = vmul.f32 0.035677407, %v605_v37 }
 0x1d7   : > { %v2386_v12 = vmul.f32 %v2130_v59, %v1618_v11  ;;  %v2132_v6 = vadd.f32 1.0, %v3261_v60  ;;  %v1622_v45 = vmul.f32 0.5, %v5178_v39  ;;  %3270 = vtanh.f32 %v1369_v0 }
 0x1d8   : > { %v2387_v50 = vmul.f32 %v2131_v33, %v1619_v21  ;;  %3272 = vtanh.f32 %v1370_v56  ;;  %v1371_v19 = vmul.f32 %v1115_v41, %v5216_v20  ;;  %v1116_v61 = vadd.f32 0.7978846, %v860_v8 }
 0x1d9   : > { %2642 = vst [vmem:[%s3663_s17 + $0x640] sm:$0xff] %v2386_v12  ;;  %v1117_v53 = vadd.f32 0.7978846, %v861_v44  ;;  %v3263_v34 = vpop.eup %3262  ;;  %v2388_v49 = vmul.f32 %v2132_v6, %v1620_v35  ;;  %v1623_v2 = vmul.f32 0.5, %v5184_v5  ;;  %v606_v54 = vmul.f32 %v5245_v4, %v5245_v4 }
 0x1da   : > { %2643 = vst [vmem:[%s3663_s17 + $0x648] sm:$0xff] %v2387_v50  ;;  %v607_v39 = vmul.f32 %v5248_v22, %v5248_v22  ;;  %v3265_v13 = vpop.eup %3264  ;;  %v2133_v58 = vadd.f32 1.0, %v3263_v34  ;;  %3274 = vtanh.f32 %v1371_v19  ;;  %v1372_v42 = vmul.f32 %v1116_v61, %v5224_v10  ;;  %v5304_v50 = vld [vmem:[%s3591_s30 + $0x6e0] sm:$0xff] }
 0x1db   : > { %v1373_v1 = vmul.f32 %v1117_v53, %v5227_v26  ;;  %2644 = vst [vmem:[%s3663_s17 + $0x650] sm:$0xff] %v2388_v49  ;;  %v2134_v5 = vadd.f32 1.0, %v3265_v13  ;;  %v1624_v32 = vmul.f32 0.5, %v5193_v9  ;;  %v862_v57 = vmul.f32 0.035677407, %v606_v54 }
 0x1dc   : > { %v863_v23 = vmul.f32 0.035677407, %v607_v39  ;;  %v2389_v63 = vmul.f32 %v2133_v58, %v1621_v55  ;;  %v1625_v43 = vmul.f32 0.5, %v5203_v18  ;;  %3276 = vtanh.f32 %v1372_v42  ;;  %v5316_v42 = vld [vmem:[%s3591_s30 + $0x6e8] sm:$0xff] }
 0x1dd   : > { %v3267_v7 = vpop.eup %3266  ;;  %v608_v3 = vmul.f32 %v5260_v28, %v5260_v28  ;;  %v2390_v11 = vmul.f32 %v2134_v5, %v1622_v45  ;;  %3278 = vtanh.f32 %v1373_v1  ;;  %v1118_v62 = vadd.f32 0.7978846, %v862_v57 }
 0x1de   : > { %v2135_v38 = vadd.f32 1.0, %v3267_v7  ;;  %2645 = vst [vmem:[%s3663_s17 + $0x658] sm:$0xff] %v2389_v63  ;;  %v1626_v9 = vmul.f32 0.5, %v5208_v17  ;;  %v1119_v14 = vadd.f32 0.7978846, %v863_v23  ;;  %v609_v18 = vmul.f32 %v5265_v16, %v5265_v16 }
 0x1df   : > { %v864_v24 = vmul.f32 0.035677407, %v608_v3  ;;  %v3269_v36 = vpop.eup %3268  ;;  %2646 = vst [vmem:[%s3663_s17 + $0x660] sm:$0xff] %v2390_v11  ;;  %v1627_v52 = vmul.f32 0.5, %v5216_v20  ;;  %v1374_v51 = vmul.f32 %v1118_v62, %v5245_v4  ;;  %v610_v21 = vmul.f32 %v5273_v25, %v5273_v25 }
 0x1e0   : > { %v2391_v31 = vmul.f32 %v2135_v38, %v1623_v2  ;;  %v2136_v35 = vadd.f32 1.0, %v3269_v36  ;;  %v1375_v17 = vmul.f32 %v1119_v14, %v5248_v22  ;;  %v865_v15 = vmul.f32 0.035677407, %v609_v18 }
 0x1e1   : > { %v1120_v27 = vadd.f32 0.7978846, %v864_v24  ;;  %v3271_v30 = vpop.eup %3270  ;;  %v1628_v47 = vmul.f32 0.5, %v5224_v10  ;;  %3280 = vtanh.f32 %v1374_v51  ;;  %v866_v20 = vmul.f32 0.035677407, %v610_v21  ;;  %v5299_v10 = vld [vmem:[%s3591_s30 + $0x6d8] sm:$0xff] }
 0x1e2   : > { %2647 = vst [vmem:[%s3663_s17 + $0x668] sm:$0xff] %v2391_v31  ;;  %v611_v40 = vmul.f32 %v5280_v48, %v5280_v48  ;;  %v3273_v59 = vpop.eup %3272  ;;  %v2392_v55 = vmul.f32 %v2136_v35, %v1624_v32  ;;  %v2137_v29 = vadd.f32 1.0, %v3271_v30  ;;  %3282 = vtanh.f32 %v1375_v17  ;;  %v5320_v32 = vld [vmem:[%s3591_s30 + $0x6f0] sm:$0xff]  ;;  %v5339_v17 = vld [vmem:[%s3591_s30 + $0x700] sm:$0xff] }
 0x1e3   : > { %v1376_v37 = vmul.f32 %v1120_v27, %v5260_v28  ;;  %v2138_v33 = vadd.f32 1.0, %v3273_v59  ;;  %v1121_v0 = vadd.f32 0.7978846, %v865_v15  ;;  %v1122_v56 = vadd.f32 0.7978846, %v866_v20  ;;  %v5345_v20 = vld [vmem:[%s3591_s30 + $0x708] sm:$0xff] }
 0x1e4   : > { %v612_v60 = vmul.f32 %v5289_v46, %v5289_v46  ;;  %v3275_v12 = vpop.eup %3274  ;;  %2648 = vst [vmem:[%s3663_s17 + $0x670] sm:$0xff] %v2392_v55  ;;  %v2393_v41 = vmul.f32 %v2137_v29, %v1625_v43  ;;  %v1629_v8 = vmul.f32 0.5, %v5227_v26  ;;  %v867_v44 = vmul.f32 0.035677407, %v611_v40 }
 0x1e5   : > { %3284 = vtanh.f32 %v1376_v37  ;;  %v2394_v6 = vmul.f32 %v2138_v33, %v1626_v9  ;;  %v2139_v45 = vadd.f32 1.0, %v3275_v12  ;;  %v1377_v19 = vmul.f32 %v1121_v0, %v5265_v16 }
 0x1e6   : > { %v1378_v61 = vmul.f32 %v1122_v56, %v5273_v25  ;;  %v3277_v53 = vpop.eup %3276  ;;  %2649 = vst [vmem:[%s3663_s17 + $0x678] sm:$0xff] %v2393_v41  ;;  %v1630_v34 = vmul.f32 0.5, %v5245_v4  ;;  %v1123_v49 = vadd.f32 0.7978846, %v867_v44  ;;  %v868_v2 = vmul.f32 0.035677407, %v612_v60 }
 0x1e7   : > { %v613_v26 = vmul.f32 %v5299_v10, %v5299_v10  ;;  %v3279_v54 = vpop.eup %3278  ;;  %2650 = vst [vmem:[%s3663_s17 + $0x680] sm:$0xff] %v2394_v6  ;;  %v2395_v39 = vmul.f32 %v2139_v45, %v1627_v52  ;;  %v2140_v13 = vadd.f32 1.0, %v3277_v53  ;;  %3286 = vtanh.f32 %v1377_v19  ;;  %v5357_v41 = vld [vmem:[%s3591_s30 + $0x710] sm:$0xff]  ;;  %v5362_v53 = vld [vmem:[%s3591_s30 + $0x718] sm:$0xff] }
 0x1e8   : > { %v614_v58 = vmul.f32 %v5304_v50, %v5304_v50  ;;  %v2141_v1 = vadd.f32 1.0, %v3279_v54  ;;  %3288 = vtanh.f32 %v1378_v61  ;;  %v1379_v4 = vmul.f32 %v1123_v49, %v5280_v48 }
 0x1e9   : > { %v1124_v5 = vadd.f32 0.7978846, %v868_v2  ;;  %2651 = vst [vmem:[%s3663_s17 + $0x688] sm:$0xff] %v2395_v39  ;;  %v2396_v57 = vmul.f32 %v2140_v13, %v1628_v47  ;;  %v1631_v23 = vmul.f32 0.5, %v5248_v22  ;;  %v869_v7 = vmul.f32 0.035677407, %v613_v26 }
 0x1ea   : > { %v870_v63 = vmul.f32 0.035677407, %v614_v58  ;;  %v2397_v43 = vmul.f32 %v2141_v1, %v1629_v8  ;;  %3290 = vtanh.f32 %v1379_v4  ;;  %v615_v11 = vmul.f32 %v5316_v42, %v5316_v42  ;;  %v5332_v22 = vld [vmem:[%s3591_s30 + $0x6f8] sm:$0xff] }
 0x1eb   : > { %v1380_v3 = vmul.f32 %v1124_v5, %v5289_v46  ;;  %v3281_v38 = vpop.eup %3280  ;;  %2652 = vst [vmem:[%s3663_s17 + $0x690] sm:$0xff] %v2396_v57  ;;  %v1632_v62 = vmul.f32 0.5, %v5260_v28  ;;  %v1125_v9 = vadd.f32 0.7978846, %v869_v7  ;;  %v616_v24 = vmul.f32 %v5320_v32, %v5320_v32  ;;  %v5376_v7 = vld [vmem:[%s3591_s30 + $0x728] sm:$0xff] }
 0x1ec   : > { %v1126_v14 = vadd.f32 0.7978846, %v870_v63  ;;  %v3283_v18 = vpop.eup %3282  ;;  %2653 = vst [vmem:[%s3663_s17 + $0x698] sm:$0xff] %v2397_v43  ;;  %v2142_v36 = vadd.f32 1.0, %v3281_v38  ;;  %v1633_v31 = vmul.f32 0.5, %v5265_v16  ;;  %v1634_v30 = vmul.f32 0.5, %v5273_v25 }
 0x1ed   : > { %3292 = vtanh.f32 %v1380_v3  ;;  %v871_v52 = vmul.f32 0.035677407, %v615_v11  ;;  %v2143_v51 = vadd.f32 1.0, %v3283_v18  ;;  %v1381_v21 = vmul.f32 %v1125_v9, %v5299_v10  ;;  %v5384_v9 = vld [vmem:[%s3591_s30 + $0x730] sm:$0xff] }
 0x1ee   : > { %v1382_v28 = vmul.f32 %v1126_v14, %v5304_v50  ;;  %v872_v35 = vmul.f32 0.035677407, %v616_v24  ;;  %v2398_v15 = vmul.f32 %v2142_v36, %v1630_v34  ;;  %v617_v16 = vmul.f32 %v5332_v22, %v5332_v22 }
 0x1ef   : > { %v3285_v27 = vpop.eup %3284  ;;  %v1127_v47 = vadd.f32 0.7978846, %v871_v52  ;;  %v2399_v40 = vmul.f32 %v2143_v51, %v1631_v23  ;;  %3294 = vtanh.f32 %v1381_v21  ;;  %v618_v25 = vmul.f32 %v5339_v17, %v5339_v17 }
 0x1f0   : > { %v2144_v59 = vadd.f32 1.0, %v3285_v27  ;;  %v1128_v55 = vadd.f32 0.7978846, %v872_v35  ;;  %2654 = vst [vmem:[%s3663_s17 + $0x6a0] sm:$0xff] %v2398_v15  ;;  %3296 = vtanh.f32 %v1382_v28  ;;  %v873_v37 = vmul.f32 0.035677407, %v617_v16 }
 0x1f1   : > { %v1383_v29 = vmul.f32 %v1127_v47, %v5316_v42  ;;  %v3287_v33 = vpop.eup %3286  ;;  %2655 = vst [vmem:[%s3663_s17 + $0x6a8] sm:$0xff] %v2399_v40  ;;  %v1635_v56 = vmul.f32 0.5, %v5280_v48  ;;  %v619_v12 = vmul.f32 %v5345_v20, %v5345_v20  ;;  %v874_v45 = vmul.f32 0.035677407, %v618_v25  ;;  %v5397_v40 = vld [vmem:[%s3591_s30 + $0x738] sm:$0xff] }
 0x1f2   : > { %v2400_v0 = vmul.f32 %v2144_v59, %v1632_v62  ;;  %v1384_v60 = vmul.f32 %v1128_v55, %v5320_v32  ;;  %v3289_v8 = vpop.eup %3288  ;;  %v2145_v44 = vadd.f32 1.0, %v3287_v33  ;;  %v1129_v6 = vadd.f32 0.7978846, %v873_v37 }
 0x1f3   : > { %3298 = vtanh.f32 %v1383_v29  ;;  %v2146_v19 = vadd.f32 1.0, %v3289_v8  ;;  %v1636_v61 = vmul.f32 0.5, %v5289_v46  ;;  %v875_v48 = vmul.f32 0.035677407, %v619_v12  ;;  %v5369_v46 = vld [vmem:[%s3591_s30 + $0x720] sm:$0xff] }
 0x1f4   : > { %2656 = vst [vmem:[%s3663_s17 + $0x6b0] sm:$0xff] %v2400_v0  ;;  %3300 = vtanh.f32 %v1384_v60  ;;  %v3291_v34 = vpop.eup %3290  ;;  %v2401_v49 = vmul.f32 %v2145_v44, %v1633_v31  ;;  %v1385_v2 = vmul.f32 %v1129_v6, %v5332_v22  ;;  %v1130_v26 = vadd.f32 0.7978846, %v874_v45  ;;  %v5410_v6 = vld [vmem:[%s3591_s30 + $0x748] sm:$0xff] }
 0x1f5   : > { %v620_v54 = vmul.f32 %v5357_v41, %v5357_v41  ;;  %v2402_v39 = vmul.f32 %v2146_v19, %v1634_v30  ;;  %v2147_v13 = vadd.f32 1.0, %v3291_v34  ;;  %v1637_v58 = vmul.f32 0.5, %v5299_v10 }
 0x1f6   : > { %v1131_v1 = vadd.f32 0.7978846, %v875_v48  ;;  %2657 = vst [vmem:[%s3663_s17 + $0x6b8] sm:$0xff] %v2401_v49  ;;  %3302 = vtanh.f32 %v1385_v2  ;;  %v1386_v5 = vmul.f32 %v1130_v26, %v5339_v17  ;;  %v621_v23 = vmul.f32 %v5362_v53, %v5362_v53  ;;  %v5418_v2 = vld [vmem:[%s3591_s30 + $0x750] sm:$0xff] }
 0x1f7   : > { %v3293_v4 = vpop.eup %3292  ;;  %v876_v57 = vmul.f32 0.035677407, %v620_v54  ;;  %2658 = vst [vmem:[%s3663_s17 + $0x6c0] sm:$0xff] %v2402_v39  ;;  %v2403_v63 = vmul.f32 %v2147_v13, %v1635_v56  ;;  %v1638_v10 = vmul.f32 0.5, %v5304_v50  ;;  %v622_v62 = vmul.f32 %v5369_v46, %v5369_v46 }
 0x1f8   : > { %v2148_v43 = vadd.f32 1.0, %v3293_v4  ;;  %v1387_v3 = vmul.f32 %v1131_v1, %v5345_v20  ;;  %3304 = vtanh.f32 %v1386_v5  ;;  %v877_v38 = vmul.f32 0.035677407, %v621_v23 }
 0x1f9   : > { %v1132_v11 = vadd.f32 0.7978846, %v876_v57  ;;  %v3295_v14 = vpop.eup %3294  ;;  %2659 = vst [vmem:[%s3663_s17 + $0x6c8] sm:$0xff] %v2403_v63  ;;  %v1639_v18 = vmul.f32 0.5, %v5316_v42  ;;  %v623_v50 = vmul.f32 %v5376_v7, %v5376_v7  ;;  %v878_v21 = vmul.f32 0.035677407, %v622_v62 }
 0x1fa   : > { %v2404_v24 = vmul.f32 %v2148_v43, %v1636_v61  ;;  %3306 = vtanh.f32 %v1387_v3  ;;  %v3297_v36 = vpop.eup %3296  ;;  %v2149_v31 = vadd.f32 1.0, %v3295_v14  ;;  %v1133_v51 = vadd.f32 0.7978846, %v877_v38  ;;  %v5436_v38 = vld [vmem:[%s3591_s30 + $0x760] sm:$0xff] }
 0x1fb   : > { %v1388_v52 = vmul.f32 %v1132_v11, %v5357_v41  ;;  %v2150_v28 = vadd.f32 1.0, %v3297_v36  ;;  %v1640_v35 = vmul.f32 0.5, %v5320_v32  ;;  %v879_v27 = vmul.f32 0.035677407, %v623_v50  ;;  %v5400_v32 = vld [vmem:[%s3591_s30 + $0x740] sm:$0xff] }
 0x1fc   : > { %2660 = vst [vmem:[%s3663_s17 + $0x6d0] sm:$0xff] %v2404_v24  ;;  %v624_v42 = vmul.f32 %v5384_v9, %v5384_v9  ;;  %v2405_v30 = vmul.f32 %v2149_v31, %v1637_v58  ;;  %v1389_v47 = vmul.f32 %v1133_v51, %v5362_v53  ;;  %v1134_v16 = vadd.f32 0.7978846, %v878_v21  ;;  %v5426_v58 = vld [vmem:[%s3591_s30 + $0x758] sm:$0xff] }
 0x1fd   : > { %v3299_v15 = vpop.eup %3298  ;;  %3308 = vtanh.f32 %v1388_v52  ;;  %v2406_v55 = vmul.f32 %v2150_v28, %v1638_v10  ;;  %v1135_v37 = vadd.f32 0.7978846, %v879_v27  ;;  %v1641_v0 = vmul.f32 0.5, %v5332_v22  ;;  %v5442_v52 = vld [vmem:[%s3591_s30 + $0x768] sm:$0xff] }
 0x1fe   : > { %v3301_v59 = vpop.eup %3300  ;;  %v2151_v29 = vadd.f32 1.0, %v3299_v15  ;;  %v880_v25 = vmul.f32 0.035677407, %v624_v42  ;;  %2661 = vst [vmem:[%s3663_s17 + $0x6d8] sm:$0xff] %v2405_v30  ;;  %3310 = vtanh.f32 %v1389_v47  ;;  %v1390_v56 = vmul.f32 %v1134_v16, %v5369_v46 }
 0x1ff   : > { %v2152_v33 = vadd.f32 1.0, %v3301_v59  ;;  %2662 = vst [vmem:[%s3663_s17 + $0x6e0] sm:$0xff] %v2406_v55  ;;  %v1391_v12 = vmul.f32 %v1135_v37, %v5376_v7  ;;  %v625_v44 = vmul.f32 %v5397_v40, %v5397_v40  ;;  %v1642_v22 = vmul.f32 0.5, %v5339_v17  ;;  %v5453_v55 = vld [vmem:[%s3591_s30 + $0x770] sm:$0xff] }
 0x200   : > { %v2407_v60 = vmul.f32 %v2151_v29, %v1639_v18  ;;  %v1136_v8 = vadd.f32 0.7978846, %v880_v25  ;;  %v3303_v45 = vpop.eup %3302  ;;  %3312 = vtanh.f32 %v1390_v56  ;;  %v626_v61 = vmul.f32 %v5400_v32, %v5400_v32 }
 0x201   : > { %v2408_v19 = vmul.f32 %v2152_v33, %v1640_v35  ;;  %v2153_v48 = vadd.f32 1.0, %v3303_v45  ;;  %3314 = vtanh.f32 %v1391_v12  ;;  %v881_v49 = vmul.f32 0.035677407, %v625_v44 }
 0x202   : > { %2663 = vst [vmem:[%s3663_s17 + $0x6e8] sm:$0xff] %v2407_v60  ;;  %v1392_v34 = vmul.f32 %v1136_v8, %v5384_v9  ;;  %v3305_v26 = vpop.eup %3304  ;;  %v1643_v54 = vmul.f32 0.5, %v5345_v20  ;;  %v1644_v39 = vmul.f32 0.5, %v5357_v41  ;;  %v882_v17 = vmul.f32 0.035677407, %v626_v61  ;;  %v5462_v8 = vld [vmem:[%s3591_s30 + $0x780] sm:$0xff] }
 0x203   : > { %2664 = vst [vmem:[%s3663_s17 + $0x6f0] sm:$0xff] %v2408_v19  ;;  %v627_v13 = vmul.f32 %v5410_v6, %v5410_v6  ;;  %v2409_v4 = vmul.f32 %v2153_v48, %v1641_v0  ;;  %v2154_v5 = vadd.f32 1.0, %v3305_v26  ;;  %v1137_v57 = vadd.f32 0.7978846, %v881_v49  ;;  %v5459_v0 = vld [vmem:[%s3591_s30 + $0x778] sm:$0xff]  ;;  %v5470_v49 = vld [vmem:[%s3591_s30 + $0x788] sm:$0xff] }
 0x204   : > { %v3307_v1 = vpop.eup %3306  ;;  %3316 = vtanh.f32 %v1392_v34  ;;  %v1138_v63 = vadd.f32 0.7978846, %v882_v17  ;;  %v628_v20 = vmul.f32 %v5418_v2, %v5418_v2  ;;  %v1645_v10 = vmul.f32 0.5, %v5362_v53  ;;  %v5479_v17 = vld [vmem:[%s3591_s30 + $0x790] sm:$0xff] }
 0x205   : > { %v2155_v23 = vadd.f32 1.0, %v3307_v1  ;;  %v883_v43 = vmul.f32 0.035677407, %v627_v13  ;;  %2665 = vst [vmem:[%s3663_s17 + $0x6f8] sm:$0xff] %v2409_v4  ;;  %v2410_v41 = vmul.f32 %v2154_v5, %v1642_v22  ;;  %v1393_v3 = vmul.f32 %v1137_v57, %v5397_v40 }
 0x206   : > { %v629_v11 = vmul.f32 %v5426_v58, %v5426_v58  ;;  %v1394_v24 = vmul.f32 %v1138_v63, %v5400_v32  ;;  %v884_v50 = vmul.f32 0.035677407, %v628_v20  ;;  %v1646_v31 = vmul.f32 0.5, %v5369_v46 }
 0x207   : > { %v3309_v62 = vpop.eup %3308  ;;  %v2411_v14 = vmul.f32 %v2155_v23, %v1643_v54  ;;  %v1139_v18 = vadd.f32 0.7978846, %v883_v43  ;;  %2666 = vst [vmem:[%s3663_s17 + $0x700] sm:$0xff] %v2410_v41  ;;  %3318 = vtanh.f32 %v1393_v3  ;;  %v630_v35 = vmul.f32 %v5436_v38, %v5436_v38 }
 0x208   : > { %v2156_v36 = vadd.f32 1.0, %v3309_v62  ;;  %v885_v53 = vmul.f32 0.035677407, %v629_v11  ;;  %v3311_v51 = vpop.eup %3310  ;;  %3320 = vtanh.f32 %v1394_v24  ;;  %v1140_v28 = vadd.f32 0.7978846, %v884_v50 }
 0x209   : > { %2667 = vst [vmem:[%s3663_s17 + $0x708] sm:$0xff] %v2411_v14  ;;  %v1395_v21 = vmul.f32 %v1139_v18, %v5410_v6  ;;  %v2157_v42 = vadd.f32 1.0, %v3311_v51  ;;  %v1647_v46 = vmul.f32 0.5, %v5376_v7  ;;  %v886_v16 = vmul.f32 0.035677407, %v630_v35  ;;  %v5492_v14 = vld [vmem:[%s3591_s30 + $0x798] sm:$0xff] }
 0x20a   : > { %v2412_v27 = vmul.f32 %v2156_v36, %v1644_v39  ;;  %v1141_v15 = vadd.f32 0.7978846, %v885_v53  ;;  %v3313_v30 = vpop.eup %3312  ;;  %v1396_v47 = vmul.f32 %v1140_v28, %v5418_v2  ;;  %v631_v59 = vmul.f32 %v5442_v52, %v5442_v52 }
 0x20b   : > { %3322 = vtanh.f32 %v1395_v21  ;;  %v3315_v29 = vpop.eup %3314  ;;  %v2413_v37 = vmul.f32 %v2157_v42, %v1645_v10  ;;  %v2158_v25 = vadd.f32 1.0, %v3313_v30  ;;  %v1648_v33 = vmul.f32 0.5, %v5384_v9 }
 0x20c   : > { %2668 = vst [vmem:[%s3663_s17 + $0x710] sm:$0xff] %v2412_v27  ;;  %v1397_v7 = vmul.f32 %v1141_v15, %v5426_v58  ;;  %v2159_v56 = vadd.f32 1.0, %v3315_v29  ;;  %3324 = vtanh.f32 %v1396_v47  ;;  %v1142_v60 = vadd.f32 0.7978846, %v886_v16  ;;  %v5506_v16 = vld [vmem:[%s3591_s30 + $0x7a8] sm:$0xff] }
 0x20d   : > { %v887_v12 = vmul.f32 0.035677407, %v631_v59  ;;  %2669 = vst [vmem:[%s3663_s17 + $0x718] sm:$0xff] %v2413_v37  ;;  %v2414_v45 = vmul.f32 %v2158_v25, %v1646_v31  ;;  %v1649_v19 = vmul.f32 0.5, %v5397_v40  ;;  %v632_v9 = vmul.f32 %v5453_v55, %v5453_v55 }
 0x20e   : > { %v3317_v44 = vpop.eup %3316  ;;  %3326 = vtanh.f32 %v1397_v7  ;;  %v2415_v22 = vmul.f32 %v2159_v56, %v1647_v46  ;;  %v1398_v48 = vmul.f32 %v1142_v60, %v5436_v38  ;;  %v1650_v26 = vmul.f32 0.5, %v5400_v32  ;;  %v5501_v46 = vld [vmem:[%s3591_s30 + $0x7a0] sm:$0xff]  ;;  %v5515_v56 = vld [vmem:[%s3591_s30 + $0x7b0] sm:$0xff]  ;;  %v5518_v60 = vld [vmem:[%s3591_s30 + $0x7b8] sm:$0xff] }
 0x20f   : > { %v2160_v61 = vadd.f32 1.0, %v3317_v44  ;;  %v1143_v34 = vadd.f32 0.7978846, %v887_v12  ;;  %2670 = vst [vmem:[%s3663_s17 + $0x720] sm:$0xff] %v2414_v45  ;;  %v888_v54 = vmul.f32 0.035677407, %v632_v9  ;;  %v633_v39 = vmul.f32 %v5459_v0, %v5459_v0 }
 0x210   : > { %v634_v40 = vmul.f32 %v5462_v8, %v5462_v8  ;;  %2671 = vst [vmem:[%s3663_s17 + $0x728] sm:$0xff] %v2415_v22  ;;  %v1651_v1 = vmul.f32 0.5, %v5410_v6  ;;  %3328 = vtanh.f32 %v1398_v48  ;;  %v635_v63 = vmul.f32 %v5470_v49, %v5470_v49 }
 0x211   : > { %v2416_v13 = vmul.f32 %v2160_v61, %v1648_v33  ;;  %v1399_v4 = vmul.f32 %v1143_v34, %v5442_v52  ;;  %v3319_v5 = vpop.eup %3318  ;;  %v1144_v32 = vadd.f32 0.7978846, %v888_v54  ;;  %v889_v57 = vmul.f32 0.035677407, %v633_v39  ;;  %v5525_v61 = vld [vmem:[%s3591_s30 + $0x7c0] sm:$0xff] }
 0x212   : > { %v890_v23 = vmul.f32 0.035677407, %v634_v40  ;;  %v3321_v43 = vpop.eup %3320  ;;  %v2161_v20 = vadd.f32 1.0, %v3319_v5  ;;  %v1652_v41 = vmul.f32 0.5, %v5418_v2  ;;  %v636_v6 = vmul.f32 %v5479_v17, %v5479_v17 }
 0x213   : > { %2672 = vst [vmem:[%s3663_s17 + $0x730] sm:$0xff] %v2416_v13  ;;  %3330 = vtanh.f32 %v1399_v4  ;;  %v2162_v10 = vadd.f32 1.0, %v3321_v43  ;;  %v1400_v3 = vmul.f32 %v1144_v32, %v5453_v55  ;;  %v1145_v11 = vadd.f32 0.7978846, %v889_v57  ;;  %v5535_v4 = vld [vmem:[%s3591_s30 + $0x7c8] sm:$0xff] }
 0x214   : > { %v1146_v62 = vadd.f32 0.7978846, %v890_v23  ;;  %v2417_v18 = vmul.f32 %v2161_v20, %v1649_v19  ;;  %v1653_v50 = vmul.f32 0.5, %v5426_v58  ;;  %v891_v36 = vmul.f32 0.035677407, %v635_v63 }
 0x215   : > { %v3323_v24 = vpop.eup %3322  ;;  %v892_v2 = vmul.f32 0.035677407, %v636_v6  ;;  %v2418_v31 = vmul.f32 %v2162_v10, %v1650_v26  ;;  %3332 = vtanh.f32 %v1400_v3  ;;  %v1401_v51 = vmul.f32 %v1145_v11, %v5459_v0 }
 0x216   : > { %v2163_v53 = vadd.f32 1.0, %v3323_v24  ;;  %v3325_v21 = vpop.eup %3324  ;;  %2673 = vst [vmem:[%s3663_s17 + $0x738] sm:$0xff] %v2417_v18  ;;  %v1402_v28 = vmul.f32 %v1146_v62, %v5462_v8  ;;  %v1147_v35 = vadd.f32 0.7978846, %v891_v36  ;;  %v637_v42 = vmul.f32 %v5492_v14, %v5492_v14 }
 0x217   : > { %v1148_v27 = vadd.f32 0.7978846, %v892_v2  ;;  %2674 = vst [vmem:[%s3663_s17 + $0x740] sm:$0xff] %v2418_v31  ;;  %v2164_v30 = vadd.f32 1.0, %v3325_v21  ;;  %v1654_v47 = vmul.f32 0.5, %v5436_v38  ;;  %3334 = vtanh.f32 %v1401_v51 }
 0x218   : > { %v3327_v58 = vpop.eup %3326  ;;  %v2419_v15 = vmul.f32 %v2163_v53, %v1651_v1  ;;  %3336 = vtanh.f32 %v1402_v28  ;;  %v1403_v29 = vmul.f32 %v1147_v35, %v5470_v49  ;;  %v1655_v33 = vmul.f32 0.5, %v5442_v52 }
 0x219   : > { %v2165_v59 = vadd.f32 1.0, %v3327_v58  ;;  %v1404_v37 = vmul.f32 %v1148_v27, %v5479_v17  ;;  %v2420_v25 = vmul.f32 %v2164_v30, %v1652_v41  ;;  %v893_v7 = vmul.f32 0.035677407, %v637_v42  ;;  %v5557_v58 = vld [vmem:[%s3591_s30 + $0x7d8] sm:$0xff] }
 0x21a   : > { %2675 = vst [vmem:[%s3663_s17 + $0x748] sm:$0xff] %v2419_v15  ;;  %v638_v38 = vmul.f32 %v5501_v46, %v5501_v46  ;;  %v3329_v12 = vpop.eup %3328  ;;  %v1656_v45 = vmul.f32 0.5, %v5453_v55  ;;  %3338 = vtanh.f32 %v1403_v29  ;;  %v639_v19 = vmul.f32 %v5506_v16, %v5506_v16  ;;  %v5561_v29 = vld [vmem:[%s3591_s30 + $0x7e0] sm:$0xff] }
 0x21b   : > { %v2421_v44 = vmul.f32 %v2165_v59, %v1653_v50  ;;  %2676 = vst [vmem:[%s3663_s17 + $0x750] sm:$0xff] %v2420_v25  ;;  %v2166_v52 = vadd.f32 1.0, %v3329_v12  ;;  %3340 = vtanh.f32 %v1404_v37  ;;  %v1149_v9 = vadd.f32 0.7978846, %v893_v7  ;;  %v5548_v50 = vld [vmem:[%s3591_s30 + $0x7d0] sm:$0xff]  ;;  %v5564_v37 = vld [vmem:[%s3591_s30 + $0x7e8] sm:$0xff] }
 0x21c   : > { %v894_v22 = vmul.f32 0.035677407, %v638_v38  ;;  %v1657_v34 = vmul.f32 0.5, %v5459_v0  ;;  %v895_v26 = vmul.f32 0.035677407, %v639_v19  ;;  %v640_v55 = vmul.f32 %v5515_v56, %v5515_v56 }
 0x21d   : > { %v3331_v48 = vpop.eup %3330  ;;  %2677 = vst [vmem:[%s3663_s17 + $0x758] sm:$0xff] %v2421_v44  ;;  %v641_v54 = vmul.f32 %v5518_v60, %v5518_v60  ;;  %v2422_v39 = vmul.f32 %v2166_v52, %v1654_v47  ;;  %v1405_v13 = vmul.f32 %v1149_v9, %v5492_v14  ;;  %v642_v0 = vmul.f32 %v5525_v61, %v5525_v61 }
 0x21e   : > { %v2167_v40 = vadd.f32 1.0, %v3331_v48  ;;  %v1150_v1 = vadd.f32 0.7978846, %v894_v22  ;;  %v1151_v5 = vadd.f32 0.7978846, %v895_v26  ;;  %v1658_v43 = vmul.f32 0.5, %v5462_v8 }
 0x21f   : > { %v896_v32 = vmul.f32 0.035677407, %v640_v55  ;;  %v897_v57 = vmul.f32 0.035677407, %v641_v54  ;;  %v3333_v23 = vpop.eup %3332  ;;  %2678 = vst [vmem:[%s3663_s17 + $0x760] sm:$0xff] %v2422_v39  ;;  %3342 = vtanh.f32 %v1405_v13  ;;  %v1659_v62 = vmul.f32 0.5, %v5470_v49 }
 0x220   : > { %v2423_v63 = vmul.f32 %v2167_v40, %v1655_v33  ;;  %v1406_v20 = vmul.f32 %v1150_v1, %v5501_v46  ;;  %v2168_v41 = vadd.f32 1.0, %v3333_v23  ;;  %v1407_v6 = vmul.f32 %v1151_v5, %v5506_v16  ;;  %v5576_v22 = vld [vmem:[%s3591_s30 + $0x7f0] sm:$0xff] }
 0x221   : > { %v1152_v10 = vadd.f32 0.7978846, %v896_v32  ;;  %v1153_v3 = vadd.f32 0.7978846, %v897_v57  ;;  %v3335_v11 = vpop.eup %3334  ;;  %v898_v24 = vmul.f32 0.035677407, %v642_v0  ;;  %v643_v18 = vmul.f32 %v5535_v4, %v5535_v4 }
 0x222   : > { %2679 = vst [vmem:[%s3663_s17 + $0x768] sm:$0xff] %v2423_v63  ;;  %3344 = vtanh.f32 %v1406_v20  ;;  %v3337_v8 = vpop.eup %3336  ;;  %v2424_v36 = vmul.f32 %v2168_v41, %v1656_v45  ;;  %v2169_v2 = vadd.f32 1.0, %v3335_v11  ;;  %v1660_v27 = vmul.f32 0.5, %v5479_v17 }
 0x223   : > { %3346 = vtanh.f32 %v1407_v6  ;;  %v1408_v31 = vmul.f32 %v1152_v10, %v5515_v56  ;;  %v2170_v53 = vadd.f32 1.0, %v3337_v8  ;;  %v1409_v51 = vmul.f32 %v1153_v3, %v5518_v60 }
 0x224   : > { %v1154_v49 = vadd.f32 0.7978846, %v898_v24  ;;  %v899_v21 = vmul.f32 0.035677407, %v643_v18  ;;  %v3339_v28 = vpop.eup %3338  ;;  %2680 = vst [vmem:[%s3663_s17 + $0x770] sm:$0xff] %v2424_v36  ;;  %v2425_v35 = vmul.f32 %v2169_v2, %v1657_v34  ;;  %v644_v42 = vmul.f32 %v5548_v50, %v5548_v50 }
 0x225   : > { %3348 = vtanh.f32 %v1408_v31  ;;  %v3341_v15 = vpop.eup %3340  ;;  %v2426_v30 = vmul.f32 %v2170_v53, %v1658_v43  ;;  %v2171_v47 = vadd.f32 1.0, %v3339_v28  ;;  %v1661_v25 = vmul.f32 0.5, %v5492_v14 }
 0x226   : > { %3350 = vtanh.f32 %v1409_v51  ;;  %v1410_v59 = vmul.f32 %v1154_v49, %v5525_v61  ;;  %2681 = vst [vmem:[%s3663_s17 + $0x778] sm:$0xff] %v2425_v35  ;;  %v2172_v17 = vadd.f32 1.0, %v3341_v15  ;;  %v1155_v33 = vadd.f32 0.7978846, %v899_v21 }
 0x227   : > { %v900_v7 = vmul.f32 0.035677407, %v644_v42  ;;  %2682 = vst [vmem:[%s3663_s17 + $0x780] sm:$0xff] %v2426_v30  ;;  %v2427_v38 = vmul.f32 %v2171_v47, %v1659_v62  ;;  %v1662_v12 = vmul.f32 0.5, %v5501_v46  ;;  %v645_v44 = vmul.f32 %v5557_v58, %v5557_v58 }
 0x228   : > { %3352 = vtanh.f32 %v1410_v59  ;;  %v2428_v45 = vmul.f32 %v2172_v17, %v1660_v27  ;;  %v1411_v19 = vmul.f32 %v1155_v33, %v5535_v4  ;;  %v646_v9 = vmul.f32 %v5561_v29, %v5561_v29 }
 0x229   : > { %v1156_v52 = vadd.f32 0.7978846, %v900_v7  ;;  %v3343_v14 = vpop.eup %3342  ;;  %2683 = vst [vmem:[%s3663_s17 + $0x788] sm:$0xff] %v2427_v38  ;;  %v1663_v48 = vmul.f32 0.5, %v5506_v16  ;;  %v1664_v46 = vmul.f32 0.5, %v5515_v56  ;;  %v647_v26 = vmul.f32 %v5564_v37, %v5564_v37  ;;  %v5589_v56 = vld [vmem:[%s3591_s30 + $0x7f8] sm:$0xff] }
 0x22a   : > { %v901_v34 = vmul.f32 0.035677407, %v645_v44  ;;  %2684 = vst [vmem:[%s3663_s17 + $0x790] sm:$0xff] %v2428_v45  ;;  %v2173_v55 = vadd.f32 1.0, %v3343_v14  ;;  %3354 = vtanh.f32 %v1411_v19  ;;  %v902_v39 = vmul.f32 0.035677407, %v646_v9 }
 0x22b   : > { %v1412_v54 = vmul.f32 %v1156_v52, %v5548_v50  ;;  %v1665_v13 = vmul.f32 0.5, %v5518_v60  ;;  %v903_v5 = vmul.f32 0.035677407, %v647_v26  ;;  %v648_v16 = vmul.f32 %v5576_v22, %v5576_v22 }
 0x22c   : > { %v3345_v40 = vpop.eup %3344  ;;  %v1157_v1 = vadd.f32 0.7978846, %v901_v34  ;;  %v2429_v57 = vmul.f32 %v2173_v55, %v1661_v25  ;;  %v1158_v23 = vadd.f32 0.7978846, %v902_v39  ;;  %v1666_v10 = vmul.f32 0.5, %v5525_v61 }
 0x22d   : > { %v3347_v32 = vpop.eup %3346  ;;  %v2174_v0 = vadd.f32 1.0, %v3345_v40  ;;  %3356 = vtanh.f32 %v1412_v54  ;;  %v1159_v20 = vadd.f32 0.7978846, %v903_v5  ;;  %v904_v41 = vmul.f32 0.035677407, %v648_v16 }
 0x22e   : > { %v2175_v63 = vadd.f32 1.0, %v3347_v32  ;;  %v1413_v43 = vmul.f32 %v1157_v1, %v5557_v58  ;;  %2685 = vst [vmem:[%s3663_s17 + $0x798] sm:$0xff] %v2429_v57  ;;  %v1414_v3 = vmul.f32 %v1158_v23, %v5561_v29  ;;  %v649_v11 = vmul.f32 %v5589_v56, %v5589_v56 }
 0x22f   : > { %v3349_v6 = vpop.eup %3348  ;;  %v2430_v60 = vmul.f32 %v2174_v0, %v1662_v12  ;;  %v1415_v8 = vmul.f32 %v1159_v20, %v5564_v37  ;;  %v1160_v2 = vadd.f32 0.7978846, %v904_v41  ;;  %v1667_v35 = vmul.f32 0.5, %v5535_v4 }
 0x230   : > { %v3351_v62 = vpop.eup %3350  ;;  %v2431_v24 = vmul.f32 %v2175_v63, %v1663_v48  ;;  %v2176_v18 = vadd.f32 1.0, %v3349_v6  ;;  %3358 = vtanh.f32 %v1413_v43  ;;  %v905_v31 = vmul.f32 0.035677407, %v649_v11 }
 0x231   : > { %2686 = vst [vmem:[%s3663_s17 + $0x7a0] sm:$0xff] %v2430_v60  ;;  %v2177_v36 = vadd.f32 1.0, %v3351_v62  ;;  %3360 = vtanh.f32 %v1414_v3  ;;  %v1416_v21 = vmul.f32 %v1160_v2, %v5576_v22  ;;  %v1668_v47 = vmul.f32 0.5, %v5548_v50 }
 0x232   : > { %v3353_v53 = vpop.eup %3352  ;;  %2687 = vst [vmem:[%s3663_s17 + $0x7a8] sm:$0xff] %v2431_v24  ;;  %v2432_v61 = vmul.f32 %v2176_v18, %v1664_v46  ;;  %3362 = vtanh.f32 %v1415_v8  ;;  %v1161_v28 = vadd.f32 0.7978846, %v905_v31  ;;  %v1669_v33 = vmul.f32 0.5, %v5557_v58 }
 0x233   : > { %v2433_v51 = vmul.f32 %v2177_v36, %v1665_v13  ;;  %v2178_v49 = vadd.f32 1.0, %v3353_v53  ;;  %3364 = vtanh.f32 %v1416_v21  ;;  %v1670_v38 = vmul.f32 0.5, %v5561_v29 }
 0x234   : > { %2688 = vst [vmem:[%s3663_s17 + $0x7b0] sm:$0xff] %v2432_v61  ;;  %v3355_v27 = vpop.eup %3354  ;;  %v1417_v15 = vmul.f32 %v1161_v28, %v5589_v56  ;;  %v1671_v50 = vmul.f32 0.5, %v5564_v37  ;;  %v1672_v14 = vmul.f32 0.5, %v5576_v22  ;;  %v1673_v37 = vmul.f32 0.5, %v5589_v56 }
 0x235   : > { %2689 = vst [vmem:[%s3663_s17 + $0x7b8] sm:$0xff] %v2433_v51  ;;  %v2434_v42 = vmul.f32 %v2178_v49, %v1666_v10  ;;  %v2179_v30 = vadd.f32 1.0, %v3355_v27 }
 0x236   : > { %3366 = vtanh.f32 %v1417_v15 }
 0x237   : > { %v3357_v59 = vpop.eup %3356  ;;  %2690 = vst [vmem:[%s3663_s17 + $0x7c0] sm:$0xff] %v2434_v42  ;;  %v2435_v17 = vmul.f32 %v2179_v30, %v1667_v35 }
 0x238   : > { %v2180_v25 = vadd.f32 1.0, %v3357_v59 }
 0x239   : > { %2691 = vst [vmem:[%s3663_s17 + $0x7c8] sm:$0xff] %v2435_v17 }
 0x23a   : > { %v3359_v7 = vpop.eup %3358  ;;  %v2436_v4 = vmul.f32 %v2180_v25, %v1668_v47 }
 0x23b   : > { %v3361_v12 = vpop.eup %3360  ;;  %v2181_v44 = vadd.f32 1.0, %v3359_v7 }
 0x23c   : > { %v3363_v45 = vpop.eup %3362  ;;  %2692 = vst [vmem:[%s3663_s17 + $0x7d0] sm:$0xff] %v2436_v4  ;;  %v2182_v19 = vadd.f32 1.0, %v3361_v12 }
 0x23d   : > { %v2437_v52 = vmul.f32 %v2181_v44, %v1669_v33  ;;  %v2183_v9 = vadd.f32 1.0, %v3363_v45  ;;  %v3365_v48 = vpop.eup %3364 }
 0x23e   : > { %v2438_v58 = vmul.f32 %v2182_v19, %v1670_v38  ;;  %v2184_v46 = vadd.f32 1.0, %v3365_v48 }
 0x23f   : > { %2693 = vst [vmem:[%s3663_s17 + $0x7d8] sm:$0xff] %v2437_v52  ;;  %v2439_v29 = vmul.f32 %v2183_v9, %v1671_v50 }
 0x240   : > { %2694 = vst [vmem:[%s3663_s17 + $0x7e0] sm:$0xff] %v2438_v58  ;;  %v3367_v34 = vpop.eup %3366  ;;  %v2440_v26 = vmul.f32 %v2184_v46, %v1672_v14 }
 0x241   : > { %2695 = vst [vmem:[%s3663_s17 + $0x7e8] sm:$0xff] %v2439_v29  ;;  %v2185_v55 = vadd.f32 1.0, %v3367_v34 }
 0x242   : > { %2696 = vst [vmem:[%s3663_s17 + $0x7f0] sm:$0xff] %v2440_v26 }
 0x243   : > { %v2441_v22 = vmul.f32 %v2185_v55, %v1673_v37 }
 0x245   : > { %2697 = vst [vmem:[%s3663_s17 + $0x7f8] sm:$0xff] %v2441_v22 }
 0x246   : > { %3411 = shalt.err (!%p3408_p1)
}
 0x247   : > { %s3412_s13 = scalar_lea.hbm %s5622_s2, 32768  ;;  %s3416_s20 = scalar_lea.hbm %s5670_s1, 131072 }
 0x248   : > { %p3413_p3 = scmp.ne.s32.totalorder %s5622_s2, %s3412_s13  ;;  %p3417_p0 = scmp.lt.u32.totalorder %s5622_s2, %s5670_s1 }
 0x249   : > { %p3418_p2 = scmp.lt.u32.totalorder %s3416_s20, %s3412_s13  ;;  %p3420_p6 = scmp.lt.u32.totalorder %s3412_s13, %s5622_s2 }
 0x24a   : > { %p3414_p4 = pnand %p3413_p3, %p5677_p10 }
 0x24b   : > { %p3419_p7 = por %p3418_p2, %p3417_p0 }
 0x24c   : > { %p3415_p5 = pneg %p3414_p4 }
 0x24d   : > { %p3421_p11 = por %p3420_p6, %p3419_p7 }
 0x24f   : > { %p3422_p12 = pnand %p3421_p11, %p3415_p5 }
 0x251   : > { %3425 = shalt.err (!%p3422_p12)
}
 0x252   : > { %s3470_s24 = smov 4096   ;;  %s3471_s26 = smov 256  }
 0x253   : > { %2808 = dma.vmem_to_hbm [thread:$0]  (%p5677_p10), %s5624_s27, 32768, %s5622_s2, %s2699_s3, %s3470_s24, %s3470_s24, %s3471_s26  }
 0x254 PF: > { %p2819_p8 = scmp.ge.s32.totalorder %s3464_s9, 2  ;;  %s2728_s30 = sand.u32 1, %s3452_s6  }
 0x255   : > { %p5678_p9 = scmp.ne.s32.totalorder %s5675_s19, 0  ;;  %s2729_s17 = scalar_lea.sflag [#allocation4], %s2728_s30 }
 0x257   : > { %p2815_p13 = pnand %p2819_p8, %p5678_p9 }
 0x259   : > { %3447 = dma.done.wait (!%p2815_p13), %s2729_s17, 32768  }
 0x25a   : > { %3449 = vsyncadd (!%p2815_p13), %s2729_s17, 4294934528  ;;  %p14_p1 = scmp.ge.s32.totalorder %s3507_s12, 6   ;;  %s5679_s6 = smov %s3456_s7 }
 0x25b   : > { %s5680_s7 = smov %s3460_s8  ;;  %s5681_s8 = smov %s3519_s15 }
 0x25c   : > { %s5682_s9 = smov %s3507_s12  ;;  %16 = sbr.rel (!%p14_p1) target bundleno = 5 (0x5), region = 69 }
 0x263   :  { %2734 = vsyncpa [#allocation3], 1 }
 0x264   :  { %2736 = vsyncpa [#allocation3 + $0x1], 1 }
 0x265   :  { %2737 = vsyncpa [#allocation4], 1 }
 0x266   :  { %2739 = vsyncpa [#allocation4 + $0x1], 1 }

</bundles_post_ra>
